<compile_context>
chip_gen: v7x
topology: tpu7x:2x2x1
jax: 0.10.0
libtpu: 0.0.40
codegen_flags: <defaults>
</compile_context>

<pallas_src>
import jax
import jax.numpy as jnp
from jax.experimental import pallas as pl
from jax.experimental.pallas import tpu as pltpu

EPS = 1e-5
LANE = 128


def _round_up(x, m):
    return (x + m - 1) // m * m


def _fold_bn(gamma, beta, mean, var):
    scale = gamma / jnp.sqrt(var + EPS)
    bias = beta - mean * scale
    return scale, bias


# --------------------------------------------------------------------------
# Pallas kernel factory: one batch element per grid step.
# --------------------------------------------------------------------------
def _make_kernel(*, stride, Ho, Wo, Cin_p, Cout_p, has_sc, compute_dtype):
    s = stride

    def body(ph_ref, w1_ref, w2_ref, wsc_ref, b_ref, out_ref,
             p1_ref, pad_ref, p2_ref):
        # ---- conv1 (3x3, stride s, pad 1) --------------------------------
        # Build im2col patches in-kernel from the phase-split padded input
        # (one HBM copy of x), then a single K = 9*Cin_p MXU matmul.
        for kh in range(3):
            for kw in range(3):
                a, r0 = kh % s, kh // s
                b_, c0 = kw % s, kw // s
                t = kh * 3 + kw
                win = ph_ref[0, a * s + b_, r0:r0 + Ho, c0:c0 + Wo, :]
                p1_ref[:, t * Cin_p:(t + 1) * Cin_p] = (
                    win.reshape(Ho * Wo, Cin_p).astype(compute_dtype))
        h1 = jnp.dot(p1_ref[...], w1_ref[...],
                     preferred_element_type=jnp.float32)
        h1 = jnp.maximum(h1 + b_ref[0:1, :], 0.0)          # BN bias + ReLU

        # ---- conv2 (3x3, stride 1, pad 1) --------------------------------
        # Zero only the 1-pixel halo each step (interior fully overwritten).
        zrow = jnp.zeros((1, Wo + 2, Cout_p), compute_dtype)
        zcol = jnp.zeros((Ho + 2, 1, Cout_p), compute_dtype)
        pad_ref[0:1, :, :] = zrow
        pad_ref[Ho + 1:Ho + 2, :, :] = zrow
        pad_ref[:, 0:1, :] = zcol
        pad_ref[:, Wo + 1:Wo + 2, :] = zcol
        pad_ref[1:Ho + 1, 1:Wo + 1, :] = (
            h1.reshape(Ho, Wo, Cout_p).astype(compute_dtype))

        # Gather the 9 shifted windows into one contiguous patch buffer and
        # do a single K = 9*Cout_p matmul (no accumulator round-trips).
        for kh in range(3):
            for kw in range(3):
                t = kh * 3 + kw
                win = pad_ref[kh:kh + Ho, kw:kw + Wo, :]
                p2_ref[:, t * Cout_p:(t + 1) * Cout_p] = (
                    win.reshape(Ho * Wo, Cout_p))
        h2 = jnp.dot(p2_ref[...], w2_ref[...],
                     preferred_element_type=jnp.float32) + b_ref[1:2, :]

        # ---- shortcut -----------------------------------------------------
        if has_sc:
            # 1x1 conv, stride s: x[s*oh, s*ow] comes straight from the
            # already-resident phase-split tile (no extra DMA of x).
            a, r0 = 1 % s, 1 // s
            xs = ph_ref[0, a * s + a, r0:r0 + Ho, r0:r0 + Wo, :]
            xs = xs.reshape(Ho * Wo, Cin_p).astype(compute_dtype)
            sc = jnp.dot(xs, wsc_ref[...],
                         preferred_element_type=jnp.float32) + b_ref[2:3, :]
        else:
            # identity shortcut: reuse the resident f32 input tile directly.
            sc = ph_ref[0, 0, 1:1 + Ho, 1:1 + Wo, :]
            sc = sc.reshape(Ho * Wo, Cout_p).astype(jnp.float32)

        # ---- residual add + ReLU (f32 epilogue) --------------------------
        out_ref[0] = jnp.maximum(h2 + sc, 0.0)

    if has_sc:
        def kernel(ph, w1, w2, wsc, b, out, p1, pad, p2):
            body(ph, w1, w2, wsc, b, out, p1, pad, p2)
    else:
        def kernel(ph, w1, w2, b, out, p1, pad, p2):
            body(ph, w1, w2, None, b, out, p1, pad, p2)
    return kernel


# --------------------------------------------------------------------------
# Parameter init (PyTorch OIHW conventions) and wrapper.
# --------------------------------------------------------------------------
def init_params(key, cin, cout, stride):
    ks = jax.random.split(key, 7)

    def conv_w(k, co, ci, kh, kw):
        return 0.1 * jax.random.normal(k, (co, ci, kh, kw), jnp.float32)

    def bn_params(k, c):
        k1, k2, k3, k4 = jax.random.split(k, 4)
        gamma = 1.0 + 0.1 * jax.random.normal(k1, (c,), jnp.float32)
        beta = 0.1 * jax.random.normal(k2, (c,), jnp.float32)
        mean = 0.1 * jax.random.normal(k3, (c,), jnp.float32)
        var = jax.random.uniform(k4, (c,), jnp.float32, minval=0.5, maxval=1.5)
        return (gamma, beta, mean, var)

    params = {
        "w1": conv_w(ks[0], cout, cin, 3, 3),
        "bn1": bn_params(ks[1], cout),
        "w2": conv_w(ks[2], cout, cout, 3, 3),
        "bn2": bn_params(ks[3], cout),
    }
    if stride != 1 or cin != cout:
        params["wsc"] = conv_w(ks[4], cout, cin, 1, 1)
        params["bnsc"] = bn_params(ks[5], cout)
    return params


def basic_block_forward(x_nchw, params, stride, compute_dtype=jnp.bfloat16):
    """Pallas implementation.  Input/output NCHW to mirror PyTorch."""
    x = jnp.transpose(x_nchw, (0, 2, 3, 1)).astype(jnp.float32)    # -> NHWC
    N, H, W, Cin = x.shape
    Cout = params["w1"].shape[0]
    has_sc = "wsc" in params
    s = stride

    Ho = (H - 1) // s + 1
    Wo = (W - 1) // s + 1
    Cin_p = _round_up(Cin, LANE)
    Cout_p = _round_up(Cout, LANE)

    # Pad spatially by 1, pad channels lane-dense, and phase-split by the
    # stride so every conv tap becomes a contiguous (unstrided) window
    # inside the kernel: ph[n, a*s+b, i, j, c] = xpad[n, a + s*i, b + s*j, c].
    Hq = -(-(H + 2) // s)
    Wq = -(-(W + 2) // s)
    xp = jnp.pad(x, ((0, 0),
                     (1, Hq * s - H - 1),
                     (1, Wq * s - W - 1),
                     (0, Cin_p - Cin)))
    ph = xp.reshape(N, Hq, s, Wq, s, Cin_p).transpose(0, 2, 4, 1, 3, 5)
    ph = ph.reshape(N, s * s, Hq, Wq, Cin_p)
    # identity-shortcut path keeps the input in f32 so the residual is exact
    in_dtype = compute_dtype if has_sc else jnp.float32
    ph = ph.astype(in_dtype)

    # Weights OIHW -> HWIO, BN scales folded in, channels padded, bf16.
    s1, b1 = _fold_bn(*params["bn1"])
    s2, b2 = _fold_bn(*params["bn2"])
    w1 = jnp.transpose(params["w1"], (2, 3, 1, 0)) * s1            # (3,3,Cin,Cout)
    w2 = jnp.transpose(params["w2"], (2, 3, 1, 0)) * s2            # (3,3,Cout,Cout)
    w1 = jnp.pad(w1, ((0, 0), (0, 0), (0, Cin_p - Cin), (0, Cout_p - Cout)))
    w2 = jnp.pad(w2, ((0, 0), (0, 0), (0, Cout_p - Cout), (0, Cout_p - Cout)))
    w1 = w1.reshape(9 * Cin_p, Cout_p).astype(compute_dtype)
    w2 = w2.reshape(9 * Cout_p, Cout_p).astype(compute_dtype)

    b1p = jnp.pad(b1, (0, Cout_p - Cout))
    b2p = jnp.pad(b2, (0, Cout_p - Cout))
    if has_sc:
        ssc, bsc = _fold_bn(*params["bnsc"])
        wsc = jnp.transpose(params["wsc"], (2, 3, 1, 0)).reshape(Cin, Cout) * ssc
        wsc = jnp.pad(wsc, ((0, Cin_p - Cin), (0, Cout_p - Cout)))
        wsc = wsc.astype(compute_dtype)
        bscp = jnp.pad(bsc, (0, Cout_p - Cout))
    else:
        bscp = jnp.zeros((Cout_p,), jnp.float32)
    biases = jnp.stack([b1p, b2p, bscp]).astype(jnp.float32)       # (3, Cout_p)

    kernel = _make_kernel(stride=s, Ho=Ho, Wo=Wo, Cin_p=Cin_p, Cout_p=Cout_p,
                          has_sc=has_sc, compute_dtype=compute_dtype)

    in_arrays = [ph, w1, w2] + ([wsc] if has_sc else []) + [biases]
    in_specs = [
        pl.BlockSpec((1, s * s, Hq, Wq, Cin_p), lambda n: (n, 0, 0, 0, 0)),
        pl.BlockSpec((9 * Cin_p, Cout_p), lambda n: (0, 0)),
        pl.BlockSpec((9 * Cout_p, Cout_p), lambda n: (0, 0)),
    ]
    if has_sc:
        in_specs.append(pl.BlockSpec((Cin_p, Cout_p), lambda n: (0, 0)))
    in_specs.append(pl.BlockSpec((3, Cout_p), lambda n: (0, 0)))

    out = pl.pallas_call(
        kernel,
        out_shape=jax.ShapeDtypeStruct((N, Ho * Wo, Cout_p), jnp.float32),
        grid=(N,),
        in_specs=in_specs,
        out_specs=pl.BlockSpec((1, Ho * Wo, Cout_p), lambda n: (n, 0, 0)),
        scratch_shapes=[
            pltpu.VMEM((Ho * Wo, 9 * Cin_p), compute_dtype),       # conv1 patches
            pltpu.VMEM((Ho + 2, Wo + 2, Cout_p), compute_dtype),   # padded h1
            pltpu.VMEM((Ho * Wo, 9 * Cout_p), compute_dtype),      # conv2 patches
        ],
        compiler_params=pltpu.CompilerParams(
            dimension_semantics=("parallel",),
            vmem_limit_bytes=48 * 1024 * 1024),
    )(*in_arrays)

    out = out[:, :, :Cout].reshape(N, Ho, Wo, Cout)
    return jnp.transpose(out, (0, 3, 1, 2))                        # -> NCHW


# --------------------------------------------------------------------------
# Pure-JAX f32 reference (eval-mode BN), for correctness check.
# --------------------------------------------------------------------------
def reference_forward(x_nchw, params, stride):
    x = jnp.transpose(x_nchw, (0, 2, 3, 1)).astype(jnp.float32)

    def conv(x, w_oihw, s, pad):
        w = jnp.transpose(w_oihw, (2, 3, 1, 0))
        return jax.lax.conv_general_dilated(
            x, w, (s, s), [(pad, pad), (pad, pad)],
            dimension_numbers=("NHWC", "HWIO", "NHWC"))

    def bn(x, bnp):
        gamma, beta, mean, var = bnp
        return (x - mean) / jnp.sqrt(var + EPS) * gamma + beta

    h = jax.nn.relu(bn(conv(x, params["w1"], stride, 1), params["bn1"]))
    h = bn(conv(h, params["w2"], 1, 1), params["bn2"])
    if "wsc" in params:
        sc = bn(conv(x, params["wsc"], stride, 0), params["bnsc"])
    else:
        sc = x
    out = jax.nn.relu(h + sc)
    return jnp.transpose(out, (0, 3, 1, 2))


# --------------------------------------------------------------------------
if __name__ == "__main__":
    key = jax.random.PRNGKey(0)
    kx, kp = jax.random.split(key)

    # Downsampling block (stride 2 -> 1x1-conv/BN shortcut), NCHW like PyTorch.
    N, Cin, H, W = 2, 4, 16, 16
    Cout, stride = 8, 2
    x = jax.random.normal(kx, (N, Cin, H, W), jnp.float32)
    params = init_params(kp, Cin, Cout, stride)

    out = jax.block_until_ready(basic_block_forward(x, params, stride))
    ref = jax.block_until_ready(reference_forward(x, params, stride))
    assert out.shape == ref.shape, (out.shape, ref.shape)
    # bf16 matmul operands (f32 accumulate/epilogue) -> relaxed tolerance
    err = float(jnp.max(jnp.abs(out - ref)))
    assert jnp.allclose(out, ref, atol=3e-2, rtol=3e-2), err

    # Identity-shortcut block (stride 1, Cin == Cout).
    x2 = jax.random.normal(kx, (N, Cout, H, W), jnp.float32)
    params2 = init_params(kp, Cout, Cout, 1)
    out2 = jax.block_until_ready(basic_block_forward(x2, params2, 1))
    ref2 = jax.block_until_ready(reference_forward(x2, params2, 1))
    err2 = float(jnp.max(jnp.abs(out2 - ref2)))
    assert jnp.allclose(out2, ref2, atol=3e-2, rtol=3e-2), err2

    print("KERNEL_OK")
</pallas_src>

<mosaic_0001>
module attributes {stable_mosaic.version = 11 : i64} {
  func.func @kernel(%arg0: i32, %arg1: memref<1x4x9x9x128xbf16, #tpu.memory_space<vmem>>, %arg2: memref<1152x128xbf16, #tpu.memory_space<vmem>>, %arg3: memref<1152x128xbf16, #tpu.memory_space<vmem>>, %arg4: memref<128x128xbf16, #tpu.memory_space<vmem>>, %arg5: memref<3x128xf32, #tpu.memory_space<vmem>>, %arg6: memref<1x64x128xf32, #tpu.memory_space<vmem>>, %arg7: memref<64x1152xbf16, #tpu.memory_space<vmem>>, %arg8: memref<10x10x128xbf16, #tpu.memory_space<vmem>>, %arg9: memref<64x1152xbf16, #tpu.memory_space<vmem>>) attributes {dimension_semantics = [#tpu.dimension_semantics<parallel>], iteration_bounds = array<i64: 2>, scalar_prefetch = 0 : i64, scratch_operands = 3 : i64, tpu.core_type = #tpu.core_type<tc>, window_params = [{transform_indices = @transform_0, window_bounds = array<i64: 1, 4, 9, 9, 128>}, {pipeline_mode = #tpu.pipeline_mode<synchronous>, transform_indices = @transform_1, window_bounds = array<i64: 1152, 128>}, {pipeline_mode = #tpu.pipeline_mode<synchronous>, transform_indices = @transform_2, window_bounds = array<i64: 1152, 128>}, {pipeline_mode = #tpu.pipeline_mode<synchronous>, transform_indices = @transform_3, window_bounds = array<i64: 128, 128>}, {pipeline_mode = #tpu.pipeline_mode<synchronous>, transform_indices = @transform_4, window_bounds = array<i64: 3, 128>}, {transform_indices = @transform_5, window_bounds = array<i64: 1, 64, 128>}]} {
    %c0 = arith.constant 0 : index
    %c0_0 = arith.constant 0 : index
    %c0_1 = arith.constant 0 : index
    %c0_2 = arith.constant 0 : index
    %c0_3 = arith.constant 0 : index
    %0 = vector.load %arg1[%c0, %c0_0, %c0_1, %c0_2, %c0_3] : memref<1x4x9x9x128xbf16, #tpu.memory_space<vmem>>, vector<1x1x8x8x128xbf16>
    %1 = vector.shape_cast %0 : vector<1x1x8x8x128xbf16> to vector<8x8x128xbf16>
    %2 = vector.shape_cast %1 : vector<8x8x128xbf16> to vector<64x128xbf16>
    %c0_4 = arith.constant 0 : index
    %c0_5 = arith.constant 0 : index
    %3 = vector.load %arg7[%c0_4, %c0_5] : memref<64x1152xbf16, #tpu.memory_space<vmem>>, vector<64x128xbf16>
    tpu.vector_store %arg7[%c0_4, %c0_5], %2 {strides = array<i32>} : memref<64x1152xbf16, #tpu.memory_space<vmem>>, vector<64x128xbf16>,
    %c0_6 = arith.constant 0 : index
    %c1 = arith.constant 1 : index
    %c0_7 = arith.constant 0 : index
    %c0_8 = arith.constant 0 : index
    %c0_9 = arith.constant 0 : index
    %4 = vector.load %arg1[%c0_6, %c1, %c0_7, %c0_8, %c0_9] : memref<1x4x9x9x128xbf16, #tpu.memory_space<vmem>>, vector<1x1x8x8x128xbf16>
    %5 = vector.shape_cast %4 : vector<1x1x8x8x128xbf16> to vector<8x8x128xbf16>
    %6 = vector.shape_cast %5 : vector<8x8x128xbf16> to vector<64x128xbf16>
    %c0_10 = arith.constant 0 : index
    %c128 = arith.constant 128 : index
    %7 = vector.load %arg7[%c0_10, %c128] : memref<64x1152xbf16, #tpu.memory_space<vmem>>, vector<64x128xbf16>
    tpu.vector_store %arg7[%c0_10, %c128], %6 {strides = array<i32>} : memref<64x1152xbf16, #tpu.memory_space<vmem>>, vector<64x128xbf16>,
    %c0_11 = arith.constant 0 : index
    %c0_12 = arith.constant 0 : index
    %c0_13 = arith.constant 0 : index
    %c1_14 = arith.constant 1 : index
    %c0_15 = arith.constant 0 : index
    %8 = vector.load %arg1[%c0_11, %c0_12, %c0_13, %c1_14, %c0_15] : memref<1x4x9x9x128xbf16, #tpu.memory_space<vmem>>, vector<1x1x8x8x128xbf16>
    %9 = vector.shape_cast %8 : vector<1x1x8x8x128xbf16> to vector<8x8x128xbf16>
    %10 = vector.shape_cast %9 : vector<8x8x128xbf16> to vector<64x128xbf16>
    %c0_16 = arith.constant 0 : index
    %c256 = arith.constant 256 : index
    %11 = vector.load %arg7[%c0_16, %c256] : memref<64x1152xbf16, #tpu.memory_space<vmem>>, vector<64x128xbf16>
    tpu.vector_store %arg7[%c0_16, %c256], %10 {strides = array<i32>} : memref<64x1152xbf16, #tpu.memory_space<vmem>>, vector<64x128xbf16>,
    %c0_17 = arith.constant 0 : index
    %c2 = arith.constant 2 : index
    %c0_18 = arith.constant 0 : index
    %c0_19 = arith.constant 0 : index
    %c0_20 = arith.constant 0 : index
    %12 = vector.load %arg1[%c0_17, %c2, %c0_18, %c0_19, %c0_20] : memref<1x4x9x9x128xbf16, #tpu.memory_space<vmem>>, vector<1x1x8x8x128xbf16>
    %13 = vector.shape_cast %12 : vector<1x1x8x8x128xbf16> to vector<8x8x128xbf16>
    %14 = vector.shape_cast %13 : vector<8x8x128xbf16> to vector<64x128xbf16>
    %c0_21 = arith.constant 0 : index
    %c384 = arith.constant 384 : index
    %15 = vector.load %arg7[%c0_21, %c384] : memref<64x1152xbf16, #tpu.memory_space<vmem>>, vector<64x128xbf16>
    tpu.vector_store %arg7[%c0_21, %c384], %14 {strides = array<i32>} : memref<64x1152xbf16, #tpu.memory_space<vmem>>, vector<64x128xbf16>,
    %c0_22 = arith.constant 0 : index
    %c3 = arith.constant 3 : index
    %c0_23 = arith.constant 0 : index
    %c0_24 = arith.constant 0 : index
    %c0_25 = arith.constant 0 : index
    %16 = vector.load %arg1[%c0_22, %c3, %c0_23, %c0_24, %c0_25] : memref<1x4x9x9x128xbf16, #tpu.memory_space<vmem>>, vector<1x1x8x8x128xbf16>
    %17 = vector.shape_cast %16 : vector<1x1x8x8x128xbf16> to vector<8x8x128xbf16>
    %18 = vector.shape_cast %17 : vector<8x8x128xbf16> to vector<64x128xbf16>
    %c0_26 = arith.constant 0 : index
    %c512 = arith.constant 512 : index
    %19 = vector.load %arg7[%c0_26, %c512] : memref<64x1152xbf16, #tpu.memory_space<vmem>>, vector<64x128xbf16>
    tpu.vector_store %arg7[%c0_26, %c512], %18 {strides = array<i32>} : memref<64x1152xbf16, #tpu.memory_space<vmem>>, vector<64x128xbf16>,
    %c0_27 = arith.constant 0 : index
    %c2_28 = arith.constant 2 : index
    %c0_29 = arith.constant 0 : index
    %c1_30 = arith.constant 1 : index
    %c0_31 = arith.constant 0 : index
    %20 = vector.load %arg1[%c0_27, %c2_28, %c0_29, %c1_30, %c0_31] : memref<1x4x9x9x128xbf16, #tpu.memory_space<vmem>>, vector<1x1x8x8x128xbf16>
    %21 = vector.shape_cast %20 : vector<1x1x8x8x128xbf16> to vector<8x8x128xbf16>
    %22 = vector.shape_cast %21 : vector<8x8x128xbf16> to vector<64x128xbf16>
    %c0_32 = arith.constant 0 : index
    %c640 = arith.constant 640 : index
    %23 = vector.load %arg7[%c0_32, %c640] : memref<64x1152xbf16, #tpu.memory_space<vmem>>, vector<64x128xbf16>
    tpu.vector_store %arg7[%c0_32, %c640], %22 {strides = array<i32>} : memref<64x1152xbf16, #tpu.memory_space<vmem>>, vector<64x128xbf16>,
    %c0_33 = arith.constant 0 : index
    %c0_34 = arith.constant 0 : index
    %c1_35 = arith.constant 1 : index
    %c0_36 = arith.constant 0 : index
    %c0_37 = arith.constant 0 : index
    %24 = vector.load %arg1[%c0_33, %c0_34, %c1_35, %c0_36, %c0_37] : memref<1x4x9x9x128xbf16, #tpu.memory_space<vmem>>, vector<1x1x8x8x128xbf16>
    %25 = vector.shape_cast %24 : vector<1x1x8x8x128xbf16> to vector<8x8x128xbf16>
    %26 = vector.shape_cast %25 : vector<8x8x128xbf16> to vector<64x128xbf16>
    %c0_38 = arith.constant 0 : index
    %c768 = arith.constant 768 : index
    %27 = vector.load %arg7[%c0_38, %c768] : memref<64x1152xbf16, #tpu.memory_space<vmem>>, vector<64x128xbf16>
    tpu.vector_store %arg7[%c0_38, %c768], %26 {strides = array<i32>} : memref<64x1152xbf16, #tpu.memory_space<vmem>>, vector<64x128xbf16>,
    %c0_39 = arith.constant 0 : index
    %c1_40 = arith.constant 1 : index
    %c1_41 = arith.constant 1 : index
    %c0_42 = arith.constant 0 : index
    %c0_43 = arith.constant 0 : index
    %28 = vector.load %arg1[%c0_39, %c1_40, %c1_41, %c0_42, %c0_43] : memref<1x4x9x9x128xbf16, #tpu.memory_space<vmem>>, vector<1x1x8x8x128xbf16>
    %29 = vector.shape_cast %28 : vector<1x1x8x8x128xbf16> to vector<8x8x128xbf16>
    %30 = vector.shape_cast %29 : vector<8x8x128xbf16> to vector<64x128xbf16>
    %c0_44 = arith.constant 0 : index
    %c896 = arith.constant 896 : index
    %31 = vector.load %arg7[%c0_44, %c896] : memref<64x1152xbf16, #tpu.memory_space<vmem>>, vector<64x128xbf16>
    tpu.vector_store %arg7[%c0_44, %c896], %30 {strides = array<i32>} : memref<64x1152xbf16, #tpu.memory_space<vmem>>, vector<64x128xbf16>,
    %c0_45 = arith.constant 0 : index
    %c0_46 = arith.constant 0 : index
    %c1_47 = arith.constant 1 : index
    %c1_48 = arith.constant 1 : index
    %c0_49 = arith.constant 0 : index
    %32 = vector.load %arg1[%c0_45, %c0_46, %c1_47, %c1_48, %c0_49] : memref<1x4x9x9x128xbf16, #tpu.memory_space<vmem>>, vector<1x1x8x8x128xbf16>
    %33 = vector.shape_cast %32 : vector<1x1x8x8x128xbf16> to vector<8x8x128xbf16>
    %34 = vector.shape_cast %33 : vector<8x8x128xbf16> to vector<64x128xbf16>
    %c0_50 = arith.constant 0 : index
    %c1024 = arith.constant 1024 : index
    %35 = vector.load %arg7[%c0_50, %c1024] : memref<64x1152xbf16, #tpu.memory_space<vmem>>, vector<64x128xbf16>
    tpu.vector_store %arg7[%c0_50, %c1024], %34 {strides = array<i32>} : memref<64x1152xbf16, #tpu.memory_space<vmem>>, vector<64x128xbf16>,
    %c0_51 = arith.constant 0 : index
    %c0_52 = arith.constant 0 : index
    %36 = vector.load %arg7[%c0_51, %c0_52] : memref<64x1152xbf16, #tpu.memory_space<vmem>>, vector<64x1152xbf16>
    %c0_53 = arith.constant 0 : index
    %c0_54 = arith.constant 0 : index
    %37 = vector.load %arg2[%c0_53, %c0_54] : memref<1152x128xbf16, #tpu.memory_space<vmem>>, vector<1152x128xbf16>
    %cst = arith.constant dense<0.000000e+00> : vector<64x128xf32>
    %38 = tpu.matmul %36, %37, %cst {dimension_numbers = #tpu.dot_dimension_numbers<[1], [0], [0], [1], [0, 0, 1, 1], [], []>} : vector<64x1152xbf16>, vector<1152x128xbf16>, vector<64x128xf32> -> vector<64x128xf32>
    %c0_55 = arith.constant 0 : index
    %c0_56 = arith.constant 0 : index
    %39 = vector.load %arg5[%c0_55, %c0_56] : memref<3x128xf32, #tpu.memory_space<vmem>>, vector<1x128xf32>
    %40 = vector.broadcast %39 : vector<1x128xf32> to vector<64x128xf32>
    %41 = arith.addf %38, %40 : vector<64x128xf32>
    %cst_57 = arith.constant 0.000000e+00 : f32
    %42 = vector.broadcast %cst_57 : f32 to vector<64x128xf32>
    %43 = arith.maximumf %41, %42 : vector<64x128xf32>
    %cst_58 = arith.constant 0.000000e+00 : bf16
    %44 = vector.broadcast %cst_58 : bf16 to vector<1x10x128xbf16>
    %cst_59 = arith.constant 0.000000e+00 : bf16
    %45 = vector.broadcast %cst_59 : bf16 to vector<10x1x128xbf16>
    %c0_60 = arith.constant 0 : index
    %c0_61 = arith.constant 0 : index
    %c0_62 = arith.constant 0 : index
    %46 = vector.load %arg8[%c0_60, %c0_61, %c0_62] : memref<10x10x128xbf16, #tpu.memory_space<vmem>>, vector<1x10x128xbf16>
    tpu.vector_store %arg8[%c0_60, %c0_61, %c0_62], %44 {strides = array<i32>} : memref<10x10x128xbf16, #tpu.memory_space<vmem>>, vector<1x10x128xbf16>,
    %c9 = arith.constant 9 : index
    %c0_63 = arith.constant 0 : index
    %c0_64 = arith.constant 0 : index
    %47 = vector.load %arg8[%c9, %c0_63, %c0_64] : memref<10x10x128xbf16, #tpu.memory_space<vmem>>, vector<1x10x128xbf16>
    tpu.vector_store %arg8[%c9, %c0_63, %c0_64], %44 {strides = array<i32>} : memref<10x10x128xbf16, #tpu.memory_space<vmem>>, vector<1x10x128xbf16>,
    %c0_65 = arith.constant 0 : index
    %c0_66 = arith.constant 0 : index
    %c0_67 = arith.constant 0 : index
    %48 = vector.load %arg8[%c0_65, %c0_66, %c0_67] : memref<10x10x128xbf16, #tpu.memory_space<vmem>>, vector<10x1x128xbf16>
    tpu.vector_store %arg8[%c0_65, %c0_66, %c0_67], %45 {strides = array<i32>} : memref<10x10x128xbf16, #tpu.memory_space<vmem>>, vector<10x1x128xbf16>,
    %c0_68 = arith.constant 0 : index
    %c9_69 = arith.constant 9 : index
    %c0_70 = arith.constant 0 : index
    %49 = vector.load %arg8[%c0_68, %c9_69, %c0_70] : memref<10x10x128xbf16, #tpu.memory_space<vmem>>, vector<10x1x128xbf16>
    tpu.vector_store %arg8[%c0_68, %c9_69, %c0_70], %45 {strides = array<i32>} : memref<10x10x128xbf16, #tpu.memory_space<vmem>>, vector<10x1x128xbf16>,
    %50 = vector.shape_cast %43 : vector<64x128xf32> to vector<8x8x128xf32>
    %51 = arith.truncf %50 : vector<8x8x128xf32> to vector<8x8x128xbf16>
    %c1_71 = arith.constant 1 : index
    %c1_72 = arith.constant 1 : index
    %c0_73 = arith.constant 0 : index
    %52 = vector.load %arg8[%c1_71, %c1_72, %c0_73] : memref<10x10x128xbf16, #tpu.memory_space<vmem>>, vector<8x8x128xbf16>
    tpu.vector_store %arg8[%c1_71, %c1_72, %c0_73], %51 {strides = array<i32>} : memref<10x10x128xbf16, #tpu.memory_space<vmem>>, vector<8x8x128xbf16>,
    %c0_74 = arith.constant 0 : index
    %c0_75 = arith.constant 0 : index
    %c0_76 = arith.constant 0 : index
    %53 = vector.load %arg8[%c0_74, %c0_75, %c0_76] : memref<10x10x128xbf16, #tpu.memory_space<vmem>>, vector<8x8x128xbf16>
    %54 = vector.shape_cast %53 : vector<8x8x128xbf16> to vector<64x128xbf16>
    %c0_77 = arith.constant 0 : index
    %c0_78 = arith.constant 0 : index
    %55 = vector.load %arg9[%c0_77, %c0_78] : memref<64x1152xbf16, #tpu.memory_space<vmem>>, vector<64x128xbf16>
    tpu.vector_store %arg9[%c0_77, %c0_78], %54 {strides = array<i32>} : memref<64x1152xbf16, #tpu.memory_space<vmem>>, vector<64x128xbf16>,
    %c0_79 = arith.constant 0 : index
    %c1_80 = arith.constant 1 : index
    %c0_81 = arith.constant 0 : index
    %56 = vector.load %arg8[%c0_79, %c1_80, %c0_81] : memref<10x10x128xbf16, #tpu.memory_space<vmem>>, vector<8x8x128xbf16>
    %57 = vector.shape_cast %56 : vector<8x8x128xbf16> to vector<64x128xbf16>
    %c0_82 = arith.constant 0 : index
    %c128_83 = arith.constant 128 : index
    %58 = vector.load %arg9[%c0_82, %c128_83] : memref<64x1152xbf16, #tpu.memory_space<vmem>>, vector<64x128xbf16>
    tpu.vector_store %arg9[%c0_82, %c128_83], %57 {strides = array<i32>} : memref<64x1152xbf16, #tpu.memory_space<vmem>>, vector<64x128xbf16>,
    %c0_84 = arith.constant 0 : index
    %c2_85 = arith.constant 2 : index
    %c0_86 = arith.constant 0 : index
    %59 = vector.load %arg8[%c0_84, %c2_85, %c0_86] : memref<10x10x128xbf16, #tpu.memory_space<vmem>>, vector<8x8x128xbf16>
    %60 = vector.shape_cast %59 : vector<8x8x128xbf16> to vector<64x128xbf16>
    %c0_87 = arith.constant 0 : index
    %c256_88 = arith.constant 256 : index
    %61 = vector.load %arg9[%c0_87, %c256_88] : memref<64x1152xbf16, #tpu.memory_space<vmem>>, vector<64x128xbf16>
    tpu.vector_store %arg9[%c0_87, %c256_88], %60 {strides = array<i32>} : memref<64x1152xbf16, #tpu.memory_space<vmem>>, vector<64x128xbf16>,
    %c1_89 = arith.constant 1 : index
    %c0_90 = arith.constant 0 : index
    %c0_91 = arith.constant 0 : index
    %62 = vector.load %arg8[%c1_89, %c0_90, %c0_91] : memref<10x10x128xbf16, #tpu.memory_space<vmem>>, vector<8x8x128xbf16>
    %63 = vector.shape_cast %62 : vector<8x8x128xbf16> to vector<64x128xbf16>
    %c0_92 = arith.constant 0 : index
    %c384_93 = arith.constant 384 : index
    %64 = vector.load %arg9[%c0_92, %c384_93] : memref<64x1152xbf16, #tpu.memory_space<vmem>>, vector<64x128xbf16>
    tpu.vector_store %arg9[%c0_92, %c384_93], %63 {strides = array<i32>} : memref<64x1152xbf16, #tpu.memory_space<vmem>>, vector<64x128xbf16>,
    %c1_94 = arith.constant 1 : index
    %c1_95 = arith.constant 1 : index
    %c0_96 = arith.constant 0 : index
    %65 = vector.load %arg8[%c1_94, %c1_95, %c0_96] : memref<10x10x128xbf16, #tpu.memory_space<vmem>>, vector<8x8x128xbf16>
    %66 = vector.shape_cast %65 : vector<8x8x128xbf16> to vector<64x128xbf16>
    %c0_97 = arith.constant 0 : index
    %c512_98 = arith.constant 512 : index
    %67 = vector.load %arg9[%c0_97, %c512_98] : memref<64x1152xbf16, #tpu.memory_space<vmem>>, vector<64x128xbf16>
    tpu.vector_store %arg9[%c0_97, %c512_98], %66 {strides = array<i32>} : memref<64x1152xbf16, #tpu.memory_space<vmem>>, vector<64x128xbf16>,
    %c1_99 = arith.constant 1 : index
    %c2_100 = arith.constant 2 : index
    %c0_101 = arith.constant 0 : index
    %68 = vector.load %arg8[%c1_99, %c2_100, %c0_101] : memref<10x10x128xbf16, #tpu.memory_space<vmem>>, vector<8x8x128xbf16>
    %69 = vector.shape_cast %68 : vector<8x8x128xbf16> to vector<64x128xbf16>
    %c0_102 = arith.constant 0 : index
    %c640_103 = arith.constant 640 : index
    %70 = vector.load %arg9[%c0_102, %c640_103] : memref<64x1152xbf16, #tpu.memory_space<vmem>>, vector<64x128xbf16>
    tpu.vector_store %arg9[%c0_102, %c640_103], %69 {strides = array<i32>} : memref<64x1152xbf16, #tpu.memory_space<vmem>>, vector<64x128xbf16>,
    %c2_104 = arith.constant 2 : index
    %c0_105 = arith.constant 0 : index
    %c0_106 = arith.constant 0 : index
    %71 = vector.load %arg8[%c2_104, %c0_105, %c0_106] : memref<10x10x128xbf16, #tpu.memory_space<vmem>>, vector<8x8x128xbf16>
    %72 = vector.shape_cast %71 : vector<8x8x128xbf16> to vector<64x128xbf16>
    %c0_107 = arith.constant 0 : index
    %c768_108 = arith.constant 768 : index
    %73 = vector.load %arg9[%c0_107, %c768_108] : memref<64x1152xbf16, #tpu.memory_space<vmem>>, vector<64x128xbf16>
    tpu.vector_store %arg9[%c0_107, %c768_108], %72 {strides = array<i32>} : memref<64x1152xbf16, #tpu.memory_space<vmem>>, vector<64x128xbf16>,
    %c2_109 = arith.constant 2 : index
    %c1_110 = arith.constant 1 : index
    %c0_111 = arith.constant 0 : index
    %74 = vector.load %arg8[%c2_109, %c1_110, %c0_111] : memref<10x10x128xbf16, #tpu.memory_space<vmem>>, vector<8x8x128xbf16>
    %75 = vector.shape_cast %74 : vector<8x8x128xbf16> to vector<64x128xbf16>
    %c0_112 = arith.constant 0 : index
    %c896_113 = arith.constant 896 : index
    %76 = vector.load %arg9[%c0_112, %c896_113] : memref<64x1152xbf16, #tpu.memory_space<vmem>>, vector<64x128xbf16>
    tpu.vector_store %arg9[%c0_112, %c896_113], %75 {strides = array<i32>} : memref<64x1152xbf16, #tpu.memory_space<vmem>>, vector<64x128xbf16>,
    %c2_114 = arith.constant 2 : index
    %c2_115 = arith.constant 2 : index
    %c0_116 = arith.constant 0 : index
    %77 = vector.load %arg8[%c2_114, %c2_115, %c0_116] : memref<10x10x128xbf16, #tpu.memory_space<vmem>>, vector<8x8x128xbf16>
    %78 = vector.shape_cast %77 : vector<8x8x128xbf16> to vector<64x128xbf16>
    %c0_117 = arith.constant 0 : index
    %c1024_118 = arith.constant 1024 : index
    %79 = vector.load %arg9[%c0_117, %c1024_118] : memref<64x1152xbf16, #tpu.memory_space<vmem>>, vector<64x128xbf16>
    tpu.vector_store %arg9[%c0_117, %c1024_118], %78 {strides = array<i32>} : memref<64x1152xbf16, #tpu.memory_space<vmem>>, vector<64x128xbf16>,
    %c0_119 = arith.constant 0 : index
    %c0_120 = arith.constant 0 : index
    %80 = vector.load %arg9[%c0_119, %c0_120] : memref<64x1152xbf16, #tpu.memory_space<vmem>>, vector<64x1152xbf16>
    %c0_121 = arith.constant 0 : index
    %c0_122 = arith.constant 0 : index
    %81 = vector.load %arg3[%c0_121, %c0_122] : memref<1152x128xbf16, #tpu.memory_space<vmem>>, vector<1152x128xbf16>
    %cst_123 = arith.constant dense<0.000000e+00> : vector<64x128xf32>
    %82 = tpu.matmul %80, %81, %cst_123 {dimension_numbers = #tpu.dot_dimension_numbers<[1], [0], [0], [1], [0, 0, 1, 1], [], []>} : vector<64x1152xbf16>, vector<1152x128xbf16>, vector<64x128xf32> -> vector<64x128xf32>
    %c1_124 = arith.constant 1 : index
    %c0_125 = arith.constant 0 : index
    %83 = vector.load %arg5[%c1_124, %c0_125] : memref<3x128xf32, #tpu.memory_space<vmem>>, vector<1x128xf32>
    %84 = vector.broadcast %83 : vector<1x128xf32> to vector<64x128xf32>
    %85 = arith.addf %82, %84 : vector<64x128xf32>
    %c0_126 = arith.constant 0 : index
    %c3_127 = arith.constant 3 : index
    %c0_128 = arith.constant 0 : index
    %c0_129 = arith.constant 0 : index
    %c0_130 = arith.constant 0 : index
    %86 = vector.load %arg1[%c0_126, %c3_127, %c0_128, %c0_129, %c0_130] : memref<1x4x9x9x128xbf16, #tpu.memory_space<vmem>>, vector<1x1x8x8x128xbf16>
    %87 = vector.shape_cast %86 : vector<1x1x8x8x128xbf16> to vector<8x8x128xbf16>
    %88 = vector.shape_cast %87 : vector<8x8x128xbf16> to vector<64x128xbf16>
    %c0_131 = arith.constant 0 : index
    %c0_132 = arith.constant 0 : index
    %89 = vector.load %arg4[%c0_131, %c0_132] : memref<128x128xbf16, #tpu.memory_space<vmem>>, vector<128x128xbf16>
    %cst_133 = arith.constant dense<0.000000e+00> : vector<64x128xf32>
    %90 = tpu.matmul %88, %89, %cst_133 {dimension_numbers = #tpu.dot_dimension_numbers<[1], [0], [0], [1], [0, 0, 1, 1], [], []>} : vector<64x128xbf16>, vector<128x128xbf16>, vector<64x128xf32> -> vector<64x128xf32>
    %c2_134 = arith.constant 2 : index
    %c0_135 = arith.constant 0 : index
    %91 = vector.load %arg5[%c2_134, %c0_135] : memref<3x128xf32, #tpu.memory_space<vmem>>, vector<1x128xf32>
    %92 = vector.broadcast %91 : vector<1x128xf32> to vector<64x128xf32>
    %93 = arith.addf %90, %92 : vector<64x128xf32>
    %94 = arith.addf %85, %93 : vector<64x128xf32>
    %cst_136 = arith.constant 0.000000e+00 : f32
    %95 = vector.broadcast %cst_136 : f32 to vector<64x128xf32>
    %96 = arith.maximumf %94, %95 : vector<64x128xf32>
    %c0_137 = arith.constant 0 : index
    %c0_138 = arith.constant 0 : index
    %c0_139 = arith.constant 0 : index
    %97 = vector.load %arg6[%c0_137, %c0_138, %c0_139] : memref<1x64x128xf32, #tpu.memory_space<vmem>>, vector<1x64x128xf32>
    %98 = vector.shape_cast %97 : vector<1x64x128xf32> to vector<64x128xf32>
    %99 = vector.shape_cast %96 : vector<64x128xf32> to vector<1x64x128xf32>
    tpu.vector_store %arg6[%c0_137, %c0_138, %c0_139], %99 {strides = array<i32>} : memref<1x64x128xf32, #tpu.memory_space<vmem>>, vector<1x64x128xf32>,
    return
  }
  func.func @transform_0(%arg0: i32) -> (i32, i32, i32, i32, i32) {
    %c0_i32 = arith.constant 0 : i32
    %c0_i32_0 = arith.constant 0 : i32
    %c0_i32_1 = arith.constant 0 : i32
    %c0_i32_2 = arith.constant 0 : i32
    %c0_i32_3 = arith.constant 0 : i32
    return %arg0, %c0_i32, %c0_i32_0, %c0_i32_1, %c0_i32_2 : i32, i32, i32, i32, i32
  }
  func.func @transform_1(%arg0: i32) -> (i32, i32) {
    %c0_i32 = arith.constant 0 : i32
    %c0_i32_0 = arith.constant 0 : i32
    %c0_i32_1 = arith.constant 0 : i32
    return %c0_i32, %c0_i32_0 : i32, i32
  }
  func.func @transform_2(%arg0: i32) -> (i32, i32) {
    %c0_i32 = arith.constant 0 : i32
    %c0_i32_0 = arith.constant 0 : i32
    %c0_i32_1 = arith.constant 0 : i32
    return %c0_i32, %c0_i32_0 : i32, i32
  }
  func.func @transform_3(%arg0: i32) -> (i32, i32) {
    %c0_i32 = arith.constant 0 : i32
    %c0_i32_0 = arith.constant 0 : i32
    %c0_i32_1 = arith.constant 0 : i32
    return %c0_i32, %c0_i32_0 : i32, i32
  }
  func.func @transform_4(%arg0: i32) -> (i32, i32) {
    %c0_i32 = arith.constant 0 : i32
    %c0_i32_0 = arith.constant 0 : i32
    %c0_i32_1 = arith.constant 0 : i32
    return %c0_i32, %c0_i32_0 : i32, i32
  }
  func.func @transform_5(%arg0: i32) -> (i32, i32, i32) {
    %c0_i32 = arith.constant 0 : i32
    %c0_i32_0 = arith.constant 0 : i32
    %c0_i32_1 = arith.constant 0 : i32
    return %arg0, %c0_i32, %c0_i32_0 : i32, i32, i32
  }
}

</mosaic_0001>

<bundles_post_ra>
// kernel: tpu_custom_call.1
= control target key start
LH: loop header
LB: loop body
LE: loop exit
PB: predicated region body
PF: predicated region fallthrough
CT: control target
= control target key end

     0   :  { %10 = vsyncpa [#allocation6], 0  ;;  %s6176_s0 = inlined_call_operand.vmem [shape: bf16[2,4,9,9,128], index: 0, kind: input, shape index: {}]   ;;  %s6177_s1 = inlined_call_operand.vmem [shape: bf16[1152,128], index: 1, kind: input, shape index: {}]   ;;  %s6178_s2 = inlined_call_operand.hbm [shape: bf16[1152,128], index: 2, kind: input, shape index: {}]   ;;  %s6179_s3 = inlined_call_operand.vmem [shape: bf16[128,128], index: 3, kind: input, shape index: {}]   ;;  %s6180_s4 = inlined_call_operand.vmem [shape: f32[3,128], index: 4, kind: input, shape index: {}]   ;;  %s6181_s5 = inlined_call_operand.hbm [shape: f32[2,64,128], index: 5, kind: output, shape index: {}]  }
   0x1   :  { %11 = vsyncpa [#allocation7], 0 }
   0x2   :  { %13 = vsyncpa [#allocation7 + $0x1], 0  ;;  %s5332_s18 = smov 0   ;;  %s5334_s19 = smov 0  }
   0x3   :  { %s5336_s20 = smov 0   ;;  %s5338_s21 = smov 0  }
   0x4 LB: > { %s5353_s22 = sadd.s32 4294967295, %s5293_s21   ;;  %s4118_s23 = sadd.s32 4294967294, %s5293_s21   ;;  %s5293_s21 = sphi %s5338_s21, %s6207_s21   ;;  %s5289_s20 = sphi %s5336_s20, %s6206_s20   ;;  %s5285_s19 = sphi %s5334_s19, %s6205_s19   ;;  %s5281_s18 = sphi %s5332_s18, %s6204_s18  }
   0x5   : > { %s5357_s24 = sadd.s32 1, %s5293_s21   ;;  %s136_s25 = sadd.s32 1, %s5289_s20 }
   0x6   : > { %s133_s26 = ssub.s32 %s5293_s21, %s5357_s24  ;;  %p146_p0 = scmp.ne.s32.totalorder %s5289_s20, %s5285_s19 }
   0x7   : > { %p134_p1 = scmp.eq.s32.totalorder %s133_s26, 0  ;;  %p147_p2 = scmp.eq.s32.totalorder %s5353_s22, 1 }
   0x8   : > { %p152_p3 = scmp.ne.s32.totalorder %s5285_s19, %s5281_s18  ;;  %p153_p4 = scmp.eq.s32.totalorder %s4118_s23, 1 }
   0x9   : > { %s5368_s27 = scalar_select %p134_p1, %s5289_s20, %s136_s25  }
   0xa   : > { %p5370_p5 = por %p147_p2, %p146_p0  ;;  %p5374_p6 = por %p153_p4, %p152_p3 }
   0xb   : > { %p4119_p7 = scmp.ge.s32.totalorder %s5293_s21, 1  ;;  %p160_p8 = scmp.lt.s32.totalorder %s5293_s21, 3 }
   0xc   : > { %s6185_s28 = scalar_select %p5370_p5, 1, 0 }
   0xd   : > { %s6186_s29 = scalar_select %p5374_p6, 1, 0 }
   0xe   : > { %p6182_p9 = scmp.eq.s32.totalorder %s5353_s22, 0  ;;  %p5381_p10 = pnand %p4119_p7, %p160_p8 }
   0xf   : > { %s5295_s6 = smov [#allocation5]   ;;  %s5199_s11 = scalar_lea.hbm %s6178_s2, 9216 }
  0x10   : > { %s6187_s30 = scalar_select %p5381_p10, 1, 0 }
  0x11   : > { %s175_s7 = sshll.u32 %s5295_s6, 4  ;;  %p4958_p11 = pneg %p5381_p10  ;;  %s176_s7 = int_to_ptr.vmem [resolvable:$true] %s175_s7 }
  0x12   : > { %p5200_p13 = scmp.ne.s32.totalorder %s6178_s2, %s5199_s11  ;;  %p5206_p3 = scmp.lt.u32.totalorder %s5199_s11, %s6178_s2 }
  0x13   : > { %p5389_p12 = pnand %p6182_p9, %p4958_p11 }
  0x15   : > { %p5201_p0 = pneg %p5389_p12 }
  0x17   : > { %p5202_p1 = pnand %p5201_p0, %p5200_p13 }
  0x19   : > { %p5203_p2 = pneg %p5202_p1 }
  0x1b   : > { %p5208_p4 = pnand %p5206_p3, %p5203_p2 }
  0x1d   : > { %5211 = shalt.err (!%p5208_p4)
}
  0x1e   : > { %s5212_s16 = scalar_lea.vmem %s176_s7, 9216  ;;  %p5220_p9 = scmp.lt.s32.totalorder %s176_s7, %s176_s7 }
  0x1f   : > { %p5213_p7 = scmp.ne.s32.totalorder %s176_s7, %s5212_s16  ;;  %p5221_p6 = scmp.lt.s32.totalorder %s5212_s16, %s5212_s16 }
  0x21   : > { %p5215_p8 = pnand %p5213_p7, %p5201_p0  ;;  %p5222_p5 = por %p5221_p6, %p5220_p9 }
  0x23   : > { %p5216_p11 = pneg %p5215_p8 }
  0x25   : > { %p5223_p10 = pnand %p5222_p5, %p5216_p11 }
  0x27   : > { %5226 = shalt.err (!%p5223_p10)
}
  0x28   : > { %s5296_s17 = smov 64   ;;  %s5297_s23 = smov 4  }
  0x29   : > { %4961 = dma.hbm_to_vmem [thread:$0]  (!%p5389_p12), %s6178_s2, 9216, %s176_s7, [#allocation6], %s5296_s17, %s5296_s17, %s5297_s23  }
  0x2a   : > { %p6189_p13 = scmp.ne.s32.totalorder %s6187_s30, 0 }
  0x2b   : > { %p6190_p1 = scmp.eq.s32.totalorder (!%p6189_p13), %s5353_s22, 0 }
  0x2c   : > { %205 = sbr.rel (%p6189_p13) target bundleno = 741 (0x2e5), region = 40 }
  0x33   : > { %5272 = dma.done.wait (%p6190_p1), [#allocation6], 9216   ;;  %p6191_p0 = pmov %p6190_p1 }
  0x34   : > { %v5007_v0 = vld [vmem:[%s6177_s1 + $0x40] sm:$0xff]   ;;  %v5011_v4 = vld [vmem:[%s6177_s1 + $0x48] sm:$0xff]   ;;  %v5015_v8 = vld [vmem:[%s6177_s1 + $0x50] sm:$0xff]   ;;  %p233_p5 = scmp.lt.s32.totalorder %s5353_s22, 1  ;;  %vm328_vm0 = vsmask.f32 3328 }
  0x35   : > { %5274 = vsyncadd (%p6191_p0), [#allocation6], 4294958080  ;;  %v5008_v1 = vld [vmem:[%s6177_s1] sm:$0xff]   ;;  %4483 = vmatprep.subr.bf16.mxu0 %v5007_v0  ;;  %v5012_v5 = vld [vmem:[%s6177_s1 + $0x8] sm:$0xff]   ;;  %vm329_vm1 = vsmask.f32 7440 }
  0x36   : > { %v5009_v2 = vld [vmem:[%s6177_s1 + $0xc0] sm:$0xff]   ;;  %4484 = vmatpush3.bf16.msra.mxu0 %v5008_v1  ;;  %v5013_v6 = vld [vmem:[%s6177_s1 + $0xc8] sm:$0xff]   ;;  %v5016_v9 = vld [vmem:[%s6177_s1 + $0x10] sm:$0xff]   ;;  %s234_s25 = scalar_select %p233_p5, %s5353_s22, 1  ;;  %vm1862_vm3 = vcmask 1040384   ;;  %vm2040_vm8 = vcmask 1043456  }
  0x37   : > { %v5010_v3 = vld [vmem:[%s6177_s1 + $0x80] sm:$0xff]   ;;  %4523 = vmatprep.subr.bf16.mxu1 %v5009_v2  ;;  %4485 = vmatprep.subr.bf16.mxu0 %v5011_v4  ;;  %v5014_v7 = vld [vmem:[%s6177_s1 + $0x88] sm:$0xff]   ;;  %v5017_v10 = vld [vmem:[%s6177_s1 + $0xd0] sm:$0xff]   ;;  %vm1863_vm4 = vsmask.f32 256  ;;  %vm2306_vm10 = vcmask 1042432  }
  0x38   : > { %4524 = vmatpush3.bf16.msra.mxu1 %v5010_v3  ;;  %v5018_v11 = vld [vmem:[%s6177_s1 + $0x90] sm:$0xff]   ;;  %v5019_v12 = vld [vmem:[%s6177_s1 + $0x58] sm:$0xff]   ;;  %v5023_v16 = vld [vmem:[%s6177_s1 + $0x60] sm:$0xff]   ;;  %s4951_s12 = smul.u32 288, %s234_s25  ;;  %vm1895_vm6 = vsmask.f32 7938 }
  0x39   : > { %4525 = vmatprep.subr.bf16.mxu1 %v5013_v6  ;;  %v5020_v13 = vld [vmem:[%s6177_s1 + $0x18] sm:$0xff]   ;;  %v5024_v17 = vld [vmem:[%s6177_s1 + $0x20] sm:$0xff]   ;;  %v5027_v20 = vld [vmem:[%s6177_s1 + $0x68] sm:$0xff]   ;;  %vm2307_vm11 = vcmask 1046532   ;;  %s4482_s7 = sshll.u32 %s5353_s22, 10  ;;  %p6202_p9 = scmp.ne.s32.totalorder %s6185_s28, 0 }
  0x3a   : > { %4486 = vmatpush3.bf16.msra.mxu0 %v5012_v5  ;;  %v5021_v14 = vld [vmem:[%s6177_s1 + $0xd8] sm:$0xff]   ;;  %v5025_v18 = vld [vmem:[%s6177_s1 + $0xe0] sm:$0xff]   ;;  %v5028_v21 = vld [vmem:[%s6177_s1 + $0x28] sm:$0xff]   ;;  %s5513_s10 = scalar_lea.vmem %s6176_s0, %s4951_s12  ;;  %s6129_s13 = scalar_lea.hbm %s6181_s5, %s4482_s7 }
  0x3b   : > { %4487 = vmatprep.subr.bf16.mxu0 %v5015_v8  ;;  %v5022_v15 = vld [vmem:[%s6177_s1 + $0x98] sm:$0xff]   ;;  %v5026_v19 = vld [vmem:[%s6177_s1 + $0xa0] sm:$0xff]   ;;  %v5029_v22 = vld [vmem:[%s6177_s1 + $0xe8] sm:$0xff]   ;;  %s5299_s15 = smov [#allocation8]  }
  0x3c   : > { %4526 = vmatpush3.bf16.msra.mxu1 %v5014_v7  ;;  %v5030_v23 = vld [vmem:[%s6177_s1 + $0xa8] sm:$0xff]   ;;  %v5031_v24 = vld [vmem:[%s6177_s1 + $0x70] sm:$0xff]   ;;  %v5035_v28 = vld [vmem:[%s6177_s1 + $0x78] sm:$0xff]   ;;  %s5231_s16 = sshll.u32 %s5299_s15, 4  ;;  %s5232_s16 = int_to_ptr.vmem [resolvable:$false] %s5231_s16 }
  0x3d   : > { %4527 = vmatprep.subr.bf16.mxu1 %v5017_v10  ;;  %v5032_v25 = vld [vmem:[%s6177_s1 + $0x30] sm:$0xff]   ;;  %v5036_v29 = vld [vmem:[%s6177_s1 + $0x38] sm:$0xff]   ;;  %v5040_v33 = vld [vmem:[%s5513_s10] ss:$8 sps:$4 sm:$0xff]   ;;  %s5233_s17 = scalar_lea.vmem %s5232_s16, 2048 }
  0x3e   : > { %4488 = vmatpush3.bf16.msra.mxu0 %v5016_v9  ;;  %v5033_v26 = vld [vmem:[%s6177_s1 + $0xf0] sm:$0xff]   ;;  %v5037_v30 = vld [vmem:[%s6177_s1 + $0xf8] sm:$0xff]   ;;  %v5041_v34 = vld [vmem:[%s6177_s1 + $0x140] sm:$0xff]  }
  0x3f   : > { %4489 = vmatprep.subr.bf16.mxu0 %v5019_v12  ;;  %v5034_v27 = vld [vmem:[%s6177_s1 + $0xb0] sm:$0xff]   ;;  %v5039_v32 = vld [vmem:[%s6177_s1 + $0xb8] sm:$0xff]   ;;  %v5043_v36 = vld [vmem:[%s6177_s1 + $0x100] sm:$0xff]  }
  0x40   : > { %4528 = vmatpush3.bf16.msra.mxu1 %v5018_v11  ;;  %v5038_v31 = vld [vmem:[%s5513_s10 + $0x48] ss:$8 sps:$4 sm:$0xff]   ;;  %v312_v37 = vld [vmem:[%s5513_s10] sm:$0xf]  ;;  %v313_v38 = vld [vmem:[%s5513_s10 + $0x4] sm:$0x1] }
  0x41   : > { %4529 = vmatprep.subr.bf16.mxu1 %v5021_v14  ;;  %1556 = vmatprep.mubr.bf16.mxu0 %v5038_v31  ;;  %v5042_v35 = vld [vmem:[%s5513_s10 + $0x90] ss:$8 sps:$4 sm:$0xff]   ;;  %v314_v39 = vld [vmem:[%s5513_s10 + $0x8] sm:$0xf]  ;;  %v315_v40 = vld [vmem:[%s5513_s10 + $0xc] sm:$0x1] }
  0x42   : > { %4490 = vmatpush3.bf16.msra.mxu0 %v5020_v13  ;;  %1621 = vmatprep.mubr.bf16.mxu1 %v5042_v35  ;;  %v332_v41 = vshrl.u32 %v312_v37, 16  ;;  %v335_v42 = vshll.u32 %v312_v37, 16  ;;  %v341_v43 = vshll.u32 %v313_v38, 16  ;;  %v346_v44 = vshrl.u32 %v314_v39, 16  ;;  %v5044_v50 = vld [vmem:[%s6177_s1 + $0x1c0] sm:$0xff]   ;;  %vm5536_vm2 = vmor %vm328_vm0, %vm329_vm1  ;;  %v5046_v55 = vld [vmem:[%s6177_s1 + $0x148] sm:$0xff]  }
  0x43   : > { %4491 = vmatprep.subr.bf16.mxu0 %v5023_v16  ;;  %v349_v45 = vshll.u32 %v314_v39, 16  ;;  %v355_v46 = vshll.u32 %v315_v40, 16  ;;  %v5047_v58 = vld [vmem:[%s6177_s1 + $0x108] sm:$0xff]   ;;  %v5045_v61 = vld [vmem:[%s6177_s1 + $0x180] sm:$0xff]   ;;  %v5051_v2 = vld [vmem:[%s5513_s10 + $0x10] ss:$8 sps:$4 sm:$0xff]  }
  0x44   : > { %4530 = vmatpush3.bf16.msra.mxu1 %v5022_v15  ;;  %v334_v47 = vrot.slane %v332_v41, 4  ;;  %v337_v48 = vrot.slane %v335_v42, 5  ;;  %v348_v49 = vrot.slane %v346_v44, 4  ;;  %v343_v54 = vrot.slane %v341_v43, 5  ;;  %v5048_v63 = vld [vmem:[%s6177_s1 + $0x1c8] sm:$0xff]   ;;  %v5052_v4 = vld [vmem:[%s6177_s1 + $0x150] sm:$0xff]   ;;  %vm5765_vm5 = vmand %vm1862_vm3, %vm1863_vm4 }
  0x45   : > { %4531 = vmatprep.subr.bf16.mxu1 %v5025_v18  ;;  %v351_v52 = vrot.slane %v349_v45, 5  ;;  %v357_v57 = vrot.slane %v355_v46, 5  ;;  %v5049_v0 = vld [vmem:[%s5513_s10 + $0x58] ss:$8 sps:$4 sm:$0xff]   ;;  %v5050_v5 = vld [vmem:[%s6177_s1 + $0x188] sm:$0xff]   ;;  %v5054_v7 = vld [vmem:[%s6177_s1 + $0x110] sm:$0xff]  }
  0x46   : > { %4492 = vmatpush3.bf16.msra.mxu0 %v5024_v17  ;;  %v338_v53 = vor.u32 %v337_v48, %v334_v47  ;;  %v5053_v6 = vld [vmem:[%s5513_s10 + $0xa0] ss:$8 sps:$4 sm:$0xff]   ;;  %v316_v8 = vld [vmem:[%s5513_s10 + $0x10] sm:$0xf]  ;;  %v317_v9 = vld [vmem:[%s5513_s10 + $0x14] sm:$0x1] }
  0x47   : > { %4493 = vmatprep.subr.bf16.mxu0 %v5027_v20  ;;  %v352_v56 = vor.u32 %v351_v52, %v348_v49  ;;  %v318_v10 = vld [vmem:[%s5513_s10 + $0x18] sm:$0xf]  ;;  %v319_v11 = vld [vmem:[%s5513_s10 + $0x1c] sm:$0x1]  ;;  %v360_v12 = vshrl.u32 %v316_v8, 16  ;;  %v363_v13 = vshll.u32 %v316_v8, 16  ;;  %vm5773_vm7 = vmand %vm1862_vm3, %vm1895_vm6 }
  0x48   : > { %4532 = vmatpush3.bf16.msra.mxu1 %v5026_v19  ;;  %v339_v59 = vrot.slane %v338_v53, 4  ;;  %v369_v14 = vshll.u32 %v317_v9, 16  ;;  %v374_v15 = vshrl.u32 %v318_v10, 16  ;;  %v377_v16 = vshll.u32 %v318_v10, 16  ;;  %v5059_v31 = vld [vmem:[%s6177_s1 + $0x1d8] sm:$0xff]   ;;  %v5063_v39 = vld [vmem:[%s6177_s1 + $0x160] sm:$0xff]   ;;  %vm5853_vm9 = vmand %vm2040_vm8, %vm1895_vm6 }
  0x49   : > { %4533 = vmatprep.subr.bf16.mxu1 %v5029_v22  ;;  %v353_v60 = vrot.slane %v352_v56, 4  ;;  %v383_v17 = vshll.u32 %v319_v11, 16  ;;  %v362_v18 = vrot.slane %v360_v12, 4  ;;  %v365_v19 = vrot.slane %v363_v13, 5  ;;  %v5060_v35 = vld [vmem:[%s5513_s10 + $0x68] ss:$8 sps:$4 sm:$0xff]   ;;  %vm5890_vm12 = vmor %vm2306_vm10, %vm2307_vm11 }
  0x4a   : > { %4494 = vmatpush3.bf16.msra.mxu0 %v5028_v21  ;;  %v344_v62 = vsel %vm5536_vm2, %v339_v59, %v343_v54  ;;  %v376_v20 = vrot.slane %v374_v15, 4  ;;  %v5055_v21 = vld [vmem:[%s6177_s1 + $0x1d0] sm:$0xff]   ;;  %v379_v22 = vrot.slane %v377_v16, 5  ;;  %v5062_v37 = vld [vmem:[%s5513_s10 + $0x20] ss:$8 sps:$4 sm:$0xff]  }
  0x4b   : > { %4495 = vmatprep.subr.bf16.mxu0 %v5031_v24  ;;  %v358_v1 = vsel %vm5536_vm2, %v353_v60, %v357_v57  ;;  %v366_v24 = vor.u32 %v365_v19, %v362_v18  ;;  %v5064_v40 = vld [vmem:[%s5513_s10 + $0xb0] ss:$8 sps:$4 sm:$0xff]   ;;  %v5065_v41 = vld [vmem:[%s6177_s1 + $0x120] sm:$0xff]   ;;  %v322_v44 = vld [vmem:[%s5513_s10 + $0x28] sm:$0xf] }
  0x4c   : > { %4534 = vmatpush3.bf16.msra.mxu1 %v5030_v23  ;;  %v4142_v3 = vcombine.low %v344_v62, %v358_v1  ;;  %v5056_v23 = vld [vmem:[%s6177_s1 + $0x190] sm:$0xff]   ;;  %v320_v42 = vld [vmem:[%s5513_s10 + $0x20] sm:$0xf]  ;;  %v321_v43 = vld [vmem:[%s5513_s10 + $0x24] sm:$0x1]  ;;  %v402_v49 = vshrl.u32 %v322_v44, 16 }
  0x4d   : > { %4535 = vmatprep.subr.bf16.mxu1 %v5033_v26  ;;  %v5057_v26 = vld [vmem:[%s6177_s1 + $0x158] sm:$0xff]   ;;  %v323_v45 = vld [vmem:[%s5513_s10 + $0x2c] sm:$0x1]  ;;  %v388_v46 = vshrl.u32 %v320_v42, 16  ;;  %v391_v47 = vshll.u32 %v320_v42, 16  ;;  %v397_v48 = vshll.u32 %v321_v43, 16 }
  0x4e   : > { %4496 = vmatpush3.bf16.msra.mxu0 %v5032_v25  ;;  %v371_v25 = vrot.slane %v369_v14, 5  ;;  %v411_v52 = vshll.u32 %v323_v45, 16  ;;  %v5066_v56 = vld [vmem:[%s6177_s1 + $0x1e0] sm:$0xff]   ;;  %v5073_v8 = vld [vmem:[%s5513_s10 + $0x30] ss:$8 sps:$4 sm:$0xff]  }
  0x4f   : > { %4497 = vmatprep.subr.bf16.mxu0 %v5035_v28  ;;  %v385_v28 = vrot.slane %v383_v17, 5  ;;  %v390_v53 = vrot.slane %v388_v46, 4  ;;  %v393_v54 = vrot.slane %v391_v47, 5  ;;  %v5067_v57 = vld [vmem:[%s6177_s1 + $0x1a0] sm:$0xff]   ;;  %v399_v60 = vrot.slane %v397_v48, 5  ;;  %v5074_v10 = vld [vmem:[%s6177_s1 + $0x170] sm:$0xff]  }
  0x50   : > { %4536 = vmatpush3.bf16.msra.mxu1 %v5034_v27  ;;  %v380_v27 = vor.u32 %v379_v22, %v376_v20  ;;  %v5075_v11 = vld [vmem:[%s5513_s10 + $0xc0] ss:$8 sps:$4 sm:$0xff]   ;;  %v5076_v12 = vld [vmem:[%s6177_s1 + $0x130] sm:$0xff]   ;;  %v326_v15 = vld [vmem:[%s5513_s10 + $0x38] sm:$0xf] }
  0x51   : > { %4537 = vmatprep.subr.bf16.mxu1 %v5037_v30  ;;  %v367_v30 = vrot.slane %v366_v24, 4  ;;  %v394_v59 = vor.u32 %v393_v54, %v390_v53  ;;  %v324_v13 = vld [vmem:[%s5513_s10 + $0x30] sm:$0xf]  ;;  %v325_v14 = vld [vmem:[%s5513_s10 + $0x34] sm:$0x1]  ;;  %v430_v20 = vshrl.u32 %v326_v15, 16 }
  0x52   : > { %4498 = vmatpush3.bf16.msra.mxu0 %v5036_v29  ;;  %v5058_v29 = vld [vmem:[%s6177_s1 + $0x118] sm:$0xff]   ;;  %v416_v17 = vshrl.u32 %v324_v13, 16  ;;  %v419_v18 = vshll.u32 %v324_v13, 16  ;;  %v425_v19 = vshll.u32 %v325_v14, 16  ;;  %v5087_v13 = vld [vmem:[%s6177_s1 + $0x208] sm:$0xff]  }
  0x53   : > { %4563 = vmatprep.subr.bf16.mxu0 %v5041_v34  ;;  %v372_v34 = vsel %vm5536_vm2, %v367_v30, %v371_v25  ;;  %v395_v1 = vrot.slane %v394_v59, 4  ;;  %v327_v16 = vld [vmem:[%s5513_s10 + $0x3c] sm:$0x1]  ;;  %v432_v25 = vrot.slane %v430_v20, 4  ;;  %v4172_v42 = vld [vmem:[%s5513_s10 + $0x98] sm:$0xf] }
  0x54   : > { %4538 = vmatpush3.bf16.msra.mxu1 %v5039_v32  ;;  %v381_v32 = vrot.slane %v380_v27, 4  ;;  %v439_v22 = vshll.u32 %v327_v16, 16  ;;  %v421_v24 = vrot.slane %v419_v18, 5  ;;  %v5078_v27 = vld [vmem:[%s6177_s1 + $0x1b0] sm:$0xff]   ;;  %v427_v30 = vrot.slane %v425_v19, 5 }
  0x55   : > { %1557 = vmatmul.mubr.bf16.vlgmr.msra.gmra.mrb[0].mxu0 %v5040_v33  ;;  %4603 = vmatprep.subr.bf16.mxu1 %v5044_v50  ;;  %v5061_v33 = vld [vmem:[%s6177_s1 + $0x198] sm:$0xff]   ;;  %v405_v50 = vshll.u32 %v322_v44, 16  ;;  %v568_v48 = vshrl.u32 %v4172_v42, 16 }
  0x56   : > { %4564 = vmatpush3.bf16.msra.mxu0 %v5043_v36  ;;  %1564 = vmatprep.mubr.bf16.mxu0 %v5049_v0  ;;  %v386_v36 = vsel %vm5536_vm2, %v381_v32, %v385_v28  ;;  %v5069_v0 = vld [vmem:[%s6177_s1 + $0x128] sm:$0xff]   ;;  %v4173_v43 = vld [vmem:[%s5513_s10 + $0x9c] sm:$0x1] }
  0x57   : > { %4565 = vmatprep.subr.bf16.mxu0 %v5046_v55  ;;  %1622 = vmatmul.mubr.bf16.vlgmr.msra.gmra.mrb[0].mxu1 %v4142_v3  ;;  %v4143_v38 = vcombine.low %v372_v34, %v386_v36  ;;  %v404_v55 = vrot.slane %v402_v49, 4  ;;  %v5080_v34 = vld [vmem:[%s6177_s1 + $0x138] sm:$0xff]   ;;  %v571_v49 = vshll.u32 %v4172_v42, 16 }
  0x58   : > { %4604 = vmatpush3.bf16.msra.mxu1 %v5045_v61  ;;  %1629 = vmatprep.mubr.bf16.mxu1 %v5053_v6  ;;  %v5068_v61 = vld [vmem:[%s6177_s1 + $0x168] sm:$0xff]   ;;  %v5071_v6 = vld [vmem:[%s5513_s10 + $0x78] ss:$8 sps:$4 sm:$0xff]  }
  0x59   : > { %4605 = vmatprep.subr.bf16.mxu1 %v5048_v63  ;;  %v413_v63 = vrot.slane %v411_v52, 5  ;;  %v5081_v36 = vld [vmem:[%s6177_s1 + $0x1f8] sm:$0xff]  }
  0x5a   : > { %4566 = vmatpush3.bf16.msra.mxu0 %v5047_v58  ;;  %v407_v58 = vrot.slane %v405_v50, 5  ;;  %v5084_v50 = vld [vmem:[%s6177_s1 + $0x200] sm:$0xff]  }
  0x5b   : > { %4567 = vmatprep.subr.bf16.mxu0 %v5052_v4  ;;  %v5072_v4 = vld [vmem:[%s6177_s1 + $0x1a8] sm:$0xff]  }
  0x5c   : > { %4606 = vmatpush3.bf16.msra.mxu1 %v5050_v5  ;;  %v408_v62 = vor.u32 %v407_v58, %v404_v55  ;;  %v400_v5 = vsel %vm5536_vm2, %v395_v1, %v399_v60  ;;  %v577_v55 = vshll.u32 %v4173_v43, 16  ;;  %v5083_v1 = vld [vmem:[%s5513_s10 + $0xd8] ss:$8 sps:$4 sm:$0xff]  }
  0x5d   : > { %1565 = vmatmul.mubr.bf16.gmra.mrb[4].mxu0 %v5051_v2  ;;  %4607 = vmatprep.subr.bf16.mxu1 %v5055_v21  ;;  %v5070_v2 = vld [vmem:[%s6177_s1 + $0x1e8] sm:$0xff]   ;;  %v433_v21 = vshll.u32 %v326_v15, 16 }
  0x5e   : > { %4568 = vmatpush3.bf16.msra.mxu0 %v5054_v7  ;;  %1572 = vmatprep.mubr.bf16.mxu0 %v5060_v35  ;;  %v409_v3 = vrot.slane %v408_v62, 4  ;;  %v579_v60 = vrot.slane %v577_v55, 5  ;;  %v5095_v55 = vld [vmem:[%s5513_s10 + $0x70] ss:$8 sps:$4 sm:$0xff]  }
  0x5f   : > { %4569 = vmatprep.subr.bf16.mxu0 %v5057_v26  ;;  %1630 = vmatmul.mubr.bf16.gmra.mrb[4].mxu1 %v4143_v38  ;;  %v5077_v26 = vld [vmem:[%s6177_s1 + $0x1f0] sm:$0xff]   ;;  %v435_v28 = vrot.slane %v433_v21, 5 }
  0x60   : > { %4608 = vmatpush3.bf16.msra.mxu1 %v5056_v23  ;;  %1637 = vmatprep.mubr.bf16.mxu1 %v5064_v40  ;;  %v414_v7 = vsel %vm5536_vm2, %v409_v3, %v413_v63  ;;  %v418_v23 = vrot.slane %v416_v17, 4  ;;  %v4170_v38 = vld [vmem:[%s5513_s10 + $0x90] sm:$0xf]  ;;  %v5082_v40 = vld [vmem:[%s6177_s1 + $0x1b8] sm:$0xff]  }
  0x61   : > { %4609 = vmatprep.subr.bf16.mxu1 %v5059_v31  ;;  %v4144_v9 = vcombine.low %v400_v5, %v414_v7  ;;  %v5079_v31 = vld [vmem:[%s6177_s1 + $0x178] sm:$0xff]   ;;  %v436_v32 = vor.u32 %v435_v28, %v432_v25  ;;  %v554_v44 = vshrl.u32 %v4170_v38, 16  ;;  %v557_v45 = vshll.u32 %v4170_v38, 16  ;;  %v5086_v3 = vld [vmem:[%s5513_s10 + $0x8] ss:$8 sps:$4 sm:$0xff]  }
  0x62   : > { %4570 = vmatpush3.bf16.msra.mxu0 %v5058_v29  ;;  %v422_v29 = vor.u32 %v421_v24, %v418_v23  ;;  %v5085_v63 = vld [vmem:[%s5513_s10 + $0x50] ss:$8 sps:$4 sm:$0xff]   ;;  %v4174_v5 = vld [vmem:[%s5513_s10 + $0xa0] sm:$0xf]  ;;  %v4176_v7 = vld [vmem:[%s5513_s10 + $0xa8] sm:$0xf] }
  0x63   : > { %4571 = vmatprep.subr.bf16.mxu0 %v5063_v39  ;;  %v4171_v39 = vld [vmem:[%s5513_s10 + $0x94] sm:$0x1]  ;;  %v556_v53 = vrot.slane %v554_v44, 4  ;;  %v559_v54 = vrot.slane %v557_v45, 5  ;;  %v596_v14 = vshrl.u32 %v4176_v7, 16  ;;  %v599_v15 = vshll.u32 %v4176_v7, 16 }
  0x64   : > { %4610 = vmatpush3.bf16.msra.mxu1 %v5061_v33  ;;  %v441_v33 = vrot.slane %v439_v22, 5  ;;  %v423_v35 = vrot.slane %v422_v29, 4  ;;  %v563_v47 = vshll.u32 %v4171_v39, 16  ;;  %v5089_v23 = vld [vmem:[%s6177_s1 + $0x210] sm:$0xff]   ;;  %v5091_v28 = vld [vmem:[%s5513_s10 + $0x18] ss:$8 sps:$4 sm:$0xff]  }
  0x65   : > { %1573 = vmatmul.mubr.bf16.gmra.mrb[8].mxu0 %v5062_v37  ;;  %4611 = vmatprep.subr.bf16.mxu1 %v5066_v56  ;;  %v437_v37 = vrot.slane %v436_v32, 4  ;;  %v570_v56 = vrot.slane %v568_v48, 4  ;;  %v560_v58 = vor.u32 %v559_v54, %v556_v53  ;;  %v598_v20 = vrot.slane %v596_v14, 4  ;;  %v4178_v32 = vld [vmem:[%s5513_s10 + $0xb0] sm:$0xf] }
  0x66   : > { %4572 = vmatpush3.bf16.msra.mxu0 %v5065_v41  ;;  %1580 = vmatprep.mubr.bf16.mxu0 %v5071_v6  ;;  %v428_v41 = vsel %vm5536_vm2, %v423_v35, %v427_v30  ;;  %v565_v59 = vrot.slane %v563_v47, 5  ;;  %v4175_v6 = vld [vmem:[%s5513_s10 + $0xa4] sm:$0x1]  ;;  %v601_v21 = vrot.slane %v599_v15, 5  ;;  %v5088_v30 = vld [vmem:[%s5513_s10 + $0xe8] ss:$8 sps:$4 sm:$0xff]  }
  0x67   : > { %4573 = vmatprep.subr.bf16.mxu0 %v5068_v61  ;;  %1638 = vmatmul.mubr.bf16.gmra.mrb[8].mxu1 %v4144_v9  ;;  %v442_v46 = vsel %vm5536_vm2, %v437_v37, %v441_v33  ;;  %v561_v62 = vrot.slane %v560_v58, 4  ;;  %v4177_v9 = vld [vmem:[%s5513_s10 + $0xac] sm:$0x1]  ;;  %v4179_v33 = vld [vmem:[%s5513_s10 + $0xb4] sm:$0x1]  ;;  %v610_v38 = vshrl.u32 %v4178_v32, 16 }
  0x68   : > { %4612 = vmatpush3.bf16.msra.mxu1 %v5067_v57  ;;  %1645 = vmatprep.mubr.bf16.mxu1 %v5075_v11  ;;  %v4145_v52 = vcombine.low %v428_v41, %v442_v46  ;;  %v573_v57 = vrot.slane %v571_v49, 5  ;;  %v585_v11 = vshll.u32 %v4174_v5, 16  ;;  %v605_v16 = vshll.u32 %v4177_v9, 16  ;;  %v4181_v37 = vld [vmem:[%s5513_s10 + $0xbc] sm:$0x1] }
  0x69   : > { %4613 = vmatprep.subr.bf16.mxu1 %v5070_v2  ;;  %v566_v2 = vsel %vm5536_vm2, %v561_v62, %v565_v59  ;;  %v602_v25 = vor.u32 %v601_v21, %v598_v20  ;;  %v613_v39 = vshll.u32 %v4178_v32, 16  ;;  %v633_v44 = vshll.u32 %v4181_v37, 16  ;;  %v5093_v59 = vld [vmem:[%s5513_s10 + $0xf8] ss:$8 sps:$4 sm:$0xff]  }
  0x6a   : > { %4574 = vmatpush3.bf16.msra.mxu0 %v5069_v0  ;;  %v574_v61 = vor.u32 %v573_v57, %v570_v56  ;;  %v587_v18 = vrot.slane %v585_v11, 5  ;;  %v607_v22 = vrot.slane %v605_v16, 5  ;;  %v612_v45 = vrot.slane %v610_v38, 4  ;;  %v5096_v57 = vld [vmem:[%s5513_s10 + $0x28] ss:$8 sps:$4 sm:$0xff]  }
  0x6b   : > { %4575 = vmatprep.subr.bf16.mxu0 %v5074_v10  ;;  %v582_v10 = vshrl.u32 %v4174_v5, 16  ;;  %v603_v29 = vrot.slane %v602_v25, 4  ;;  %v615_v46 = vrot.slane %v613_v39, 5  ;;  %v4182_v62 = vld [vmem:[%s5513_s10 + $0xc0] sm:$0xf]  ;;  %v5099_v16 = vld [vmem:[%s6177_s1 + $0x230] sm:$0xff]  }
  0x6c   : > { %4614 = vmatpush3.bf16.msra.mxu1 %v5072_v4  ;;  %v575_v0 = vrot.slane %v574_v61, 4  ;;  %v5101_v21 = vld [vmem:[%s5513_s10 + $0x38] ss:$8 sps:$4 sm:$0xff]  }
  0x6d   : > { %1581 = vmatmul.mubr.bf16.gmra.mrb[12].mxu0 %v5073_v8  ;;  %4615 = vmatprep.subr.bf16.mxu1 %v5077_v26  ;;  %v584_v17 = vrot.slane %v582_v10, 4  ;;  %v5090_v26 = vld [vmem:[%s5513_s10 + $0x60] ss:$8 sps:$4 sm:$0xff]   ;;  %v608_v35 = vsel %vm5536_vm2, %v603_v29, %v607_v22  ;;  %v616_v53 = vor.u32 %v615_v46, %v612_v45  ;;  %v4218_v38 = vld [vmem:[%s5513_s10 + $0x18] sm:$0xf] }
  0x6e   : > { %4576 = vmatpush3.bf16.msra.mxu0 %v5076_v12  ;;  %v580_v4 = vsel %vm5536_vm2, %v575_v0, %v579_v60  ;;  %v591_v12 = vshll.u32 %v4175_v6, 16  ;;  %v5097_v60 = vld [vmem:[%s6177_s1 + $0x228] sm:$0xff]  }
  0x6f   : > { %4577 = vmatprep.subr.bf16.mxu0 %v5079_v31  ;;  %1646 = vmatmul.mubr.bf16.gmra.mrb[12].mxu1 %v4145_v52  ;;  %v4186_v8 = vcombine.low %v566_v2, %v580_v4  ;;  %v588_v24 = vor.u32 %v587_v18, %v584_v17  ;;  %v5094_v52 = vld [vmem:[%s6177_s1 + $0x220] sm:$0xff]   ;;  %v617_v56 = vrot.slane %v616_v53, 4  ;;  %v4184_v0 = vld [vmem:[%s5513_s10 + $0xc8] sm:$0xf]  ;;  %v4185_v2 = vld [vmem:[%s5513_s10 + $0xcc] sm:$0x1] }
  0x70   : > { %4616 = vmatpush3.bf16.msra.mxu1 %v5078_v27  ;;  %1751 = vmatprep.mubr.bf16.mxu1 %v5085_v63  ;;  %v593_v19 = vrot.slane %v591_v12, 5  ;;  %v4183_v63 = vld [vmem:[%s5513_s10 + $0xc4] sm:$0x1]  ;;  %v641_v4 = vshll.u32 %v4182_v62, 16  ;;  %v652_v7 = vshrl.u32 %v4184_v0, 16  ;;  %v661_v9 = vshll.u32 %v4185_v2, 16 }
  0x71   : > { %4617 = vmatprep.subr.bf16.mxu1 %v5081_v36  ;;  %1686 = vmatprep.mubr.bf16.mxu0 %v4186_v8  ;;  %v589_v27 = vrot.slane %v588_v24, 4  ;;  %v5092_v36 = vld [vmem:[%s6177_s1 + $0x218] sm:$0xff]   ;;  %v647_v5 = vshll.u32 %v4183_v63, 16  ;;  %v655_v8 = vshll.u32 %v4184_v0, 16  ;;  %v4223_v63 = vld [vmem:[%s5513_s10 + $0x2c] sm:$0x1] }
  0x72   : > { %4578 = vmatpush3.bf16.msra.mxu0 %v5080_v34  ;;  %v4180_v34 = vld [vmem:[%s5513_s10 + $0xb8] sm:$0xf]  ;;  %v643_v11 = vrot.slane %v641_v4, 5  ;;  %v663_v15 = vrot.slane %v661_v9, 5 }
  0x73   : > { %4839 = vmatprep.subr.bf16.mxu0 %v5084_v50  ;;  %v594_v31 = vsel %vm5536_vm2, %v589_v27, %v593_v19  ;;  %v624_v42 = vshrl.u32 %v4180_v34, 16  ;;  %v627_v43 = vshll.u32 %v4180_v34, 16  ;;  %v649_v12 = vrot.slane %v647_v5, 5  ;;  %v5100_v19 = vld [vmem:[%s5513_s10 + $0x80] ss:$8 sps:$4 sm:$0xff]   ;;  %v5102_v24 = vld [vmem:[%s6177_s1 + $0x238] sm:$0xff]  }
  0x74   : > { %4618 = vmatpush3.bf16.msra.mxu1 %v5082_v40  ;;  %v619_v40 = vshll.u32 %v4179_v33, 16  ;;  %v4187_v41 = vcombine.low %v594_v31, %v608_v35  ;;  %v657_v14 = vrot.slane %v655_v8, 5  ;;  %v4215_v27 = vld [vmem:[%s5513_s10 + $0xc] sm:$0x1]  ;;  %v4224_v5 = vld [vmem:[%s5513_s10 + $0x30] sm:$0xf] }
  0x75   : > { %1687 = vmatmul.mubr.bf16.vlgmr.msra.gmra.mrb[16].mxu0 %v5083_v1  ;;  %v626_v48 = vrot.slane %v624_v42, 4  ;;  %v629_v49 = vrot.slane %v627_v43, 5  ;;  %v785_v33 = vshll.u32 %v4215_v27, 16  ;;  %v4219_v42 = vld [vmem:[%s5513_s10 + $0x1c] sm:$0x1]  ;;  %v804_v43 = vshrl.u32 %v4218_v38, 16 }
  0x76   : > { %4840 = vmatpush3.bf16.msra.mxu0 %v5084_v50  ;;  %1694 = vmatprep.mubr.bf16.mxu0 %v4187_v41  ;;  %v621_v47 = vrot.slane %v619_v40, 5  ;;  %v635_v50 = vrot.slane %v633_v44, 5  ;;  %v813_v53 = vshll.u32 %v4219_v42, 16 }
  0x77   : > { %1752 = vmatmul.mubr.bf16.vlgmr.msra.gmra.mrb[16].mxu1 %v5086_v3  ;;  %4841 = vmatprep.subr.bf16.mxu0 %v5087_v13  ;;  %v630_v54 = vor.u32 %v629_v49, %v626_v48  ;;  %v638_v3 = vshrl.u32 %v4182_v62, 16  ;;  %v787_v41 = vrot.slane %v785_v33, 5  ;;  %v807_v48 = vshll.u32 %v4218_v38, 16 }
  0x78   : > { %1759 = vmatprep.mubr.bf16.mxu1 %v5090_v26  ;;  %v622_v61 = vsel %vm5536_vm2, %v617_v56, %v621_v47  ;;  %v4214_v26 = vld [vmem:[%s5513_s10 + $0x8] sm:$0xf]  ;;  %v4220_v47 = vld [vmem:[%s5513_s10 + $0x20] sm:$0xf] }
  0x79   : > { %v631_v58 = vrot.slane %v630_v54, 4  ;;  %v640_v10 = vrot.slane %v638_v3, 4  ;;  %v776_v31 = vshrl.u32 %v4214_v26, 16  ;;  %v779_v32 = vshll.u32 %v4214_v26, 16 }
  0x7a   : > { %4842 = vmatpush3.bf16.msra.mxu0 %v5087_v13  ;;  %v654_v13 = vrot.slane %v652_v7, 4  ;;  %v818_v54 = vshrl.u32 %v4220_v47, 16  ;;  %v809_v56 = vrot.slane %v807_v48, 5  ;;  %v4225_v7 = vld [vmem:[%s5513_s10 + $0x34] sm:$0x1] }
  0x7b   : > { %4843 = vmatprep.subr.bf16.mxu0 %v5089_v23  ;;  %v636_v1 = vsel %vm5536_vm2, %v631_v58, %v635_v50  ;;  %v644_v17 = vor.u32 %v643_v11, %v640_v10  ;;  %v778_v39 = vrot.slane %v776_v31, 4  ;;  %v781_v40 = vrot.slane %v779_v32, 5  ;;  %v4221_v50 = vld [vmem:[%s5513_s10 + $0x24] sm:$0x1] }
  0x7c   : > { %v4188_v6 = vcombine.low %v622_v61, %v636_v1  ;;  %v658_v18 = vor.u32 %v657_v14, %v654_v13  ;;  %v827_v58 = vshll.u32 %v4221_v50, 16  ;;  %v815_v61 = vrot.slane %v813_v53, 5 }
  0x7d   : > { %1695 = vmatmul.mubr.bf16.gmra.mrb[20].mxu0 %v5088_v30  ;;  %v645_v20 = vrot.slane %v644_v17, 4  ;;  %v4217_v30 = vld [vmem:[%s5513_s10 + $0x14] sm:$0x1]  ;;  %v782_v49 = vor.u32 %v781_v40, %v778_v39  ;;  %v820_v62 = vrot.slane %v818_v54, 4  ;;  %v841_v10 = vshll.u32 %v4223_v63, 16 }
  0x7e   : > { %4844 = vmatpush3.bf16.msra.mxu0 %v5089_v23  ;;  %1702 = vmatprep.mubr.bf16.mxu0 %v4188_v6  ;;  %v659_v22 = vrot.slane %v658_v18, 4  ;;  %v5098_v23 = vld [vmem:[%s5513_s10 + $0x108] ss:$8 sps:$4 sm:$0xff]   ;;  %v799_v37 = vshll.u32 %v4217_v30, 16  ;;  %v829_v4 = vrot.slane %v827_v58, 5  ;;  %v846_v14 = vshrl.u32 %v4224_v5, 16 }
  0x7f   : > { %1760 = vmatmul.mubr.bf16.gmra.mrb[20].mxu1 %v5091_v28  ;;  %4845 = vmatprep.subr.bf16.mxu0 %v5092_v36  ;;  %v650_v25 = vsel %vm5536_vm2, %v645_v20, %v649_v12  ;;  %v4216_v28 = vld [vmem:[%s5513_s10 + $0x10] sm:$0xf]  ;;  %v849_v20 = vshll.u32 %v4224_v5, 16  ;;  %v1874_v63 = vld [vmem:[#allocation3 + $0x18] sm:$0x1] }
  0x80   : > { %1767 = vmatprep.mubr.bf16.mxu1 %v5095_v55  ;;  %v664_v29 = vsel %vm5536_vm2, %v659_v22, %v663_v15  ;;  %v790_v35 = vshrl.u32 %v4216_v28, 16  ;;  %v801_v46 = vrot.slane %v799_v37, 5  ;;  %v4226_v15 = vld [vmem:[%s5513_s10 + $0x38] sm:$0xf]  ;;  %v5103_v58 = vld [vmem:[#allocation5 + $0xc0] sm:$0xff]  }
  0x81   : > { %v4189_v34 = vcombine.low %v650_v25, %v664_v29  ;;  %v855_v25 = vshll.u32 %v4225_v7, 16  ;;  %v851_v27 = vrot.slane %v849_v20, 5  ;;  %v860_v29 = vshrl.u32 %v4226_v15, 16  ;;  %v5110_v7 = vld [vmem:[#allocation5 + $0x90] sm:$0xff]  }
  0x82   : > { %4846 = vmatpush3.bf16.msra.mxu0 %v5092_v36  ;;  %v793_v36 = vshll.u32 %v4216_v28, 16  ;;  %v792_v44 = vrot.slane %v790_v35, 4  ;;  %v4229_v28 = vld [vmem:[%s5513_s10 + $0x44] sm:$0x1]  ;;  %v863_v30 = vshll.u32 %v4226_v15, 16 }
  0x83   : > { %4847 = vmatprep.subr.bf16.mxu0 %v5094_v52  ;;  %v857_v32 = vrot.slane %v855_v25, 5  ;;  %v862_v38 = vrot.slane %v860_v29, 4  ;;  %v1909_v15 = vld [vmem:[#allocation3 + $0x24] sm:$0x1]  ;;  %v5114_v25 = vld [vmem:[#allocation5 + $0x98] sm:$0xff]  }
  0x84   : > { %v795_v45 = vrot.slane %v793_v36, 5  ;;  %v865_v39 = vrot.slane %v863_v30, 5  ;;  %v1886_v29 = vld [vmem:[#allocation3 + $0x38] sm:$0x1] }
  0x85   : > { %1703 = vmatmul.mubr.bf16.gmra.mrb[24].mxu0 %v5093_v59  ;;  %v4222_v59 = vld [vmem:[%s5513_s10 + $0x28] sm:$0xf]  ;;  %v1887_v30 = vsel %vm5765_vm5, 0, %v1886_v29 }
  0x86   : > { %4848 = vmatpush3.bf16.msra.mxu0 %v5094_v52  ;;  %1710 = vmatprep.mubr.bf16.mxu0 %v4189_v34  ;;  %v806_v52 = vrot.slane %v804_v43, 4  ;;  %v796_v55 = vor.u32 %v795_v45, %v792_v44  ;;  %v832_v0 = vshrl.u32 %v4222_v59, 16  ;;  %v835_v9 = vshll.u32 %v4222_v59, 16  ;;  %v5104_v59 = vld [vmem:[#allocation5 + $0x80] sm:$0xff]   ;;  %1888 = vst [vmem:[#allocation3 + $0x38] sm:$0x1] %v1887_v30 }
  0x87   : > { %1768 = vmatmul.mubr.bf16.gmra.mrb[24].mxu1 %v5096_v57  ;;  %4849 = vmatprep.subr.bf16.mxu0 %v5097_v60  ;;  %v821_v57 = vshll.u32 %v4220_v47, 16  ;;  %v883_v44 = vshll.u32 %v4229_v28, 16  ;;  %v866_v45 = vor.u32 %v865_v39, %v862_v38  ;;  %v5116_v28 = vld [vmem:[#allocation5 + $0x10] sm:$0xff]  }
  0x88   : > { %1775 = vmatprep.mubr.bf16.mxu1 %v5100_v19  ;;  %v797_v1 = vrot.slane %v796_v55, 4  ;;  %v810_v2 = vor.u32 %v809_v56, %v806_v52  ;;  %v834_v8 = vrot.slane %v832_v0, 4  ;;  %v837_v18 = vrot.slane %v835_v9, 5  ;;  %v1868_v9 = vld [vmem:[#allocation3 + $0x8] sm:$0x1] }
  0x89   : > { %v823_v3 = vrot.slane %v821_v57, 5  ;;  %v843_v19 = vrot.slane %v841_v10, 5  ;;  %v867_v50 = vrot.slane %v866_v45, 4  ;;  %v885_v53 = vrot.slane %v883_v44, 5  ;;  %v1900_v10 = vld [vmem:[#allocation3 + $0xc] sm:$0x1] }
  0x8a   : > { %4850 = vmatpush3.bf16.msra.mxu0 %v5097_v60  ;;  %v783_v60 = vrot.slane %v782_v49, 4  ;;  %v802_v11 = vsel %vm5536_vm2, %v797_v1, %v801_v46  ;;  %v811_v12 = vrot.slane %v810_v2, 4  ;;  %v838_v26 = vor.u32 %v837_v18, %v834_v8  ;;  %v1906_v2 = vld [vmem:[#allocation3 + $0x1c] sm:$0x1]  ;;  %v1871_v18 = vld [vmem:[#allocation3 + $0x10] sm:$0x1] }
  0x8b   : > { %4851 = vmatprep.subr.bf16.mxu0 %v5099_v16  ;;  %v824_v13 = vor.u32 %v823_v3, %v820_v62  ;;  %v5107_v62 = vld [vmem:[#allocation5 + $0x40] sm:$0xff]   ;;  %v5298_v0 = vmov 0   ;;  %v1907_v8 = vsel %vm5773_vm7, 0, %v1906_v2  ;;  %v1872_v20 = vsel %vm5765_vm5, 0, %v1871_v18  ;;  %v1889_v39 = vld [vmem:[#allocation3 + $0x40] sm:$0x1] }
  0x8c   : > { %v788_v6 = vsel %vm5536_vm2, %v783_v60, %v787_v41  ;;  %v816_v22 = vsel %vm5536_vm2, %v811_v12, %v815_v61  ;;  %v839_v36 = vrot.slane %v838_v26, 4  ;;  %v5105_v60 = vld [vmem:[#allocation5 + $0xc8] sm:$0xff]   ;;  %1858 = vst [vmem:[#allocation3 + $0x4] sm:$0x1] %v5298_v0  ;;  %1857 = vst [vmem:[#allocation3] sm:$0xf] %v5298_v0  ;;  %4655 = vmatprep.subr.bf16.mxu1 %v5107_v62 }
  0x8d   : > { %1711 = vmatmul.mubr.bf16.gmra.mrb[28].mxu0 %v5098_v23  ;;  %v4230_v17 = vcombine.low %v788_v6, %v802_v11  ;;  %v825_v23 = vrot.slane %v824_v13, 4  ;;  %v5106_v61 = vld [vmem:[#allocation5 + $0x88] sm:$0xff]   ;;  %1860 = vst [vmem:[#allocation3 + $0x48] sm:$0xf] %v5298_v0  ;;  %1861 = vst [vmem:[#allocation3 + $0x4c] sm:$0x1] %v5298_v0 }
  0x8e   : > { %4852 = vmatpush3.bf16.msra.mxu0 %v5099_v16  ;;  %v4227_v16 = vld [vmem:[%s5513_s10 + $0x3c] sm:$0x1]  ;;  %v844_v42 = vsel %vm5536_vm2, %v839_v36, %v843_v19  ;;  %v5108_v3 = vld [vmem:[#allocation5] sm:$0xff]   ;;  %v5109_v6 = vld [vmem:[#allocation5 + $0xd0] sm:$0xff]   ;;  %1908 = vst [vmem:[#allocation3 + $0x1c] sm:$0x1] %v1907_v8 }
  0x8f   : > { %1776 = vmatmul.mubr.bf16.gmra.mrb[28].mxu1 %v5101_v21  ;;  %4853 = vmatprep.subr.bf16.mxu0 %v5102_v24  ;;  %v4228_v21 = vld [vmem:[%s5513_s10 + $0x40] sm:$0xf]  ;;  %v830_v31 = vsel %vm5536_vm2, %v825_v23, %v829_v4  ;;  %v869_v33 = vshll.u32 %v4227_v16, 16  ;;  %v1875_v4 = vsel %vm5765_vm5, 0, %v1874_v63  ;;  %v5111_v11 = vld [vmem:[#allocation5 + $0x48] sm:$0xff]   ;;  %v1869_v12 = vsel %vm5765_vm5, 0, %v1868_v9 }
  0x90   : > { %4855 = vmatprep.mubr.bf16.mxu0 %v4230_v17  ;;  %v874_v34 = vshrl.u32 %v4228_v21, 16  ;;  %v4231_v35 = vcombine.low %v816_v22, %v830_v31  ;;  %v877_v41 = vshll.u32 %v4228_v21, 16  ;;  %1876 = vst [vmem:[#allocation3 + $0x18] sm:$0x1] %v1875_v4  ;;  %4656 = vmatpush3.bf16.msra.mxu1 %v5108_v3  ;;  %v1901_v13 = vsel %vm5773_vm7, 0, %v1900_v10  ;;  %v5112_v22 = vld [vmem:[#allocation5 + $0x8] sm:$0xff]  }
  0x91   : > { %v871_v46 = vrot.slane %v869_v33, 5  ;;  %1870 = vst [vmem:[#allocation3 + $0x8] sm:$0x1] %v1869_v12  ;;  %1902 = vst [vmem:[#allocation3 + $0xc] sm:$0x1] %v1901_v13  ;;  %v1910_v17 = vsel %vm5773_vm7, 0, %v1909_v15  ;;  %4657 = vmatprep.subr.bf16.mxu1 %v5111_v11 }
  0x92   : > { %4854 = vmatpush3.bf16.msra.mxu0 %v5102_v24  ;;  %v848_v24 = vrot.slane %v846_v14, 4  ;;  %v876_v40 = vrot.slane %v874_v34, 4  ;;  %v879_v47 = vrot.slane %v877_v41, 5  ;;  %v1877_v14 = vld [vmem:[#allocation3 + $0x20] sm:$0x1]  ;;  %v5113_v23 = vld [vmem:[#allocation5 + $0xd8] sm:$0xff]  }
  0x93   : > { %v872_v54 = vsel %vm5536_vm2, %v867_v50, %v871_v46  ;;  %4695 = vmatprep.subr.bf16.mxu0 %v5103_v58  ;;  %v1878_v16 = vsel %vm5765_vm5, 0, %v1877_v14  ;;  %v1903_v19 = vld [vmem:[#allocation3 + $0x14] sm:$0x1]  ;;  %1911 = vst [vmem:[#allocation3 + $0x24] sm:$0x1] %v1910_v17  ;;  %v1890_v41 = vsel %vm5765_vm5, 0, %v1889_v39 }
  0x94   : > { %v852_v37 = vor.u32 %v851_v27, %v848_v24  ;;  %v880_v52 = vor.u32 %v879_v47, %v876_v40  ;;  %1879 = vst [vmem:[#allocation3 + $0x20] sm:$0x1] %v1878_v16  ;;  %v1904_v21 = vsel %vm5773_vm7, 0, %v1903_v19  ;;  %1873 = vst [vmem:[#allocation3 + $0x10] sm:$0x1] %v1872_v20  ;;  %4658 = vmatpush3.bf16.msra.mxu1 %v5112_v22  ;;  %v5115_v27 = vld [vmem:[#allocation5 + $0x50] sm:$0xff]  }
  0x95   : > { %4856 = vmatmul.mubr.bf16.vlgmr.msra.gmra.mrb[32].mxu0 %v4231_v35  ;;  %1905 = vst [vmem:[#allocation3 + $0x14] sm:$0x1] %v1904_v21  ;;  %v1897_v24 = vld [vmem:[#allocation3 + $0x4] sm:$0x1]  ;;  %4659 = vmatprep.subr.bf16.mxu1 %v5115_v27  ;;  %v5117_v31 = vld [vmem:[#allocation5 + $0xe0] sm:$0xff]   ;;  %v5119_v47 = vld [vmem:[#allocation5 + $0x58] sm:$0xff]  }
  0x96   : > { %v853_v43 = vrot.slane %v852_v37, 4  ;;  %v881_v55 = vrot.slane %v880_v52, 4  ;;  %4696 = vmatpush3.bf16.msra.mxu0 %v5104_v59  ;;  %v1898_v26 = vsel %vm5773_vm7, 0, %v1897_v24  ;;  %v1880_v34 = vld [vmem:[#allocation3 + $0x28] sm:$0x1]  ;;  %v5118_v36 = vld [vmem:[#allocation5 + $0xa0] sm:$0xff]  }
  0x97   : > { %4697 = vmatprep.subr.bf16.mxu0 %v5105_v60  ;;  %1899 = vst [vmem:[#allocation3 + $0x4] sm:$0x1] %v1898_v26  ;;  %v1912_v35 = vld [vmem:[#allocation3 + $0x2c] sm:$0x1]  ;;  %v1881_v37 = vsel %vm5765_vm5, 0, %v1880_v34  ;;  %v5122_v52 = vld [vmem:[#allocation5 + $0xa8] sm:$0xff]  }
  0x98   : > { %v858_v48 = vsel %vm5536_vm2, %v853_v43, %v857_v32  ;;  %v886_v56 = vsel %vm5536_vm2, %v881_v55, %v885_v53  ;;  %4660 = vmatpush3.bf16.msra.mxu1 %v5116_v28  ;;  %v1918_v32 = vld [vmem:[#allocation3 + $0x3c] sm:$0x1]  ;;  %v1913_v38 = vsel %vm5773_vm7, 0, %v1912_v35  ;;  %v1921_v40 = vld [vmem:[#allocation3 + $0x44] sm:$0x1]  ;;  %v5123_v53 = vld [vmem:[#allocation5 + $0x60] sm:$0xff]  }
  0x99   : > { %v4232_v49 = vcombine.low %v844_v42, %v858_v48  ;;  %v4233_v57 = vcombine.low %v872_v54, %v886_v56  ;;  %v1919_v33 = vsel %vm5773_vm7, 0, %v1918_v32  ;;  %1882 = vst [vmem:[#allocation3 + $0x28] sm:$0x1] %v1881_v37  ;;  %1914 = vst [vmem:[#allocation3 + $0x2c] sm:$0x1] %v1913_v38  ;;  %v1922_v42 = vsel %vm5773_vm7, 0, %v1921_v40  ;;  %4661 = vmatprep.subr.bf16.mxu1 %v5119_v47 }
  0x9a   : > { %4698 = vmatpush3.bf16.msra.mxu0 %v5106_v61  ;;  %1920 = vst [vmem:[#allocation3 + $0x3c] sm:$0x1] %v1919_v33  ;;  %v1883_v43 = vld [vmem:[#allocation3 + $0x30] sm:$0x1]  ;;  %v1915_v44 = vld [vmem:[#allocation3 + $0x34] sm:$0x1] }
  0x9b   : > { %4859 = vmatprep.mubr.bf16.mxu0 %v4232_v49  ;;  %4699 = vmatprep.subr.bf16.mxu0 %v5109_v6  ;;  %1891 = vst [vmem:[#allocation3 + $0x40] sm:$0x1] %v1890_v41  ;;  %1923 = vst [vmem:[#allocation3 + $0x44] sm:$0x1] %v1922_v42  ;;  %v1884_v45 = vsel %vm5765_vm5, 0, %v1883_v43  ;;  %v1916_v46 = vsel %vm5773_vm7, 0, %v1915_v44 }
  0x9c   : > { %v5120_v48 = vld [vmem:[#allocation5 + $0x18] sm:$0xff]   ;;  %v5121_v49 = vld [vmem:[#allocation5 + $0xe8] sm:$0xff]   ;;  %1885 = vst [vmem:[#allocation3 + $0x30] sm:$0x1] %v1884_v45  ;;  %1917 = vst [vmem:[#allocation3 + $0x34] sm:$0x1] %v1916_v46 }
  0x9d   : > { %4860 = vmatmul.mubr.bf16.gmra.mrb[36].mxu0 %v4233_v57  ;;  %v5125_v55 = vld [vmem:[#allocation5 + $0xf0] sm:$0xff]   ;;  %4662 = vmatpush3.bf16.msra.mxu1 %v5120_v48  ;;  %v5124_v59 = vld [vmem:[#allocation5 + $0x20] sm:$0xff]   ;;  %v5127_v63 = vld [vmem:[#allocation5 + $0x68] sm:$0xff]  }
  0x9e   : > { %4700 = vmatpush3.bf16.msra.mxu0 %v5110_v7  ;;  %v1865_v56 = vld [vmem:[#allocation3] sm:$0x1]  ;;  %4663 = vmatprep.subr.bf16.mxu1 %v5123_v53  ;;  %v5129_v2 = vld [vmem:[#allocation5 + $0xf8] sm:$0xff]   ;;  %v5128_v3 = vld [vmem:[#allocation5 + $0x28] sm:$0xff]  }
  0x9f   : > { %4701 = vmatprep.subr.bf16.mxu0 %v5113_v23  ;;  %v5126_v60 = vld [vmem:[#allocation5 + $0xb0] sm:$0xff]   ;;  %v1866_v61 = vsel %vm5765_vm5, 0, %v1865_v56  ;;  %v5130_v4 = vld [vmem:[#allocation5 + $0xb8] sm:$0xff]   ;;  %v5134_v7 = vld [vmem:[#allocation5 + $0x1c0] sm:$0xff]  }
  0xa0   : > { %1867 = vst [vmem:[#allocation3] sm:$0x1] %v1866_v61  ;;  %v5131_v6 = vld [vmem:[#allocation5 + $0x70] sm:$0xff]   ;;  %v5137_v9 = vld [vmem:[#allocation5 + $0x78] sm:$0xff]   ;;  %v5141_v19 = vld [vmem:[#allocation5 + $0x140] sm:$0xff]  }
  0xa1   : > { %4664 = vmatpush3.bf16.msra.mxu1 %v5124_v59  ;;  %v5132_v8 = vld [vmem:[#allocation5 + $0x30] sm:$0xff]   ;;  %v5138_v12 = vld [vmem:[#allocation5 + $0x38] sm:$0xff]  }
  0xa2   : > { %4702 = vmatpush3.bf16.msra.mxu0 %v5114_v25  ;;  %4665 = vmatprep.subr.bf16.mxu1 %v5127_v63  ;;  %v5814_v10 = vld [vmem:[%s6180_s4] ss:$0 sm:$0xff]  ;;  %v1924_v63 = vld [vmem:[#allocation3 + $0x4c] sm:$0x1] }
  0xa3   : > { %4703 = vmatprep.subr.bf16.mxu0 %v5117_v31 }
  0xa5   : > { %4666 = vmatpush3.bf16.msra.mxu1 %v5128_v3 }
  0xa6   : > { %4704 = vmatpush3.bf16.msra.mxu0 %v5118_v36  ;;  %4667 = vmatprep.subr.bf16.mxu1 %v5131_v6 }
  0xa7   : > { %4705 = vmatprep.subr.bf16.mxu0 %v5121_v49 }
  0xa9   : > { %4668 = vmatpush3.bf16.msra.mxu1 %v5132_v8 }
  0xaa   : > { %4706 = vmatpush3.bf16.msra.mxu0 %v5122_v52  ;;  %4669 = vmatprep.subr.bf16.mxu1 %v5137_v9 }
  0xab   : > { %4707 = vmatprep.subr.bf16.mxu0 %v5125_v55 }
  0xad   : > { %4670 = vmatpush3.bf16.msra.mxu1 %v5138_v12 }
  0xae   : > { %4708 = vmatpush3.bf16.msra.mxu0 %v5126_v60  ;;  %4735 = vmatprep.subr.bf16.mxu1 %v5141_v19 }
  0xaf   : > { %4709 = vmatprep.subr.bf16.mxu0 %v5129_v2 }
  0xb2   : > { %4710 = vmatpush3.bf16.msra.mxu0 %v5130_v4  ;;  %v1925_v4 = vsel %vm5773_vm7, 0, %v1924_v63 }
  0xb3   : > { %4775 = vmatprep.subr.bf16.mxu0 %v5134_v7  ;;  %1926 = vst [vmem:[#allocation3 + $0x4c] sm:$0x1] %v1925_v4 }
 0x128   : > { %v4499_v50 = vpop.f32.mrb[0].mxu0 }
 0x129   : > { %v4500_v54 = vpop.f32.mrb[1].mxu0 }
 0x12a   : > { %v4501_v57 = vadd.f32 %v4500_v54, %v4499_v50  ;;  %v4502_v58 = vpop.f32.mrb[2].mxu0  ;;  %v4539_v14 = vpop.f32.mrb[0].mxu1 }
 0x12b   : > { %v4503_v62 = vpop.f32.mrb[3].mxu0  ;;  %v4540_v16 = vpop.f32.mrb[1].mxu1 }
 0x12c   : > { %v4504_v0 = vadd.f32 %v4503_v62, %v4502_v58  ;;  %v1559_v13 = vadd.f32 %v4501_v57, %v5814_v10  ;;  %v4541_v21 = vadd.f32 %v4540_v16, %v4539_v14  ;;  %v4542_v22 = vpop.f32.mrb[2].mxu1  ;;  %v1892_v62 = vld [vmem:[#allocation3 + $0x48] sm:$0x1] }
 0x12d   : > { %v4543_v24 = vpop.f32.mrb[3].mxu1  ;;  %v1893_v3 = vsel %vm5765_vm5, 0, %v1892_v62 }
 0x12e   : > { %v1562_v20 = vadd.f32 %v4504_v0, %v5814_v10  ;;  %v5818_v26 = vadd.f32 %v4541_v21, %v1559_v13  ;;  %v4544_v27 = vadd.f32 %v4543_v24, %v4542_v22  ;;  %1894 = vst [vmem:[#allocation3 + $0x48] sm:$0x1] %v1893_v3 }
 0x130   : > { %v4505_v11 = vpop.f32.mrb[4].mxu0  ;;  %v1627_v28 = vadd.f32 %v4544_v27, %v1562_v20 }
 0x131   : > { %v4506_v15 = vpop.f32.mrb[5].mxu0 }
 0x132   : > { %v4507_v17 = vadd.f32 %v4506_v15, %v4505_v11  ;;  %v4508_v18 = vpop.f32.mrb[6].mxu0  ;;  %v4545_v31 = vpop.f32.mrb[4].mxu1 }
 0x133   : > { %v4509_v23 = vpop.f32.mrb[7].mxu0  ;;  %v4546_v33 = vpop.f32.mrb[5].mxu1 }
 0x134   : > { %v4510_v25 = vadd.f32 %v4509_v23, %v4508_v18  ;;  %v1567_v30 = vadd.f32 %v4507_v17, %v5814_v10  ;;  %v4547_v37 = vadd.f32 %v4546_v33, %v4545_v31  ;;  %v4548_v38 = vpop.f32.mrb[6].mxu1 }
 0x135   : > { %v4549_v40 = vpop.f32.mrb[7].mxu1 }
 0x136   : > { %v1570_v36 = vadd.f32 %v4510_v25, %v5814_v10  ;;  %v1632_v42 = vadd.f32 %v4547_v37, %v1567_v30  ;;  %v4550_v43 = vadd.f32 %v4549_v40, %v4548_v38 }
 0x138   : > { %v4511_v29 = vpop.f32.mrb[8].mxu0  ;;  %v5822_v44 = vadd.f32 %v4550_v43, %v1570_v36 }
 0x139   : > { %v4512_v32 = vpop.f32.mrb[9].mxu0 }
 0x13a   : > { %v4513_v34 = vadd.f32 %v4512_v32, %v4511_v29  ;;  %v4514_v35 = vpop.f32.mrb[10].mxu0  ;;  %v4551_v47 = vpop.f32.mrb[8].mxu1 }
 0x13b   : > { %v4515_v39 = vpop.f32.mrb[11].mxu0  ;;  %v4552_v49 = vpop.f32.mrb[9].mxu1 }
 0x13c   : > { %v4516_v41 = vadd.f32 %v4515_v39, %v4514_v35  ;;  %v1575_v46 = vadd.f32 %v4513_v34, %v5814_v10  ;;  %v4553_v54 = vadd.f32 %v4552_v49, %v4551_v47  ;;  %v4554_v55 = vpop.f32.mrb[10].mxu1 }
 0x13d   : > { %v4555_v57 = vpop.f32.mrb[11].mxu1 }
 0x13e   : > { %v1578_v53 = vadd.f32 %v4516_v41, %v5814_v10  ;;  %v1640_v59 = vadd.f32 %v4553_v54, %v1575_v46  ;;  %v4556_v60 = vadd.f32 %v4555_v57, %v4554_v55 }
 0x140   : > { %v4517_v45 = vpop.f32.mrb[12].mxu0  ;;  %v5826_v61 = vadd.f32 %v4556_v60, %v1578_v53 }
 0x141   : > { %v4518_v48 = vpop.f32.mrb[13].mxu0 }
 0x142   : > { %v4519_v50 = vadd.f32 %v4518_v48, %v4517_v45  ;;  %v4520_v52 = vpop.f32.mrb[14].mxu0  ;;  %v4557_v2 = vpop.f32.mrb[12].mxu1 }
 0x143   : > { %v4521_v56 = vpop.f32.mrb[15].mxu0  ;;  %v4558_v6 = vpop.f32.mrb[13].mxu1 }
 0x144   : > { %v4522_v58 = vadd.f32 %v4521_v56, %v4520_v52  ;;  %v1583_v0 = vadd.f32 %v4519_v50, %v5814_v10  ;;  %v4559_v8 = vadd.f32 %v4558_v6, %v4557_v2  ;;  %v4560_v9 = vpop.f32.mrb[14].mxu1 }
 0x145   : > { %v4561_v11 = vpop.f32.mrb[15].mxu1 }
 0x146   : > { %v1586_v7 = vadd.f32 %v4522_v58, %v5814_v10  ;;  %v1648_v12 = vadd.f32 %v4559_v8, %v1583_v0  ;;  %v4562_v13 = vadd.f32 %v4561_v11, %v4560_v9 }
 0x148   : > { %v1651_v14 = vadd.f32 %v4562_v13, %v1586_v7  ;;  %v4579_v16 = vpop.f32.mrb[16].mxu0 }
 0x149   : > { %v4580_v18 = vpop.f32.mrb[17].mxu0 }
 0x14a   : > { %v4619_v15 = vpop.f32.mrb[16].mxu1  ;;  %v4581_v21 = vadd.f32 %v4580_v18, %v4579_v16  ;;  %v4582_v5 = vpop.f32.mrb[18].mxu0 }
 0x14b   : > { %v4620_v17 = vpop.f32.mrb[17].mxu1  ;;  %v4583_v23 = vpop.f32.mrb[19].mxu0 }
 0x14c   : > { %v4621_v19 = vadd.f32 %v4620_v17, %v4619_v15  ;;  %v4622_v20 = vpop.f32.mrb[18].mxu1  ;;  %v1689_v25 = vadd.f32 %v4581_v21, %v5818_v26  ;;  %v4584_v10 = vadd.f32 %v4583_v23, %v4582_v5 }
 0x14d   : > { %v4623_v22 = vpop.f32.mrb[19].mxu1 }
 0x14e   : > { %v4624_v24 = vadd.f32 %v4623_v22, %v4622_v20  ;;  %v1692_v27 = vadd.f32 %v4584_v10, %v1627_v28  ;;  %v1754_v29 = vadd.f32 %v4621_v19, %v1689_v25 }
 0x150   : > { %v1757_v32 = vadd.f32 %v4624_v24, %v1692_v27  ;;  %v4585_v35 = vpop.f32.mrb[20].mxu0 }
 0x151   : > { %v4586_v37 = vpop.f32.mrb[21].mxu0 }
 0x152   : > { %v4625_v30 = vpop.f32.mrb[20].mxu1  ;;  %v4587_v39 = vadd.f32 %v4586_v37, %v4585_v35  ;;  %v4588_v40 = vpop.f32.mrb[22].mxu0 }
 0x153   : > { %v4626_v31 = vpop.f32.mrb[21].mxu1  ;;  %v4589_v41 = vpop.f32.mrb[23].mxu0 }
 0x154   : > { %v4627_v33 = vadd.f32 %v4626_v31, %v4625_v30  ;;  %v4628_v34 = vpop.f32.mrb[22].mxu1  ;;  %v1697_v43 = vadd.f32 %v4587_v39, %v1632_v42  ;;  %v4590_v45 = vadd.f32 %v4589_v41, %v4588_v40  ;;  %v2057_v41 = vld [vmem:[#allocation3 + $0x1c] sm:$0x1] }
 0x155   : > { %v4629_v36 = vpop.f32.mrb[23].mxu1 }
 0x156   : > { %v4630_v38 = vadd.f32 %v4629_v36, %v4628_v34  ;;  %v1700_v26 = vadd.f32 %v4590_v45, %v5822_v44  ;;  %v1762_v28 = vadd.f32 %v4627_v33, %v1697_v43  ;;  %v5847_v36 = vld [vmem:[#allocation3 + $0x4] sm:$0x1] }
 0x158   : > { %v1765_v52 = vadd.f32 %v4630_v38, %v1700_v26  ;;  %v4591_v53 = vpop.f32.mrb[24].mxu0 }
 0x159   : > { %v4592_v55 = vpop.f32.mrb[25].mxu0 }
 0x15a   : > { %v4631_v46 = vpop.f32.mrb[24].mxu1  ;;  %v4593_v56 = vadd.f32 %v4592_v55, %v4591_v53  ;;  %v4594_v57 = vpop.f32.mrb[26].mxu0 }
 0x15b   : > { %v4632_v47 = vpop.f32.mrb[25].mxu1  ;;  %v4595_v58 = vpop.f32.mrb[27].mxu0 }
 0x15c   : > { %v4633_v48 = vadd.f32 %v4632_v47, %v4631_v46  ;;  %v4634_v49 = vpop.f32.mrb[26].mxu1  ;;  %v1705_v60 = vadd.f32 %v4593_v56, %v1640_v59  ;;  %v4596_v62 = vadd.f32 %v4595_v58, %v4594_v57  ;;  %v2152_v46 = vshll.u32 %v5847_v36, 16  ;;  %v5198_v36 = vld [vmem:[%s5513_s10 + $0x108] ss:$8 sps:$4 sm:$0xff]  }
 0x15d   : > { %v4635_v50 = vpop.f32.mrb[27].mxu1 }
 0x15e   : > { %v4636_v54 = vadd.f32 %v4635_v50, %v4634_v49  ;;  %v1708_v0 = vadd.f32 %v4596_v62, %v5826_v61  ;;  %v5837_v3 = vadd.f32 %v4633_v48, %v1705_v60  ;;  %v2126_v61 = vld [vmem:[#allocation3] sm:$0xf]  ;;  %v2042_v48 = vld [vmem:[#allocation3 + $0x8] sm:$0xf]  ;;  %v2045_v49 = vld [vmem:[#allocation3 + $0xc] sm:$0x1] }
 0x15f   : > { %v2143_v21 = vshrl.u32 %v2126_v61, 16  ;;  %v2146_v5 = vshll.u32 %v2126_v61, 16 }
 0x160   : > { %v5839_v7 = vadd.f32 %v4636_v54, %v1708_v0  ;;  %v4597_v8 = vpop.f32.mrb[28].mxu0 }
 0x161   : > { %v4598_v9 = vpop.f32.mrb[29].mxu0  ;;  %v5843_v34 = vrot.slane %v2143_v21, 4 }
 0x162   : > { %v4637_v63 = vpop.f32.mrb[28].mxu1  ;;  %v4599_v11 = vadd.f32 %v4598_v9, %v4597_v8  ;;  %v4600_v13 = vpop.f32.mrb[30].mxu0 }
 0x163   : > { %v4638_v42 = vpop.f32.mrb[29].mxu1  ;;  %v4601_v15 = vpop.f32.mrb[31].mxu0 }
 0x164   : > { %v4639_v2 = vadd.f32 %v4638_v42, %v4637_v63  ;;  %v4640_v44 = vpop.f32.mrb[30].mxu1  ;;  %v1713_v16 = vadd.f32 %v4599_v11, %v1648_v12  ;;  %v4602_v59 = vadd.f32 %v4601_v15, %v4600_v13  ;;  %v5845_v12 = vrot.slane %v2146_v5, 5  ;;  %v2060_v63 = vld [vmem:[#allocation3 + $0x20] sm:$0xf] }
 0x165   : > { %v4641_v4 = vpop.f32.mrb[31].mxu1 }
 0x166   : > { %v4642_v6 = vadd.f32 %v4641_v4, %v4640_v44  ;;  %v1716_v17 = vadd.f32 %v4602_v59, %v1651_v14  ;;  %v1778_v18 = vadd.f32 %v4639_v2, %v1713_v16  ;;  %v2063_v4 = vld [vmem:[#allocation3 + $0x24] sm:$0x1]  ;;  %v2048_v59 = vld [vmem:[#allocation3 + $0x10] sm:$0xf] }
 0x168   : > { %v5841_v19 = vadd.f32 %v4642_v6, %v1716_v17  ;;  %v4857_v20 = vpop.f32.mrb[32].mxu0  ;;  %v2051_v17 = vld [vmem:[#allocation3 + $0x14] sm:$0x1] }
 0x169   : > { %v1827_v22 = vadd.f32 %v4857_v20, %v1762_v28  ;;  %v1818_v23 = vpop.f32.mrb[33].mxu0 }
 0x16a   : > { %v1819_v24 = vadd.f32 %v1818_v23, %v1754_v29  ;;  %v4858_v25 = vpop.f32.mrb[34].mxu0  ;;  %v2054_v29 = vld [vmem:[#allocation3 + $0x18] sm:$0xf] }
 0x16b   : > { %v1851_v10 = vmax.f32 %v1827_v22, 0.0  ;;  %v1830_v27 = vadd.f32 %v4858_v25, %v1765_v52  ;;  %v1821_v30 = vpop.f32.mrb[35].mxu0  ;;  %v2274_v25 = vld [vmem:[#allocation3] sm:$0xe] }
 0x16c   : > { %v1849_v31 = vmax.f32 %v1819_v24, 0.0  ;;  %v1822_v33 = vadd.f32 %v1821_v30, %v1757_v32  ;;  %v2149_v32 = vor.u32 %v5845_v12, %v5843_v34 }
 0x16d   : > { %v4476_v14 = vpack.c.bf16 %v1851_v10, %v1851_v10  ;;  %v1852_v35 = vmax.f32 %v1830_v27, 0.0 }
 0x16e   : > { %v4474_v37 = vpack.c.bf16 %v1849_v31, %v1849_v31  ;;  %v1850_v38 = vmax.f32 %v1822_v33, 0.0  ;;  %v2275_v33 = vld [vmem:[#allocation3 + $0x4] sm:$0x1] }
 0x16f   : > { %v1976_v39 = vshrl.u32 %v4476_v14, 16  ;;  %v4477_v40 = vpack.c.bf16 %v1852_v35, %v1852_v35  ;;  %v1979_v47 = vshll.u32 %v4476_v14, 16 }
 0x170   : > { %v1960_v43 = vshrl.u32 %v4474_v37, 16  ;;  %v4475_v45 = vpack.c.bf16 %v1850_v38, %v1850_v38  ;;  %v1963_v28 = vshll.u32 %v4474_v37, 16  ;;  %v4861_v57 = vpop.f32.mrb[36].mxu0  ;;  %v5876_v37 = vld [vmem:[#allocation3 + $0x48] sm:$0xf] }
 0x171   : > { %v1978_v26 = vrot.slane %v1976_v39, 7  ;;  %v1984_v50 = vshrl.u32 %v4477_v40, 16  ;;  %v1987_v54 = vshll.u32 %v4477_v40, 16  ;;  %v1843_v42 = vadd.f32 %v4861_v57, %v1778_v18  ;;  %v1834_v0 = vpop.f32.mrb[37].mxu0 }
 0x172   : > { %v1962_v53 = vrot.slane %v1960_v43, 7  ;;  %v1968_v55 = vshrl.u32 %v4475_v45, 16  ;;  %v1971_v56 = vshll.u32 %v4475_v45, 16  ;;  %v1835_v8 = vadd.f32 %v1834_v0, %v5837_v3  ;;  %v4862_v9 = vpop.f32.mrb[38].mxu0  ;;  %v2081_v45 = vld [vmem:[#allocation3 + $0x3c] sm:$0x1] }
 0x173   : > { %v1981_v58 = vor.u32 %v1979_v47, %v1978_v26  ;;  %v1982_v60 = vrot.slane %v1978_v26, 4  ;;  %v1986_v62 = vrot.slane %v1984_v50, 7  ;;  %v1837_v61 = vpop.f32.mrb[39].mxu0  ;;  %v1855_v23 = vmax.f32 %v1843_v42, 0.0  ;;  %v2066_v26 = vld [vmem:[#allocation3 + $0x28] sm:$0xf] }
 0x174   : > { %v1965_v2 = vor.u32 %v1963_v28, %v1962_v53  ;;  %v1966_v44 = vrot.slane %v1962_v53, 4  ;;  %v1970_v6 = vrot.slane %v1968_v55, 7  ;;  %v1853_v24 = vmax.f32 %v1835_v8, 0.0  ;;  %v2069_v47 = vld [vmem:[#allocation3 + $0x2c] sm:$0x1] }
 0x175   : > { %v2055_v11 = vsel %vm5853_vm9, %v1981_v58, %v2054_v29  ;;  %v2058_v13 = vsel %vm5765_vm5, %v1982_v60, %v2057_v41  ;;  %v1989_v15 = vor.u32 %v1987_v54, %v1986_v62  ;;  %v1990_v16 = vrot.slane %v1986_v62, 4  ;;  %v2087_v42 = vld [vmem:[#allocation3 + $0x44] sm:$0x1]  ;;  %v2072_v0 = vld [vmem:[#allocation3 + $0x30] sm:$0xf] }
 0x176   : > { %2056 = vst [vmem:[#allocation3 + $0x18] sm:$0xf] %v2055_v11  ;;  %2059 = vst [vmem:[#allocation3 + $0x1c] sm:$0x1] %v2058_v13  ;;  %v2043_v18 = vsel %vm5853_vm9, %v1965_v2, %v2042_v48  ;;  %v2046_v3 = vsel %vm5765_vm5, %v1966_v44, %v2045_v49  ;;  %v1973_v20 = vor.u32 %v1971_v56, %v1970_v6  ;;  %v1974_v21 = vrot.slane %v1970_v6, 4 }
 0x177   : > { %2044 = vst [vmem:[#allocation3 + $0x8] sm:$0xf] %v2043_v18  ;;  %2047 = vst [vmem:[#allocation3 + $0xc] sm:$0x1] %v2046_v3  ;;  %v2061_v5 = vsel %vm5853_vm9, %v1989_v15, %v2060_v63  ;;  %v2064_v22 = vsel %vm5765_vm5, %v1990_v16, %v2063_v4  ;;  %v1846_v30 = vadd.f32 %v4862_v9, %v5841_v19  ;;  %v4323_v40 = vrot.slane %v2274_v25, 9 }
 0x178   : > { %2062 = vst [vmem:[#allocation3 + $0x20] sm:$0xf] %v2061_v5  ;;  %2065 = vst [vmem:[#allocation3 + $0x24] sm:$0x1] %v2064_v22  ;;  %v2049_v10 = vsel %vm5853_vm9, %v1973_v20, %v2048_v59  ;;  %v2052_v27 = vsel %vm5765_vm5, %v1974_v21, %v2051_v17  ;;  %v1838_v31 = vadd.f32 %v1837_v61, %v5839_v7  ;;  %v2311_v43 = vrot.slane %v2275_v33, 5 }
 0x179   : > { %2050 = vst [vmem:[#allocation3 + $0x10] sm:$0xf] %v2049_v10  ;;  %2053 = vst [vmem:[#allocation3 + $0x14] sm:$0x1] %v2052_v27  ;;  %v4480_v14 = vpack.c.bf16 %v1855_v23, %v1855_v23  ;;  %v4478_v35 = vpack.c.bf16 %v1853_v24, %v1853_v24  ;;  %v1856_v38 = vmax.f32 %v1846_v30, 0.0  ;;  %v5880_v19 = vrot.slane %v2152_v46, 5 }
 0x17a   : > { %v1854_v39 = vmax.f32 %v1838_v31, 0.0  ;;  %v2078_v7 = vld [vmem:[#allocation3 + $0x38] sm:$0xf]  ;;  %v5885_v49 = vrot.slane %v2149_v32, 4  ;;  %v2781_v50 = vshrl.u32 %v5876_v37, 16  ;;  %v2312_v9 = vsel %vm5890_vm12, %v4323_v40, %v2311_v43 }
 0x17b   : > { %v2008_v29 = vshrl.u32 %v4480_v14, 16  ;;  %v1992_v41 = vshrl.u32 %v4478_v35, 16  ;;  %v4481_v28 = vpack.c.bf16 %v1856_v38, %v1856_v38  ;;  %v2011_v54 = vshll.u32 %v4480_v14, 16  ;;  %v2084_v63 = vld [vmem:[#allocation3 + $0x40] sm:$0xf] }
 0x17c   : > { %v4479_v48 = vpack.c.bf16 %v1854_v39, %v1854_v39  ;;  %v1995_v56 = vshll.u32 %v4478_v35, 16  ;;  %v2075_v59 = vld [vmem:[#allocation3 + $0x34] sm:$0x1] }
 0x17d   : > { %v2010_v53 = vrot.slane %v2008_v29, 7  ;;  %v1994_v55 = vrot.slane %v1992_v41, 7  ;;  %v2016_v46 = vshrl.u32 %v4481_v28, 16  ;;  %v2019_v57 = vshll.u32 %v4481_v28, 16  ;;  %v2132_v14 = vld [vmem:[#allocation3 + $0x18] sm:$0xf] }
 0x17e   : > { %v2000_v58 = vshrl.u32 %v4479_v48, 16  ;;  %v2003_v60 = vshll.u32 %v4479_v48, 16  ;;  %v2276_v2 = vld [vmem:[#allocation3 + $0x8] sm:$0xe]  ;;  %v2277_v44 = vld [vmem:[#allocation3 + $0xc] sm:$0x1]  ;;  %v2155_v48 = vsel %vm5536_vm2, %v5885_v49, %v5880_v19 }
 0x17f   : > { %v2013_v62 = vor.u32 %v2011_v54, %v2010_v53  ;;  %v2014_v34 = vrot.slane %v2010_v53, 4  ;;  %v1997_v12 = vor.u32 %v1995_v56, %v1994_v55  ;;  %v1998_v32 = vrot.slane %v1994_v55, 4  ;;  %v2128_v17 = vld [vmem:[#allocation3 + $0x8] sm:$0xf]  ;;  %v2129_v21 = vld [vmem:[#allocation3 + $0xc] sm:$0x1] }
 0x180   : > { %v2018_v4 = vrot.slane %v2016_v46, 7  ;;  %v2002_v6 = vrot.slane %v2000_v58, 7  ;;  %v5133_v8 = vld [vmem:[#allocation3 + $0x8] ss:$8 sps:$4 sm:$0xff]   ;;  %v4324_v5 = vrot.slane %v2276_v2, 9  ;;  %v2315_v22 = vrot.slane %v2277_v44, 5 }
 0x181   : > { %v2079_v11 = vsel %vm5853_vm9, %v2013_v62, %v2078_v7  ;;  %v2082_v13 = vsel %vm5765_vm5, %v2014_v34, %v2081_v45  ;;  %v2067_v15 = vsel %vm5853_vm9, %v1997_v12, %v2066_v26  ;;  %v2070_v16 = vsel %vm5765_vm5, %v1998_v32, %v2069_v47  ;;  %3612 = vmatprep.mubr.bf16.mxu0 %v5133_v8  ;;  %v2130_v31 = vld [vmem:[#allocation3 + $0x10] sm:$0xf]  ;;  %v2131_v33 = vld [vmem:[#allocation3 + $0x14] sm:$0x1]  ;;  %v5135_v38 = vld [vmem:[#allocation3 + $0x18] ss:$8 sps:$4 sm:$0xff]  }
 0x182   : > { %2080 = vst [vmem:[#allocation3 + $0x38] sm:$0xf] %v2079_v11  ;;  %2083 = vst [vmem:[#allocation3 + $0x3c] sm:$0x1] %v2082_v13  ;;  %v2021_v61 = vor.u32 %v2019_v57, %v2018_v4  ;;  %v2022_v18 = vrot.slane %v2018_v4, 4  ;;  %v2005_v3 = vor.u32 %v2003_v60, %v2002_v6  ;;  %v2006_v20 = vrot.slane %v2002_v6, 4 }
 0x183   : > { %2068 = vst [vmem:[#allocation3 + $0x28] sm:$0xf] %v2067_v15  ;;  %2071 = vst [vmem:[#allocation3 + $0x2c] sm:$0x1] %v2070_v16  ;;  %v2157_v23 = vshrl.u32 %v2128_v17, 16  ;;  %v2160_v24 = vshll.u32 %v2128_v17, 16  ;;  %v2316_v35 = vsel %vm5890_vm12, %v4324_v5, %v2315_v22 }
 0x184   : > { %v2085_v25 = vsel %vm5853_vm9, %v2021_v61, %v2084_v63  ;;  %v2088_v10 = vsel %vm5765_vm5, %v2022_v18, %v2087_v42  ;;  %v2073_v27 = vsel %vm5853_vm9, %v2005_v3, %v2072_v0  ;;  %v2076_v30 = vsel %vm5765_vm5, %v2006_v20, %v2075_v59  ;;  %v5136_v39 = vld [vmem:[#allocation5 + $0x180] sm:$0xff]   ;;  %v2133_v52 = vld [vmem:[#allocation3 + $0x1c] sm:$0x1]  ;;  %v2280_v46 = vld [vmem:[#allocation3 + $0x18] sm:$0xe] }
 0x185   : > { %2086 = vst [vmem:[#allocation3 + $0x40] sm:$0xf] %v2085_v25  ;;  %2089 = vst [vmem:[#allocation3 + $0x44] sm:$0x1] %v2088_v10  ;;  %v2159_v40 = vrot.slane %v2157_v23, 4  ;;  %v2162_v29 = vrot.slane %v2160_v24, 5  ;;  %v4331_v43 = vcombine.low %v2312_v9, %v2316_v35 }
 0x186   : > { %2074 = vst [vmem:[#allocation3 + $0x30] sm:$0xf] %v2073_v27  ;;  %2077 = vst [vmem:[#allocation3 + $0x34] sm:$0x1] %v2076_v30  ;;  %v2166_v41 = vshll.u32 %v2129_v21, 16  ;;  %v5139_v7 = vld [vmem:[#allocation5 + $0x1c8] sm:$0xff]  }
 0x187   : > { %v2171_v1 = vshrl.u32 %v2130_v31, 16  ;;  %v2174_v45 = vshll.u32 %v2130_v31, 16  ;;  %v2180_v26 = vshll.u32 %v2131_v33, 16  ;;  %v2278_v47 = vld [vmem:[#allocation3 + $0x10] sm:$0xe]  ;;  %v5140_v28 = vld [vmem:[#allocation5 + $0x188] sm:$0xff]   ;;  %v2163_v53 = vor.u32 %v2162_v29, %v2159_v40  ;;  %3613 = vmatmul.mubr.bf16.vlgmr.msra.gmra.mrb[40].mxu0 %v4331_v43 }
 0x188   : > { %v2185_v54 = vshrl.u32 %v2132_v14, 16  ;;  %v2188_v55 = vshll.u32 %v2132_v14, 16  ;;  %v2279_v56 = vld [vmem:[#allocation3 + $0x14] sm:$0x1]  ;;  %v2168_v57 = vrot.slane %v2166_v41, 5  ;;  %v2194_v62 = vshll.u32 %v2133_v52, 16  ;;  %3620 = vmatprep.mubr.bf16.mxu0 %v5135_v38  ;;  %4776 = vmatpush3.bf16.msra.mxu0 %v5136_v39 }
 0x189   : > { %v2173_v58 = vrot.slane %v2171_v1, 4  ;;  %v2176_v60 = vrot.slane %v2174_v45, 5  ;;  %v2281_v34 = vld [vmem:[#allocation3 + $0x1c] sm:$0x1]  ;;  %v2164_v12 = vrot.slane %v2163_v53, 4  ;;  %v4325_v42 = vrot.slane %v2278_v47, 9  ;;  %4777 = vmatprep.subr.bf16.mxu0 %v5139_v7 }
 0x18a   : > { %v2187_v32 = vrot.slane %v2185_v54, 4  ;;  %v2190_v63 = vrot.slane %v2188_v55, 5  ;;  %v2319_v19 = vrot.slane %v2279_v56, 5  ;;  %v4326_v49 = vrot.slane %v2280_v46, 9  ;;  %v5144_v2 = vld [vmem:[#allocation5 + $0x1d0] sm:$0xff]   ;;  %v5143_v6 = vld [vmem:[#allocation5 + $0x100] sm:$0xff]  }
 0x18b   : > { %v2177_v0 = vor.u32 %v2176_v60, %v2173_v58  ;;  %v2784_v44 = vshll.u32 %v5876_v37, 16  ;;  %v2169_v4 = vsel %vm5536_vm2, %v2164_v12, %v2168_v57  ;;  %v2323_v9 = vrot.slane %v2281_v34, 5  ;;  %v5146_v11 = vld [vmem:[#allocation5 + $0x190] sm:$0xff]   ;;  %v5147_v18 = vld [vmem:[#allocation5 + $0x148] sm:$0xff]   ;;  %v5149_v5 = vld [vmem:[#allocation5 + $0x1d8] sm:$0xff]  }
 0x18c   : > { %v2191_v8 = vor.u32 %v2190_v63, %v2187_v32  ;;  %v5923_v13 = vrot.slane %v2781_v50, 4  ;;  %v4319_v15 = vcombine.low %v2155_v48, %v2169_v4  ;;  %v5142_v16 = vld [vmem:[#allocation3] ss:$8 sps:$4 sm:$0xff]   ;;  %v2182_v17 = vrot.slane %v2180_v26, 5  ;;  %4778 = vmatpush3.bf16.msra.mxu0 %v5140_v28  ;;  %v2135_v23 = vld [vmem:[#allocation3 + $0x24] sm:$0x1] }
 0x18d   : > { %v2178_v59 = vrot.slane %v2177_v0, 4  ;;  %v2320_v61 = vsel %vm5890_vm12, %v4325_v42, %v2319_v19  ;;  %v2196_v20 = vrot.slane %v2194_v62, 5  ;;  %v2324_v21 = vsel %vm5890_vm12, %v4326_v49, %v2323_v9  ;;  %v2134_v22 = vld [vmem:[#allocation3 + $0x20] sm:$0xf]  ;;  %4779 = vmatprep.subr.bf16.mxu0 %v5144_v2  ;;  %v5148_v24 = vld [vmem:[#allocation5 + $0x108] sm:$0xff]   ;;  %v5150_v14 = vld [vmem:[#allocation5 + $0x198] sm:$0xff]  }
 0x18e   : > { %v2192_v3 = vrot.slane %v2191_v8, 4  ;;  %3547 = vmatprep.mubr.bf16.mxu1 %v4319_v15  ;;  %v4332_v50 = vcombine.low %v2320_v61, %v2324_v21  ;;  %v2136_v25 = vld [vmem:[#allocation3 + $0x28] sm:$0xf]  ;;  %v2137_v10 = vld [vmem:[#allocation3 + $0x2c] sm:$0x1]  ;;  %v2199_v27 = vshrl.u32 %v2134_v22, 16 }
 0x18f   : > { %v2183_v37 = vsel %vm5536_vm2, %v2178_v59, %v2182_v17  ;;  %v2202_v30 = vshll.u32 %v2134_v22, 16  ;;  %3548 = vmatmul.mubr.bf16.vlgmr.msra.gmra.mrb[32].mxu1 %v5142_v16  ;;  %v5145_v33 = vld [vmem:[#allocation3 + $0x28] ss:$8 sps:$4 sm:$0xff]   ;;  %v2213_v35 = vshrl.u32 %v2136_v25, 16  ;;  %v2216_v38 = vshll.u32 %v2136_v25, 16  ;;  %v5151_v29 = vld [vmem:[#allocation5 + $0x150] sm:$0xff]  }
 0x190   : > { %v2197_v31 = vsel %vm5536_vm2, %v2192_v3, %v2196_v20  ;;  %v2282_v39 = vld [vmem:[#allocation3 + $0x20] sm:$0xe]  ;;  %4736 = vmatpush3.bf16.msra.mxu1 %v5143_v6  ;;  %3621 = vmatmul.mubr.bf16.gmra.mrb[44].mxu0 %v4332_v50  ;;  %v2201_v41 = vrot.slane %v2199_v27, 4  ;;  %v2208_v43 = vshll.u32 %v2135_v23, 16  ;;  %v2283_v7 = vld [vmem:[#allocation3 + $0x24] sm:$0x1] }
 0x191   : > { %v4320_v40 = vcombine.low %v2183_v37, %v2197_v31  ;;  %v2204_v52 = vrot.slane %v2202_v30, 5  ;;  %3628 = vmatprep.mubr.bf16.mxu0 %v5145_v33  ;;  %4780 = vmatpush3.bf16.msra.mxu0 %v5146_v11  ;;  %v2215_v1 = vrot.slane %v2213_v35, 4  ;;  %v2218_v45 = vrot.slane %v2216_v38, 5  ;;  %v2284_v47 = vld [vmem:[#allocation3 + $0x28] sm:$0xe]  ;;  %v5153_v48 = vld [vmem:[#allocation5 + $0x110] sm:$0xff]  }
 0x192   : > { %v2222_v26 = vshll.u32 %v2137_v10, 16  ;;  %v4327_v28 = vrot.slane %v2282_v39, 9  ;;  %4737 = vmatprep.subr.bf16.mxu1 %v5147_v18  ;;  %v2285_v54 = vld [vmem:[#allocation3 + $0x2c] sm:$0x1]  ;;  %v2327_v55 = vrot.slane %v2283_v7, 5  ;;  %v4328_v56 = vrot.slane %v2284_v47, 9  ;;  %4781 = vmatprep.subr.bf16.mxu0 %v5149_v5 }
 0x193   : > { %3555 = vmatprep.mubr.bf16.mxu1 %v4320_v40  ;;  %v2205_v53 = vor.u32 %v2204_v52, %v2201_v41  ;;  %v5154_v46 = vld [vmem:[#allocation5 + $0x1e0] sm:$0xff]   ;;  %v2786_v57 = vrot.slane %v2784_v44, 5  ;;  %v2219_v58 = vor.u32 %v2218_v45, %v2215_v1  ;;  %v2331_v60 = vrot.slane %v2285_v54, 5  ;;  %v5933_v34 = vld [vmem:[#allocation3 + $0x4c] sm:$0x1]  ;;  %v5159_v4 = vld [vmem:[#allocation5 + $0x1e8] sm:$0xff]  }
 0x194   : > { %v5156_v62 = vld [vmem:[#allocation5 + $0x1a0] sm:$0xff]   ;;  %4738 = vmatpush3.bf16.msra.mxu1 %v5148_v24  ;;  %v2210_v63 = vrot.slane %v2208_v43, 5  ;;  %v5157_v42 = vld [vmem:[#allocation5 + $0x158] sm:$0xff]   ;;  %v2224_v19 = vrot.slane %v2222_v26, 5  ;;  %v2328_v49 = vsel %vm5890_vm12, %v4327_v28, %v2327_v55  ;;  %v5155_v44 = vld [vmem:[#allocation3 + $0x38] ss:$8 sps:$4 sm:$0xff]  }
 0x195   : > { %v5152_v12 = vld [vmem:[#allocation3 + $0x10] ss:$8 sps:$4 sm:$0xff]   ;;  %v2206_v32 = vrot.slane %v2205_v53, 4  ;;  %4782 = vmatpush3.bf16.msra.mxu0 %v5150_v14  ;;  %4739 = vmatprep.subr.bf16.mxu1 %v5151_v29  ;;  %v2220_v0 = vrot.slane %v2219_v58, 4  ;;  %v2332_v2 = vsel %vm5890_vm12, %v4328_v56, %v2331_v60  ;;  %v5158_v9 = vld [vmem:[#allocation5 + $0x118] sm:$0xff]   ;;  %v2787_v59 = vor.u32 %v2786_v57, %v5923_v13  ;;  %v5164_v24 = vld [vmem:[#allocation5 + $0x1f0] sm:$0xff]  }
 0x196   : > { %v4333_v8 = vcombine.low %v2328_v49, %v2332_v2  ;;  %4783 = vmatprep.subr.bf16.mxu0 %v5154_v46  ;;  %v2138_v11 = vld [vmem:[#allocation3 + $0x30] sm:$0xf]  ;;  %v2139_v15 = vld [vmem:[#allocation3 + $0x34] sm:$0x1]  ;;  %v2140_v16 = vld [vmem:[#allocation3 + $0x38] sm:$0xf] }
 0x197   : > { %v2211_v6 = vsel %vm5536_vm2, %v2206_v32, %v2210_v63  ;;  %3556 = vmatmul.mubr.bf16.gmra.mrb[36].mxu1 %v5152_v12  ;;  %v2225_v17 = vsel %vm5536_vm2, %v2220_v0, %v2224_v19  ;;  %v5160_v61 = vld [vmem:[#allocation5 + $0x1a8] sm:$0xff]   ;;  %v5161_v18 = vld [vmem:[#allocation5 + $0x160] sm:$0xff]   ;;  %v2227_v20 = vshrl.u32 %v2138_v11, 16  ;;  %v2230_v21 = vshll.u32 %v2138_v11, 16  ;;  %v5162_v29 = vld [vmem:[#allocation3 + $0x20] ss:$8 sps:$4 sm:$0xff]  }
 0x198   : > { %v2141_v3 = vld [vmem:[#allocation3 + $0x3c] sm:$0x1]  ;;  %v2236_v5 = vshll.u32 %v2139_v15, 16  ;;  %4740 = vmatpush3.bf16.msra.mxu1 %v5153_v48  ;;  %v4321_v22 = vcombine.low %v2211_v6, %v2225_v17  ;;  %3629 = vmatmul.mubr.bf16.gmra.mrb[48].mxu0 %v4333_v8  ;;  %v2241_v23 = vshrl.u32 %v2140_v16, 16  ;;  %v2244_v37 = vshll.u32 %v2140_v16, 16  ;;  %v5163_v33 = vld [vmem:[#allocation5 + $0x120] sm:$0xff]  }
 0x199   : > { %v2286_v50 = vld [vmem:[#allocation3 + $0x30] sm:$0xe]  ;;  %v2790_v25 = vshll.u32 %v5933_v34, 16  ;;  %3636 = vmatprep.mubr.bf16.mxu0 %v5155_v44  ;;  %4784 = vmatpush3.bf16.msra.mxu0 %v5156_v62  ;;  %v2229_v13 = vrot.slane %v2227_v20, 4  ;;  %v2232_v10 = vrot.slane %v2230_v21, 5  ;;  %v2250_v27 = vshll.u32 %v2141_v3, 16 }
 0x19a   : > { %v2287_v30 = vld [vmem:[#allocation3 + $0x34] sm:$0x1]  ;;  %v4329_v31 = vrot.slane %v2286_v50, 9  ;;  %3563 = vmatprep.mubr.bf16.mxu1 %v4321_v22  ;;  %4741 = vmatprep.subr.bf16.mxu1 %v5157_v42  ;;  %v2243_v14 = vrot.slane %v2241_v23, 4  ;;  %v2246_v35 = vrot.slane %v2244_v37, 5  ;;  %v5945_v40 = vrot.slane %v2787_v59, 4 }
 0x19b   : > { %v2288_v38 = vld [vmem:[#allocation3 + $0x38] sm:$0xe]  ;;  %v2335_v39 = vrot.slane %v2287_v30, 5  ;;  %4785 = vmatprep.subr.bf16.mxu0 %v5159_v4  ;;  %v2233_v41 = vor.u32 %v2232_v10, %v2229_v13  ;;  %v2238_v52 = vrot.slane %v2236_v5, 5  ;;  %v2289_v43 = vld [vmem:[#allocation3 + $0x3c] sm:$0x1] }
 0x19c   : > { %v4330_v7 = vrot.slane %v2288_v38, 9  ;;  %v2666_v1 = vld [vmem:[#allocation3 + $0x10] sm:$0xf]  ;;  %v5166_v45 = vld [vmem:[#allocation5 + $0x168] sm:$0xff]   ;;  %4742 = vmatpush3.bf16.msra.mxu1 %v5158_v9  ;;  %v2247_v26 = vor.u32 %v2246_v35, %v2243_v14  ;;  %v2339_v28 = vrot.slane %v2289_v43, 5  ;;  %v2252_v56 = vrot.slane %v2250_v27, 5 }
 0x19d   : > { %v2336_v47 = vsel %vm5890_vm12, %v4329_v31, %v2335_v39  ;;  %v2667_v48 = vld [vmem:[#allocation3 + $0x14] sm:$0x1]  ;;  %v2668_v53 = vld [vmem:[#allocation3 + $0x18] sm:$0xf]  ;;  %v2683_v54 = vshrl.u32 %v2666_v1, 16  ;;  %4786 = vmatpush3.bf16.msra.mxu0 %v5160_v61  ;;  %4743 = vmatprep.subr.bf16.mxu1 %v5161_v18  ;;  %v2234_v55 = vrot.slane %v2233_v41, 4 }
 0x19e   : > { %v2669_v46 = vld [vmem:[#allocation3 + $0x1c] sm:$0x1]  ;;  %v2686_v57 = vshll.u32 %v2666_v1, 16  ;;  %v2697_v58 = vshrl.u32 %v2668_v53, 16  ;;  %v2248_v60 = vrot.slane %v2247_v26, 4  ;;  %v2340_v62 = vsel %vm5890_vm12, %v4330_v7, %v2339_v28  ;;  %4787 = vmatprep.subr.bf16.mxu0 %v5164_v24  ;;  %v5165_v12 = vld [vmem:[#allocation5 + $0x1b0] sm:$0xff]  }
 0x19f   : > { %v2685_v32 = vrot.slane %v2683_v54, 4  ;;  %v2700_v63 = vshll.u32 %v2668_v53, 16  ;;  %3564 = vmatmul.mubr.bf16.gmra.mrb[40].mxu1 %v5162_v29  ;;  %v2239_v42 = vsel %vm5536_vm2, %v2234_v55, %v2238_v52  ;;  %v4334_v0 = vcombine.low %v2336_v47, %v2340_v62  ;;  %v5167_v2 = vld [vmem:[#allocation5 + $0x128] sm:$0xff]   ;;  %v5168_v44 = vld [vmem:[#allocation5 + $0x1f8] sm:$0xff]   ;;  %v5170_v15 = vld [vmem:[#allocation5 + $0x170] sm:$0xff]  }
 0x1a0   : > { %v2688_v19 = vrot.slane %v2686_v57, 5  ;;  %v2692_v49 = vshll.u32 %v2667_v48, 16  ;;  %4744 = vmatpush3.bf16.msra.mxu1 %v5163_v33  ;;  %v2253_v4 = vsel %vm5536_vm2, %v2248_v60, %v2252_v56  ;;  %v2699_v6 = vrot.slane %v2697_v58, 4  ;;  %v5169_v11 = vld [vmem:[#allocation5 + $0x1b8] sm:$0xff]   ;;  %v2547_v18 = vld [vmem:[#allocation3 + $0x10] sm:$0xe] }
 0x1a1   : > { %v2702_v8 = vrot.slane %v2700_v63, 5  ;;  %v2706_v9 = vshll.u32 %v2669_v46, 16  ;;  %v2545_v16 = vld [vmem:[#allocation3 + $0x8] sm:$0xe]  ;;  %v4322_v59 = vcombine.low %v2239_v42, %v2253_v4  ;;  %3637 = vmatmul.mubr.bf16.gmra.mrb[52].mxu0 %v4334_v0  ;;  %4745 = vmatprep.subr.bf16.mxu1 %v5166_v45  ;;  %v2546_v61 = vld [vmem:[#allocation3 + $0xc] sm:$0x1] }
 0x1a2   : > { %v2689_v17 = vor.u32 %v2688_v19, %v2685_v32  ;;  %v2548_v3 = vld [vmem:[#allocation3 + $0x14] sm:$0x1]  ;;  %4788 = vmatpush3.bf16.msra.mxu0 %v5165_v12  ;;  %v5172_v21 = vld [vmem:[#allocation5 + $0x130] sm:$0xff]   ;;  %v4343_v5 = vrot.slane %v2545_v16, 9  ;;  %v2579_v22 = vrot.slane %v2546_v61, 5  ;;  %v5962_v37 = vrot.slane %v2790_v25, 5 }
 0x1a3   : > { %v2703_v20 = vor.u32 %v2702_v8, %v2699_v6  ;;  %v5958_v23 = vld [vmem:[%s6179_s3] sm:$0xff]   ;;  %3571 = vmatprep.mubr.bf16.mxu1 %v4322_v59  ;;  %v2694_v24 = vrot.slane %v2692_v49, 5  ;;  %4789 = vmatprep.subr.bf16.mxu0 %v5168_v44  ;;  %v4344_v13 = vrot.slane %v2547_v18, 9  ;;  %v2583_v10 = vrot.slane %v2548_v3, 5  ;;  %v5174_v27 = vld [vmem:[#allocation5 + $0x178] sm:$0xff]   ;;  %v5972_v55 = vld [vmem:[#allocation5 + $0x200] sm:$0xff]  }
 0x1a4   : > { %v2690_v50 = vrot.slane %v2689_v17, 4  ;;  %v2708_v31 = vrot.slane %v2706_v9, 5  ;;  %4746 = vmatpush3.bf16.msra.mxu1 %v5167_v2  ;;  %v5171_v33 = vld [vmem:[#allocation3 + $0x30] ss:$8 sps:$4 sm:$0xff]   ;;  %v2670_v14 = vld [vmem:[#allocation3 + $0x20] sm:$0xf]  ;;  %v2580_v34 = vsel %vm5890_vm12, %v4343_v5, %v2579_v22 }
 0x1a5   : > { %v2704_v30 = vrot.slane %v2703_v20, 4  ;;  %4747 = vmatprep.subr.bf16.mxu1 %v5170_v15  ;;  %v2584_v25 = vsel %vm5890_vm12, %v4344_v13, %v2583_v10  ;;  %v2671_v38 = vld [vmem:[#allocation3 + $0x24] sm:$0x1]  ;;  %v2672_v39 = vld [vmem:[#allocation3 + $0x28] sm:$0xf]  ;;  %v2711_v7 = vshrl.u32 %v2670_v14, 16 }
 0x1a6   : > { %v2695_v35 = vsel %vm5536_vm2, %v2690_v50, %v2694_v24  ;;  %v2673_v29 = vld [vmem:[#allocation3 + $0x2c] sm:$0x1]  ;;  %4790 = vmatpush3.bf16.msra.mxu0 %v5169_v11  ;;  %v4351_v52 = vcombine.low %v2580_v34, %v2584_v25  ;;  %v5173_v43 = vld [vmem:[#allocation3 + $0x10] ss:$8 sps:$4 sm:$0xff]   ;;  %v2714_v1 = vshll.u32 %v2670_v14, 16  ;;  %v2720_v48 = vshll.u32 %v2671_v38, 16 }
 0x1a7   : > { %v2709_v41 = vsel %vm5536_vm2, %v2704_v30, %v2708_v31  ;;  %v5175_v45 = vld [vmem:[#allocation5 + $0x138] sm:$0xff]   ;;  %3572 = vmatmul.mubr.bf16.gmra.mrb[44].mxu1 %v5171_v33  ;;  %v2725_v53 = vshrl.u32 %v2672_v39, 16  ;;  %v2728_v54 = vshll.u32 %v2672_v39, 16  ;;  %v2399_v56 = vld [vmem:[#allocation3 + $0x10] sm:$0xf]  ;;  %4887 = vmatprep.subr.bf16.mxu0 %v5958_v23  ;;  %v2713_v57 = vrot.slane %v2711_v7, 4 }
 0x1a8   : > { %v2397_v26 = vld [vmem:[#allocation3 + $0x8] sm:$0xf]  ;;  %v2398_v47 = vld [vmem:[#allocation3 + $0xc] sm:$0x1]  ;;  %v4359_v28 = vcombine.low %v2695_v35, %v2709_v41  ;;  %4748 = vmatpush3.bf16.msra.mxu1 %v5172_v21  ;;  %3677 = vmatprep.mubr.bf16.mxu1 %v4351_v52  ;;  %v2716_v58 = vrot.slane %v2714_v1, 5  ;;  %v2734_v60 = vshll.u32 %v2673_v29, 16 }
 0x1a9   : > { %v5978_v46 = vld [vmem:[%s6179_s3 + $0x8] sm:$0xff]   ;;  %v2400_v62 = vld [vmem:[#allocation3 + $0x14] sm:$0x1]  ;;  %v2414_v12 = vshrl.u32 %v2397_v26, 16  ;;  %v2722_v32 = vrot.slane %v2720_v48, 5  ;;  %v2727_v63 = vrot.slane %v2725_v53, 4  ;;  %4749 = vmatprep.subr.bf16.mxu1 %v5174_v27 }
 0x1aa   : > { %3742 = vmatprep.mubr.bf16.mxu0 %v4359_v28  ;;  %v2730_v42 = vrot.slane %v2728_v54, 5  ;;  %v2417_v0 = vshll.u32 %v2397_v26, 16  ;;  %v2549_v19 = vld [vmem:[#allocation3 + $0x18] sm:$0xe]  ;;  %v2717_v49 = vor.u32 %v2716_v58, %v2713_v57  ;;  %v2736_v2 = vrot.slane %v2734_v60, 5  ;;  %v5984_v59 = vld [vmem:[%s6179_s3 + $0x10] sm:$0xff]  }
 0x1ab   : > { %3743 = vmatmul.mubr.bf16.vlgmr.msra.gmra.mrb[56].mxu0 %v5173_v43  ;;  %v2416_v44 = vrot.slane %v2414_v12, 4  ;;  %v2423_v4 = vshll.u32 %v2398_v47, 16  ;;  %v2550_v6 = vld [vmem:[#allocation3 + $0x1c] sm:$0x1]  ;;  %v2428_v11 = vshrl.u32 %v2399_v56, 16  ;;  %v2431_v15 = vshll.u32 %v2399_v56, 16 }
 0x1ac   : > { %v2731_v8 = vor.u32 %v2730_v42, %v2727_v63  ;;  %v2419_v9 = vrot.slane %v2417_v0, 5  ;;  %v2551_v16 = vld [vmem:[#allocation3 + $0x20] sm:$0xe]  ;;  %4888 = vmatpush3.bf16.msra.mxu0 %v5958_v23  ;;  %v2718_v17 = vrot.slane %v2717_v49, 4  ;;  %4750 = vmatpush3.bf16.msra.mxu1 %v5175_v45  ;;  %v2437_v18 = vshll.u32 %v2400_v62, 16  ;;  %v5996_v34 = vld [vmem:[%s6179_s3 + $0x18] sm:$0xff]  }
 0x1ad   : > { %v2425_v61 = vrot.slane %v2423_v4, 5  ;;  %v2552_v3 = vld [vmem:[#allocation3 + $0x24] sm:$0x1]  ;;  %v4345_v20 = vrot.slane %v2549_v19, 9  ;;  %4889 = vmatprep.subr.bf16.mxu0 %v5978_v46  ;;  %4863 = vmatprep.subr.bf16.mxu1 %v5972_v55  ;;  %v2430_v22 = vrot.slane %v2428_v11, 4  ;;  %v2433_v50 = vrot.slane %v2431_v15, 5 }
 0x1ae   : > { %v2732_v21 = vrot.slane %v2731_v8, 4  ;;  %v2420_v5 = vor.u32 %v2419_v9, %v2416_v44  ;;  %v2723_v24 = vsel %vm5536_vm2, %v2718_v17, %v2722_v32  ;;  %v2439_v13 = vrot.slane %v2437_v18, 5  ;;  %v2674_v35 = vld [vmem:[#allocation3 + $0x30] sm:$0xf]  ;;  %v2675_v39 = vld [vmem:[#allocation3 + $0x34] sm:$0x1] }
 0x1af   : > { %v2587_v10 = vrot.slane %v2550_v6, 5  ;;  %v4346_v27 = vrot.slane %v2551_v16, 9  ;;  %v2434_v33 = vor.u32 %v2433_v50, %v2430_v22  ;;  %v2591_v14 = vrot.slane %v2552_v3, 5  ;;  %v2676_v29 = vld [vmem:[#allocation3 + $0x38] sm:$0xf]  ;;  %v6011_v49 = vld [vmem:[%s6179_s3 + $0x20] sm:$0xff]  }
 0x1b0   : > { %v2737_v30 = vsel %vm5536_vm2, %v2732_v21, %v2736_v2  ;;  %v2421_v31 = vrot.slane %v2420_v5, 4  ;;  %4890 = vmatpush3.bf16.msra.mxu0 %v5978_v46  ;;  %v2677_v41 = vld [vmem:[#allocation3 + $0x3c] sm:$0x1]  ;;  %v5177_v1 = vld [vmem:[#allocation3 + $0x20] ss:$8 sps:$4 sm:$0xff]   ;;  %v2739_v45 = vshrl.u32 %v2674_v35, 16 }
 0x1b1   : > { %v4360_v25 = vcombine.low %v2723_v24, %v2737_v30  ;;  %v2588_v38 = vsel %vm5890_vm12, %v4345_v20, %v2587_v10  ;;  %4891 = vmatprep.subr.bf16.mxu0 %v5984_v59  ;;  %v2435_v43 = vrot.slane %v2434_v33, 4  ;;  %v2592_v7 = vsel %vm5890_vm12, %v4346_v27, %v2591_v14  ;;  %v2401_v26 = vld [vmem:[#allocation3 + $0x18] sm:$0xf]  ;;  %v2402_v54 = vld [vmem:[#allocation3 + $0x1c] sm:$0x1]  ;;  %v5181_v11 = vld [vmem:[#allocation5 + $0x210] sm:$0xff]  }
 0x1b2   : > { %v2426_v52 = vsel %vm5536_vm2, %v2421_v31, %v2425_v61  ;;  %v4352_v47 = vcombine.low %v2588_v38, %v2592_v7  ;;  %v2742_v28 = vshll.u32 %v2674_v35, 16  ;;  %v2748_v48 = vshll.u32 %v2675_v39, 16  ;;  %v5179_v62 = vld [vmem:[#allocation5 + $0x208] sm:$0xff]   ;;  %v2403_v12 = vld [vmem:[#allocation3 + $0x20] sm:$0xf]  ;;  %v5184_v7 = vld [vmem:[#allocation5 + $0x218] sm:$0xff]  }
 0x1b3   : > { %3750 = vmatprep.mubr.bf16.mxu0 %v4360_v25  ;;  %v2753_v53 = vshrl.u32 %v2676_v29, 16  ;;  %v2440_v56 = vsel %vm5536_vm2, %v2435_v43, %v2439_v13  ;;  %v2741_v57 = vrot.slane %v2739_v45, 4  ;;  %v2756_v58 = vshll.u32 %v2676_v29, 16  ;;  %v2404_v19 = vld [vmem:[#allocation3 + $0x24] sm:$0x1] }
 0x1b4   : > { %3751 = vmatmul.mubr.bf16.gmra.mrb[60].mxu0 %v5177_v1  ;;  %v2762_v60 = vshll.u32 %v2677_v41, 16  ;;  %v4339_v32 = vcombine.low %v2426_v52, %v2440_v56  ;;  %v2744_v63 = vrot.slane %v2742_v28, 5  ;;  %v2750_v42 = vrot.slane %v2748_v48, 5  ;;  %v2553_v8 = vld [vmem:[#allocation3 + $0x28] sm:$0xe]  ;;  %v6030_v48 = vld [vmem:[%s6179_s3 + $0x30] sm:$0xff]  }
 0x1b5   : > { %v2755_v0 = vrot.slane %v2753_v53, 4  ;;  %4892 = vmatpush3.bf16.msra.mxu0 %v5984_v59  ;;  %v2758_v2 = vrot.slane %v2756_v58, 5  ;;  %v2442_v4 = vshrl.u32 %v2401_v26, 16  ;;  %v2445_v6 = vshll.u32 %v2401_v26, 16  ;;  %v2554_v61 = vld [vmem:[#allocation3 + $0x2c] sm:$0x1] }
 0x1b6   : > { %v2764_v44 = vrot.slane %v2762_v60, 5  ;;  %4893 = vmatprep.subr.bf16.mxu0 %v5996_v34  ;;  %3678 = vmatmul.mubr.bf16.vlgmr.msra.gmra.mrb[48].mxu1 %v4339_v32  ;;  %v2745_v9 = vor.u32 %v2744_v63, %v2741_v57  ;;  %v2451_v15 = vshll.u32 %v2402_v54, 16  ;;  %v2456_v16 = vshrl.u32 %v2403_v12, 16  ;;  %v2555_v21 = vld [vmem:[#allocation3 + $0x30] sm:$0xe] }
 0x1b7   : > { %v2459_v17 = vshll.u32 %v2403_v12, 16  ;;  %4864 = vmatpush3.bf16.msra.mxu1 %v5972_v55  ;;  %3685 = vmatprep.mubr.bf16.mxu1 %v4352_v47  ;;  %v2759_v18 = vor.u32 %v2758_v2, %v2755_v0  ;;  %v2444_v3 = vrot.slane %v2442_v4, 4  ;;  %v2447_v20 = vrot.slane %v2445_v6, 5  ;;  %v2556_v5 = vld [vmem:[#allocation3 + $0x34] sm:$0x1]  ;;  %v6020_v55 = vld [vmem:[%s6179_s3 + $0x28] sm:$0xff]  }
 0x1b8   : > { %v2746_v22 = vrot.slane %v2745_v9, 4  ;;  %4865 = vmatprep.subr.bf16.mxu1 %v5179_v62  ;;  %v2458_v50 = vrot.slane %v2456_v16, 4  ;;  %v2465_v13 = vshll.u32 %v2404_v19, 16  ;;  %v2453_v30 = vrot.slane %v2451_v15, 5  ;;  %v2678_v38 = vld [vmem:[#allocation3 + $0x40] sm:$0xf] }
 0x1b9   : > { %v2461_v24 = vrot.slane %v2459_v17, 5  ;;  %4894 = vmatpush3.bf16.msra.mxu0 %v5996_v34  ;;  %v2760_v10 = vrot.slane %v2759_v18, 4  ;;  %v2448_v27 = vor.u32 %v2447_v20, %v2444_v3  ;;  %v4347_v31 = vrot.slane %v2553_v8, 9  ;;  %v2679_v52 = vld [vmem:[#allocation3 + $0x44] sm:$0x1]  ;;  %v5186_v15 = vld [vmem:[#allocation5 + $0x220] sm:$0xff]  }
 0x1ba   : > { %4895 = vmatprep.subr.bf16.mxu0 %v6011_v49  ;;  %v2751_v33 = vsel %vm5536_vm2, %v2746_v22, %v2750_v42  ;;  %v2595_v35 = vrot.slane %v2554_v61, 5  ;;  %v4348_v25 = vrot.slane %v2555_v21, 9  ;;  %v2599_v41 = vrot.slane %v2556_v5, 5  ;;  %v2405_v28 = vld [vmem:[#allocation3 + $0x28] sm:$0xf]  ;;  %v6050_v5 = vld [vmem:[%s6179_s3 + $0x38] sm:$0xff]  }
 0x1bb   : > { %v2462_v14 = vor.u32 %v2461_v24, %v2458_v50  ;;  %v2765_v39 = vsel %vm5536_vm2, %v2760_v10, %v2764_v44  ;;  %4866 = vmatpush3.bf16.msra.mxu1 %v5179_v62  ;;  %v2449_v29 = vrot.slane %v2448_v27, 4  ;;  %v2767_v43 = vshrl.u32 %v2678_v38, 16  ;;  %v5182_v56 = vld [vmem:[#allocation3 + $0x30] ss:$8 sps:$4 sm:$0xff]   ;;  %v2406_v63 = vld [vmem:[#allocation3 + $0x2c] sm:$0x1] }
 0x1bc   : > { %v4361_v1 = vcombine.low %v2751_v33, %v2765_v39  ;;  %4867 = vmatprep.subr.bf16.mxu1 %v5181_v11  ;;  %v2467_v26 = vrot.slane %v2465_v13, 5  ;;  %v2770_v47 = vshll.u32 %v2678_v38, 16  ;;  %v2596_v53 = vsel %vm5890_vm12, %v4347_v31, %v2595_v35  ;;  %v2407_v60 = vld [vmem:[#allocation3 + $0x30] sm:$0xf]  ;;  %v2408_v42 = vld [vmem:[#allocation3 + $0x34] sm:$0x1] }
 0x1bd   : > { %v2463_v45 = vrot.slane %v2462_v14, 4  ;;  %4896 = vmatpush3.bf16.msra.mxu0 %v6011_v49  ;;  %v2600_v54 = vsel %vm5890_vm12, %v4348_v25, %v2599_v41  ;;  %v2769_v57 = vrot.slane %v2767_v43, 4  ;;  %v2776_v58 = vshll.u32 %v2679_v52, 16  ;;  %v2557_v4 = vld [vmem:[#allocation3 + $0x38] sm:$0xe] }
 0x1be   : > { %4897 = vmatprep.subr.bf16.mxu0 %v6020_v55  ;;  %3758 = vmatprep.mubr.bf16.mxu0 %v4361_v1  ;;  %v2454_v62 = vsel %vm5536_vm2, %v2449_v29, %v2453_v30  ;;  %v2772_v32 = vrot.slane %v2770_v47, 5  ;;  %v2470_v0 = vshrl.u32 %v2405_v28, 16  ;;  %v4353_v2 = vcombine.low %v2596_v53, %v2600_v54  ;;  %v2558_v6 = vld [vmem:[#allocation3 + $0x3c] sm:$0x1]  ;;  %v2559_v8 = vld [vmem:[#allocation3 + $0x40] sm:$0xe] }
 0x1bf   : > { %v2468_v12 = vsel %vm5536_vm2, %v2463_v45, %v2467_v26  ;;  %4868 = vmatpush3.bf16.msra.mxu1 %v5181_v11  ;;  %3759 = vmatmul.mubr.bf16.gmra.mrb[64].mxu0 %v5182_v56  ;;  %v2473_v44 = vshll.u32 %v2405_v28, 16  ;;  %v2484_v17 = vshrl.u32 %v2407_v60, 16  ;;  %v2487_v61 = vshll.u32 %v2407_v60, 16  ;;  %v2560_v18 = vld [vmem:[#allocation3 + $0x44] sm:$0x1]  ;;  %v5189_v35 = vld [vmem:[#allocation5 + $0x228] sm:$0xff]  }
 0x1c0   : > { %v4340_v19 = vcombine.low %v2454_v62, %v2468_v12  ;;  %v2773_v9 = vor.u32 %v2772_v32, %v2769_v57  ;;  %4869 = vmatprep.subr.bf16.mxu1 %v5184_v7  ;;  %v2472_v16 = vrot.slane %v2470_v0, 4  ;;  %v2778_v3 = vrot.slane %v2776_v58, 5  ;;  %v2411_v25 = vld [vmem:[#allocation3 + $0x40] sm:$0xf]  ;;  %v2412_v45 = vld [vmem:[#allocation3 + $0x44] sm:$0x1] }
 0x1c1   : > { %4898 = vmatpush3.bf16.msra.mxu0 %v6020_v55  ;;  %v2793_v11 = vsel %vm5536_vm2, %v5945_v40, %v5962_v37  ;;  %v2475_v20 = vrot.slane %v2473_v44, 5  ;;  %v2479_v21 = vshll.u32 %v2406_v63, 16  ;;  %v2486_v50 = vrot.slane %v2484_v17, 4  ;;  %v2409_v40 = vld [vmem:[#allocation3 + $0x38] sm:$0xf] }
 0x1c2   : > { %3686 = vmatmul.mubr.bf16.gmra.mrb[52].mxu1 %v4340_v19  ;;  %4899 = vmatprep.subr.bf16.mxu0 %v6030_v48  ;;  %v2774_v22 = vrot.slane %v2773_v9, 4  ;;  %v2489_v24 = vrot.slane %v2487_v61, 5  ;;  %v2493_v13 = vshll.u32 %v2408_v42, 16  ;;  %v4350_v27 = vrot.slane %v2559_v8, 9  ;;  %v5187_v29 = vld [vmem:[#allocation3 + $0x40] ss:$8 sps:$4 sm:$0xff]  }
 0x1c3   : > { %3693 = vmatprep.mubr.bf16.mxu1 %v4353_v2  ;;  %4870 = vmatpush3.bf16.msra.mxu1 %v5184_v7  ;;  %v2476_v10 = vor.u32 %v2475_v20, %v2472_v16  ;;  %v2607_v30 = vrot.slane %v2560_v18, 5  ;;  %v4349_v33 = vrot.slane %v2557_v4, 9  ;;  %v2603_v14 = vrot.slane %v2558_v6, 5  ;;  %v5195_v52 = vld [vmem:[%s5513_s10 + $0xd8] ss:$8 sps:$4 sm:$0xff]  }
 0x1c4   : > { %v2779_v37 = vsel %vm5536_vm2, %v2774_v22, %v2778_v3  ;;  %4871 = vmatprep.subr.bf16.mxu1 %v5186_v15  ;;  %v2490_v31 = vor.u32 %v2489_v24, %v2486_v50  ;;  %v2498_v41 = vshrl.u32 %v2409_v40, 16  ;;  %v2481_v43 = vrot.slane %v2479_v21, 5  ;;  %v2410_v28 = vld [vmem:[#allocation3 + $0x3c] sm:$0x1]  ;;  %v2814_v12 = vld [vmem:[#allocation3 + $0x10] sm:$0xe] }
 0x1c5   : > { %4900 = vmatpush3.bf16.msra.mxu0 %v6030_v48  ;;  %v4362_v38 = vcombine.low %v2779_v37, %v2793_v11  ;;  %v2477_v39 = vrot.slane %v2476_v10, 4  ;;  %v2495_v1 = vrot.slane %v2493_v13, 5  ;;  %v2501_v26 = vshll.u32 %v2409_v40, 16  ;;  %v2815_v32 = vld [vmem:[#allocation3 + $0x14] sm:$0x1]  ;;  %v5191_v42 = vld [vmem:[#allocation5 + $0x230] sm:$0xff]  }
 0x1c6   : > { %4901 = vmatprep.subr.bf16.mxu0 %v6050_v5  ;;  %v2491_v7 = vrot.slane %v2490_v31, 4  ;;  %v2608_v47 = vsel %vm5890_vm12, %v4350_v27, %v2607_v30  ;;  %v2500_v53 = vrot.slane %v2498_v41, 4  ;;  %v2512_v54 = vshrl.u32 %v2411_v25, 16  ;;  %v2816_v8 = vld [vmem:[#allocation3 + $0x18] sm:$0xe]  ;;  %v5193_v22 = vld [vmem:[#allocation5 + $0x238] sm:$0xff]  }
 0x1c7   : > { %3766 = vmatprep.mubr.bf16.mxu0 %v4362_v38  ;;  %4872 = vmatpush3.bf16.msra.mxu1 %v5186_v15  ;;  %v2515_v56 = vshll.u32 %v2411_v25, 16  ;;  %v2482_v57 = vsel %vm5536_vm2, %v2477_v39, %v2481_v43  ;;  %v2604_v60 = vsel %vm5890_vm12, %v4349_v33, %v2603_v14  ;;  %v2503_v62 = vrot.slane %v2501_v26, 5  ;;  %v2817_v9 = vld [vmem:[#allocation3 + $0x1c] sm:$0x1]  ;;  %v5196_v18 = vld [vmem:[%s5513_s10 + $0xe8] ss:$8 sps:$4 sm:$0xff]  }
 0x1c8   : > { %v2496_v58 = vsel %vm5536_vm2, %v2491_v7, %v2495_v1  ;;  %3767 = vmatmul.mubr.bf16.gmra.mrb[68].mxu0 %v5187_v29  ;;  %4873 = vmatprep.subr.bf16.mxu1 %v5189_v35  ;;  %v2514_v0 = vrot.slane %v2512_v54, 4  ;;  %v2521_v2 = vshll.u32 %v2412_v45, 16  ;;  %v4354_v44 = vcombine.low %v2604_v60, %v2608_v47  ;;  %v2820_v10 = vld [vmem:[#allocation3 + $0x28] sm:$0xe]  ;;  %v2821_v27 = vld [vmem:[#allocation3 + $0x2c] sm:$0x1] }
 0x1c9   : > { %v4341_v63 = vcombine.low %v2482_v57, %v2496_v58  ;;  %v2517_v19 = vrot.slane %v2515_v56, 5  ;;  %4902 = vmatpush3.bf16.msra.mxu0 %v6050_v5  ;;  %4903 = vmatprep.mubr.bf16.mxu0 %v5195_v52  ;;  %v2504_v4 = vor.u32 %v2503_v62, %v2500_v53  ;;  %v2507_v6 = vshll.u32 %v2410_v28, 16  ;;  %v2822_v40 = vld [vmem:[#allocation3 + $0x30] sm:$0xe]  ;;  %v2823_v37 = vld [vmem:[#allocation3 + $0x34] sm:$0x1] }
 0x1ca   : > { %v4363_v16 = vrot.slane %v2814_v12, 9  ;;  %v2848_v17 = vrot.slane %v2815_v32, 5  ;;  %v2523_v11 = vrot.slane %v2521_v2, 5  ;;  %v4364_v20 = vrot.slane %v2816_v8, 9  ;;  %v2818_v14 = vld [vmem:[#allocation3 + $0x20] sm:$0xe] }
 0x1cb   : > { %3694 = vmatmul.mubr.bf16.gmra.mrb[56].mxu1 %v4341_v63  ;;  %v2518_v15 = vor.u32 %v2517_v19, %v2514_v0  ;;  %v2505_v61 = vrot.slane %v2504_v4, 4  ;;  %v2852_v21 = vrot.slane %v2817_v9, 5  ;;  %v2509_v50 = vrot.slane %v2507_v6, 5  ;;  %v2824_v29 = vld [vmem:[#allocation3 + $0x38] sm:$0xe] }
 0x1cc   : > { %3701 = vmatprep.mubr.bf16.mxu1 %v4354_v44  ;;  %4874 = vmatpush3.bf16.msra.mxu1 %v5189_v35  ;;  %v2849_v13 = vsel %vm5890_vm12, %v4363_v16, %v2848_v17  ;;  %v2819_v35 = vld [vmem:[#allocation3 + $0x24] sm:$0x1]  ;;  %v4366_v38 = vrot.slane %v2820_v10, 9  ;;  %v2860_v39 = vrot.slane %v2821_v27, 5  ;;  %v2825_v41 = vld [vmem:[#allocation3 + $0x3c] sm:$0x1] }
 0x1cd   : > { %4875 = vmatprep.subr.bf16.mxu1 %v5191_v42  ;;  %v2519_v3 = vrot.slane %v2518_v15, 4  ;;  %v2510_v30 = vsel %vm5536_vm2, %v2505_v61, %v2509_v50  ;;  %v2853_v33 = vsel %vm5890_vm12, %v4364_v20, %v2852_v21  ;;  %v4367_v52 = vrot.slane %v2822_v40, 9  ;;  %v2828_v47 = vld [vmem:[#allocation3 + $0x48] sm:$0xe]  ;;  %v2826_v53 = vld [vmem:[#allocation3 + $0x40] sm:$0xe] }
 0x1ce   : > { %v4371_v25 = vcombine.low %v2849_v13, %v2853_v33  ;;  %v2864_v51 = vrot.slane %v2823_v37, 5  ;;  %v4365_v43 = vrot.slane %v2818_v14, 9  ;;  %v2856_v7 = vrot.slane %v2819_v35, 5  ;;  %v2827_v54 = vld [vmem:[#allocation3 + $0x44] sm:$0x1] }
 0x1cf   : > { %v2524_v24 = vsel %vm5536_vm2, %v2519_v3, %v2523_v11  ;;  %v4368_v1 = vrot.slane %v2824_v29, 9  ;;  %v2868_v45 = vrot.slane %v2825_v41, 5  ;;  %v2861_v26 = vsel %vm5890_vm12, %v4366_v38, %v2860_v39  ;;  %v2829_v56 = vld [vmem:[#allocation3 + $0x4c] sm:$0x1]  ;;  %v5197_v2 = vld [vmem:[%s5513_s10 + $0xf8] ss:$8 sps:$4 sm:$0xff]  }
 0x1d0   : > { %4876 = vmatpush3.bf16.msra.mxu1 %v5191_v42  ;;  %4904 = vmatmul.mubr.bf16.vlgmr.msra.gmra.mrb[72].mxu0 %v5196_v18  ;;  %v4342_v31 = vcombine.low %v2510_v30, %v2524_v24  ;;  %v2865_v28 = vsel %vm5890_vm12, %v4367_v52, %v2864_v51  ;;  %v2857_v57 = vsel %vm5890_vm12, %v4365_v43, %v2856_v7  ;;  %v4370_v62 = vrot.slane %v2828_v47, 9  ;;  %s230_s10 = sand.u32 1, %s5285_s19  }
 0x1d1   : > { %4877 = vmatprep.subr.bf16.mxu1 %v5193_v22  ;;  %v4372_v58 = vcombine.low %v2857_v57, %v2861_v26  ;;  %v2869_v60 = vsel %vm5890_vm12, %v4368_v1, %v2868_v45  ;;  %v4369_v32 = vrot.slane %v2826_v53, 9  ;;  %v2872_v63 = vrot.slane %v2827_v54, 5  ;;  %s4124_s6 = sshll.u32 %s230_s10, 6  ;;  %s6135_s22 = scalar_lea.sflag [#allocation7], %s230_s10 }
 0x1d2   : > { %v4373_v12 = vcombine.low %v2865_v28, %v2869_v60  ;;  %v2876_v42 = vrot.slane %v2829_v56, 5  ;;  %s6114_s11 = scalar_lea.vmem [#allocation8], %s4124_s6 }
 0x1d3   : > { %3702 = vmatmul.mubr.bf16.gmra.mrb[60].mxu1 %v4342_v31  ;;  %v2873_v0 = vsel %vm5890_vm12, %v4369_v32, %v2872_v63  ;;  %s4044_s8 = sshll.u32 %s6114_s11, 4  ;;  %s6122_s8 = int_to_ptr.vmem [resolvable:$true] %s4044_s8 }
 0x1d4   : > { %4879 = vmatprep.mubr.bf16.mxu1 %v4371_v25  ;;  %4878 = vmatpush3.bf16.msra.mxu1 %v5193_v22  ;;  %v2877_v19 = vsel %vm5890_vm12, %v4370_v62, %v2876_v42  ;;  %s5227_s14 = scalar_lea.vmem %s6122_s8, 1024  ;;  %p5234_p2 = scmp.lt.s32.totalorder %s6122_s8, %s5232_s16 }
 0x1d5   : > { %4911 = vmatprep.subr.bf16.mxu1 %v5958_v23  ;;  %v4374_v44 = vcombine.low %v2873_v0, %v2877_v19  ;;  %p5228_p6 = scmp.ne.s32.totalorder %s6122_s8, %s5227_s14  ;;  %p5235_p3 = scmp.lt.s32.totalorder %s5233_s17, %s5227_s14 }
 0x1d7   : > { %p5229_p10 = pnand %p5228_p6, %p6202_p9  ;;  %p5236_p4 = por %p5235_p3, %p5234_p2 }
 0x1d9   : > { %p5230_p12 = pneg %p5229_p10 }
 0x1db   : > { %4880 = vmatmul.mubr.bf16.vlgmr.msra.gmra.mrb[64].mxu1 %v4372_v58  ;;  %p5237_p7 = pnand %p5236_p4, %p5230_p12 }
 0x1dc   : > { %4919 = vmatpush3.bf16.msra.mxu1 %v5958_v23  ;;  %4883 = vmatprep.mubr.bf16.mxu1 %v4373_v12 }
 0x1dd   : > { %4912 = vmatprep.subr.bf16.mxu1 %v5978_v46 }
 0x1e0   : > { %4920 = vmatpush3.bf16.msra.mxu1 %v5978_v46 }
 0x1e1   : > { %4913 = vmatprep.subr.bf16.mxu1 %v5984_v59 }
 0x1e3   : > { %4884 = vmatmul.mubr.bf16.gmra.mrb[68].mxu1 %v4374_v44 }
 0x1e4   : > { %4921 = vmatpush3.bf16.msra.mxu1 %v5984_v59  ;;  %4907 = vmatprep.mubr.bf16.mxu1 %v5197_v2 }
 0x1e5   : > { %4914 = vmatprep.subr.bf16.mxu1 %v5996_v34 }
 0x1e8   : > { %4922 = vmatpush3.bf16.msra.mxu1 %v5996_v34 }
 0x1e9   : > { %4915 = vmatprep.subr.bf16.mxu1 %v6011_v49 }
 0x1ec   : > { %4923 = vmatpush3.bf16.msra.mxu1 %v6011_v49 }
 0x1ed   : > { %4916 = vmatprep.subr.bf16.mxu1 %v6020_v55 }
 0x1f0   : > { %4924 = vmatpush3.bf16.msra.mxu1 %v6020_v55  ;;  %v4375_v55 = vld [vmem:[%s6180_s4 + $0x1] ss:$0 sm:$0xff] }
 0x1f1   : > { %4917 = vmatprep.subr.bf16.mxu1 %v6030_v48 }
 0x1f4   : > { %4925 = vmatpush3.bf16.msra.mxu1 %v6030_v48 }
 0x1f5   : > { %4918 = vmatprep.subr.bf16.mxu1 %v6050_v5 }
 0x1f8   : > { %4926 = vmatpush3.bf16.msra.mxu1 %v6050_v5 }
 0x1fb   : > { %4908 = vmatmul.mubr.bf16.vlgmr.msra.gmra.mrb[68].mxu1 %v5198_v36 }
 0x25a   : > { %v4711_v23 = vpop.f32.mrb[40].mxu0 }
 0x25b   : > { %v4712_v46 = vpop.f32.mrb[41].mxu0 }
 0x25c   : > { %v4713_v59 = vadd.f32 %v4712_v46, %v4711_v23  ;;  %v4714_v34 = vpop.f32.mrb[42].mxu0 }
 0x25d   : > { %v4715_v4 = vpop.f32.mrb[43].mxu0 }
 0x25e   : > { %v4716_v49 = vadd.f32 %v4715_v4, %v4714_v34 }
 0x262   : > { %v4671_v6 = vpop.f32.mrb[32].mxu1 }
 0x263   : > { %v4672_v8 = vpop.f32.mrb[33].mxu1  ;;  %v4717_v9 = vpop.f32.mrb[44].mxu0 }
 0x264   : > { %v4673_v48 = vadd.f32 %v4672_v8, %v4671_v6  ;;  %v4674_v15 = vpop.f32.mrb[34].mxu1  ;;  %v4718_v16 = vpop.f32.mrb[45].mxu0 }
 0x265   : > { %v4719_v17 = vadd.f32 %v4718_v16, %v4717_v9  ;;  %v4675_v61 = vpop.f32.mrb[35].mxu1  ;;  %v4720_v5 = vpop.f32.mrb[46].mxu0 }
 0x266   : > { %v3550_v18 = vadd.f32 %v4673_v48, %v4375_v55  ;;  %v4676_v3 = vadd.f32 %v4675_v61, %v4674_v15  ;;  %v4721_v11 = vpop.f32.mrb[47].mxu0 }
 0x267   : > { %v4722_v20 = vadd.f32 %v4721_v11, %v4720_v5 }
 0x268   : > { %v3553_v21 = vadd.f32 %v4676_v3, %v4375_v55  ;;  %v3615_v22 = vadd.f32 %v4713_v59, %v3550_v18 }
 0x26a   : > { %v4677_v50 = vpop.f32.mrb[36].mxu1  ;;  %v3618_v24 = vadd.f32 %v4716_v49, %v3553_v21 }
 0x26b   : > { %v4678_v13 = vpop.f32.mrb[37].mxu1  ;;  %v4723_v10 = vpop.f32.mrb[48].mxu0 }
 0x26c   : > { %v4679_v27 = vadd.f32 %v4678_v13, %v4677_v50  ;;  %v4680_v30 = vpop.f32.mrb[38].mxu1  ;;  %v4724_v40 = vpop.f32.mrb[49].mxu0 }
 0x26d   : > { %v4725_v37 = vadd.f32 %v4724_v40, %v4723_v10  ;;  %v4681_v31 = vpop.f32.mrb[39].mxu1  ;;  %v4726_v33 = vpop.f32.mrb[50].mxu0 }
 0x26e   : > { %v3558_v14 = vadd.f32 %v4679_v27, %v4375_v55  ;;  %v4682_v35 = vadd.f32 %v4681_v31, %v4680_v30  ;;  %v4727_v25 = vpop.f32.mrb[51].mxu0 }
 0x26f   : > { %v4728_v38 = vadd.f32 %v4727_v25, %v4726_v33 }
 0x270   : > { %v3561_v39 = vadd.f32 %v4682_v35, %v4375_v55  ;;  %v3623_v29 = vadd.f32 %v4719_v17, %v3558_v14 }
 0x272   : > { %v4683_v41 = vpop.f32.mrb[40].mxu1  ;;  %v3626_v52 = vadd.f32 %v4722_v20, %v3561_v39 }
 0x273   : > { %v4684_v51 = vpop.f32.mrb[41].mxu1 }
 0x274   : > { %v4685_v43 = vadd.f32 %v4684_v51, %v4683_v41  ;;  %v4729_v7 = vpop.f32.mrb[52].mxu0  ;;  %v4686_v1 = vpop.f32.mrb[42].mxu1 }
 0x275   : > { %v4730_v45 = vpop.f32.mrb[53].mxu0  ;;  %v4687_v26 = vpop.f32.mrb[43].mxu1 }
 0x276   : > { %v3566_v47 = vadd.f32 %v4685_v43, %v4375_v55  ;;  %v4731_v28 = vadd.f32 %v4730_v45, %v4729_v7  ;;  %v4688_v53 = vadd.f32 %v4687_v26, %v4686_v1  ;;  %v4732_v54 = vpop.f32.mrb[54].mxu0 }
 0x277   : > { %v4733_v56 = vpop.f32.mrb[55].mxu0 }
 0x278   : > { %v3569_v57 = vadd.f32 %v4688_v53, %v4375_v55  ;;  %v4734_v58 = vadd.f32 %v4733_v56, %v4732_v54  ;;  %v3631_v60 = vadd.f32 %v4725_v37, %v3566_v47 }
 0x27a   : > { %v4689_v62 = vpop.f32.mrb[44].mxu1  ;;  %v3634_v12 = vadd.f32 %v4728_v38, %v3569_v57 }
 0x27b   : > { %v4690_v32 = vpop.f32.mrb[45].mxu1 }
 0x27c   : > { %v4691_v63 = vadd.f32 %v4690_v32, %v4689_v62  ;;  %v4692_v42 = vpop.f32.mrb[46].mxu1 }
 0x27d   : > { %v4693_v19 = vpop.f32.mrb[47].mxu1 }
 0x27e   : > { %v4791_v0 = vpop.f32.mrb[56].mxu0  ;;  %v3574_v2 = vadd.f32 %v4691_v63, %v4375_v55  ;;  %v4694_v36 = vadd.f32 %v4693_v19, %v4692_v42 }
 0x27f   : > { %v4792_v44 = vpop.f32.mrb[57].mxu0 }
 0x280   : > { %v4793_v23 = vadd.f32 %v4792_v44, %v4791_v0  ;;  %v4794_v46 = vpop.f32.mrb[58].mxu0  ;;  %v3577_v59 = vadd.f32 %v4694_v36, %v4375_v55  ;;  %v3639_v4 = vadd.f32 %v4731_v28, %v3574_v2 }
 0x281   : > { %v4795_v34 = vpop.f32.mrb[59].mxu0 }
 0x282   : > { %v4796_v49 = vadd.f32 %v4795_v34, %v4794_v46  ;;  %v3642_v6 = vadd.f32 %v4734_v58, %v3577_v59 }
 0x287   : > { %v4797_v8 = vpop.f32.mrb[60].mxu0 }
 0x288   : > { %v4798_v9 = vpop.f32.mrb[61].mxu0 }
 0x289   : > { %v4799_v48 = vadd.f32 %v4798_v9, %v4797_v8  ;;  %v4800_v15 = vpop.f32.mrb[62].mxu0  ;;  %v4751_v16 = vpop.f32.mrb[48].mxu1 }
 0x28a   : > { %v4801_v17 = vpop.f32.mrb[63].mxu0  ;;  %v4752_v61 = vpop.f32.mrb[49].mxu1 }
 0x28b   : > { %v4802_v5 = vadd.f32 %v4801_v17, %v4800_v15  ;;  %v4753_v18 = vadd.f32 %v4752_v61, %v4751_v16  ;;  %v4754_v3 = vpop.f32.mrb[50].mxu1 }
 0x28c   : > { %v4755_v11 = vpop.f32.mrb[51].mxu1 }
 0x28d   : > { %v3680_v20 = vadd.f32 %v4753_v18, %v3615_v22  ;;  %v4756_v21 = vadd.f32 %v4755_v11, %v4754_v3  ;;  %v4456_v18 = vld [vmem:[%s6180_s4 + $0x2] ss:$0 sm:$0xff] }
 0x28f   : > { %v3683_v50 = vadd.f32 %v4756_v21, %v3618_v24  ;;  %v3745_v13 = vadd.f32 %v4793_v23, %v3680_v20 }
 0x291   : > { %v3748_v55 = vadd.f32 %v4796_v49, %v3683_v50 }
 0x292   : > { %v4803_v10 = vpop.f32.mrb[64].mxu0 }
 0x293   : > { %v4804_v27 = vpop.f32.mrb[65].mxu0 }
 0x294   : > { %v4805_v40 = vadd.f32 %v4804_v27, %v4803_v10  ;;  %v4806_v37 = vpop.f32.mrb[66].mxu0 }
 0x295   : > { %v4757_v30 = vpop.f32.mrb[52].mxu1  ;;  %v4807_v33 = vpop.f32.mrb[67].mxu0 }
 0x296   : > { %v4758_v31 = vpop.f32.mrb[53].mxu1  ;;  %v4808_v25 = vadd.f32 %v4807_v33, %v4806_v37 }
 0x297   : > { %v4759_v14 = vadd.f32 %v4758_v31, %v4757_v30  ;;  %v4760_v35 = vpop.f32.mrb[54].mxu1 }
 0x298   : > { %v4761_v38 = vpop.f32.mrb[55].mxu1 }
 0x299   : > { %v3688_v39 = vadd.f32 %v4759_v14, %v3623_v29  ;;  %v4762_v41 = vadd.f32 %v4761_v38, %v4760_v35 }
 0x29b   : > { %v3691_v51 = vadd.f32 %v4762_v41, %v3626_v52  ;;  %v3753_v43 = vadd.f32 %v4799_v48, %v3688_v39  ;;  %v4809_v22 = vpop.f32.mrb[68].mxu0 }
 0x29c   : > { %v4810_v7 = vpop.f32.mrb[69].mxu0 }
 0x29d   : > { %v3756_v24 = vadd.f32 %v4802_v5, %v3691_v51  ;;  %v4811_v1 = vadd.f32 %v4810_v7, %v4809_v22  ;;  %v4812_v45 = vpop.f32.mrb[70].mxu0 }
 0x29e   : > { %v4763_v26 = vpop.f32.mrb[56].mxu1  ;;  %v4813_v47 = vpop.f32.mrb[71].mxu0 }
 0x29f   : > { %v4764_v28 = vpop.f32.mrb[57].mxu1  ;;  %v4814_v53 = vadd.f32 %v4813_v47, %v4812_v45 }
 0x2a0   : > { %v4765_v54 = vadd.f32 %v4764_v28, %v4763_v26  ;;  %v4766_v56 = vpop.f32.mrb[58].mxu1 }
 0x2a1   : > { %v4767_v57 = vpop.f32.mrb[59].mxu1 }
 0x2a2   : > { %v3696_v58 = vadd.f32 %v4765_v54, %v3631_v60  ;;  %v4768_v62 = vadd.f32 %v4767_v57, %v4766_v56 }
 0x2a3   : > { %v4905_v32 = vpop.f32.mrb[72].mxu0 }
 0x2a4   : > { %v3699_v63 = vadd.f32 %v4768_v62, %v3634_v12  ;;  %v3975_v29 = vpop.f32.mrb[73].mxu0  ;;  %v3761_v52 = vadd.f32 %v4805_v40, %v3696_v58 }
 0x2a5   : > { %v4906_v42 = vpop.f32.mrb[74].mxu0 }
 0x2a6   : > { %v4769_v0 = vpop.f32.mrb[60].mxu1  ;;  %v3978_v19 = vpop.f32.mrb[75].mxu0  ;;  %v3764_v2 = vadd.f32 %v4808_v25, %v3699_v63  ;;  %v4941_v31 = vadd.f32 %v4456_v18, %v3761_v52 }
 0x2a7   : > { %v4770_v44 = vpop.f32.mrb[61].mxu1 }
 0x2a8   : > { %v4771_v36 = vadd.f32 %v4770_v44, %v4769_v0  ;;  %v4772_v23 = vpop.f32.mrb[62].mxu1  ;;  %v4945_v39 = vadd.f32 %v4456_v18, %v3764_v2 }
 0x2a9   : > { %v4773_v46 = vpop.f32.mrb[63].mxu1 }
 0x2aa   : > { %v3704_v59 = vadd.f32 %v4771_v36, %v3639_v4  ;;  %v4774_v34 = vadd.f32 %v4773_v46, %v4772_v23 }
 0x2ac   : > { %v3707_v49 = vadd.f32 %v4774_v34, %v3642_v6  ;;  %v3769_v8 = vadd.f32 %v4811_v1, %v3704_v59 }
 0x2ae   : > { %v4881_v60 = vpop.f32.mrb[64].mxu1  ;;  %v3772_v9 = vadd.f32 %v4814_v53, %v3707_v49  ;;  %v4939_v40 = vadd.f32 %v4456_v18, %v3769_v8 }
 0x2af   : > { %v3818_v12 = vadd.f32 %v4881_v60, %v3753_v43  ;;  %v3809_v48 = vpop.f32.mrb[65].mxu1 }
 0x2b0   : > { %v3810_v15 = vadd.f32 %v3809_v48, %v3745_v13  ;;  %v4882_v16 = vpop.f32.mrb[66].mxu1  ;;  %v4943_v35 = vadd.f32 %v4456_v18, %v3772_v9 }
 0x2b1   : > { %v3821_v17 = vadd.f32 %v4882_v16, %v3756_v24  ;;  %v4928_v61 = vadd.f32 %v4905_v32, %v3818_v12  ;;  %v3812_v5 = vpop.f32.mrb[67].mxu1 }
 0x2b2   : > { %v3813_v4 = vadd.f32 %v3812_v5, %v3748_v55  ;;  %v4931_v3 = vadd.f32 %v3975_v29, %v3810_v15 }
 0x2b3   : > { %v4929_v6 = vadd.f32 %v4928_v61, %v4456_v18  ;;  %v4934_v11 = vadd.f32 %v4456_v18, %v3821_v17 }
 0x2b4   : > { %v4932_v20 = vadd.f32 %v4931_v3, %v4456_v18  ;;  %v4937_v21 = vadd.f32 %v4456_v18, %v3813_v4 }
 0x2b5   : > { %v4016_v50 = vmax.f32 %v4929_v6, 0.0  ;;  %v4935_v10 = vadd.f32 %v4934_v11, %v4906_v42 }
 0x2b6   : > { %v4014_v27 = vmax.f32 %v4932_v20, 0.0  ;;  %v4938_v13 = vadd.f32 %v4937_v21, %v3978_v19 }
 0x2b7   : > { %4024 = vst [vmem:[%s6114_s11 + $0x10] sm:$0xff] %v4016_v50  ;;  %v4017_v30 = vmax.f32 %v4935_v10, 0.0 }
 0x2b8   : > { %4022 = vst [vmem:[%s6114_s11] sm:$0xff] %v4014_v27  ;;  %v4015_v55 = vmax.f32 %v4938_v13, 0.0 }
 0x2b9   : > { %4025 = vst [vmem:[%s6114_s11 + $0x18] sm:$0xff] %v4017_v30 }
 0x2ba   : > { %4023 = vst [vmem:[%s6114_s11 + $0x8] sm:$0xff] %v4015_v55 }
 0x2ce   : > { %v4909_v37 = vpop.f32.mrb[68].mxu1 }
 0x2cf   : > { %v4940_v33 = vadd.f32 %v4939_v40, %v4909_v37  ;;  %v3991_v14 = vpop.f32.mrb[69].mxu1 }
 0x2d0   : > { %v4942_v25 = vadd.f32 %v4941_v31, %v3991_v14  ;;  %v4910_v38 = vpop.f32.mrb[70].mxu1 }
 0x2d1   : > { %v4020_v41 = vmax.f32 %v4940_v33, 0.0  ;;  %v4944_v51 = vadd.f32 %v4943_v35, %v4910_v38  ;;  %v3994_v43 = vpop.f32.mrb[71].mxu1 }
 0x2d2   : > { %v4018_v22 = vmax.f32 %v4942_v25, 0.0  ;;  %v4946_v7 = vadd.f32 %v4945_v39, %v3994_v43 }
 0x2d3   : > { %4028 = vst [vmem:[%s6114_s11 + $0x30] sm:$0xff] %v4020_v41  ;;  %v4021_v24 = vmax.f32 %v4944_v51, 0.0 }
 0x2d4   : > { %4026 = vst [vmem:[%s6114_s11 + $0x20] sm:$0xff] %v4018_v22  ;;  %v4019_v1 = vmax.f32 %v4946_v7, 0.0 }
 0x2d5   : > { %4029 = vst [vmem:[%s6114_s11 + $0x38] sm:$0xff] %v4021_v24 }
 0x2d6   : > { %4027 = vst [vmem:[%s6114_s11 + $0x28] sm:$0xff] %v4019_v1 }
 0x2d7   : > { %5240 = shalt.err (!%p5237_p7)
}
 0x2d8   : > { %s5241_s23 = scalar_lea.hbm %s6129_s13, 1024  ;;  %s5245_s6 = scalar_lea.hbm %s6181_s5, 2048 }
 0x2d9   : > { %p5242_p8 = scmp.ne.s32.totalorder %s6129_s13, %s5241_s23  ;;  %p5246_p1 = scmp.lt.u32.totalorder %s6129_s13, %s6181_s5 }
 0x2da   : > { %p5247_p0 = scmp.lt.u32.totalorder %s5245_s6, %s5241_s23  ;;  %p5249_p6 = scmp.lt.u32.totalorder %s5241_s23, %s6129_s13 }
 0x2db   : > { %p5243_p11 = pnand %p5242_p8, %p6202_p9 }
 0x2dc   : > { %p5248_p5 = por %p5247_p0, %p5246_p1 }
 0x2dd   : > { %p5244_p13 = pneg %p5243_p11 }
 0x2de   : > { %p5250_p10 = por %p5249_p6, %p5248_p5 }
 0x2e0   : > { %p5251_p12 = pnand %p5250_p10, %p5244_p13 }
 0x2e2   : > { %5254 = shalt.err (!%p5251_p12)
}
 0x2e3   : > { %s5300_s11 = smov 128   ;;  %s5301_s7 = smov 8  }
 0x2e4   : > { %4956 = dma.vmem_to_hbm [thread:$0]  (%p6202_p9), %s6122_s8, 1024, %s6129_s13, %s6135_s22, %s5300_s11, %s5300_s11, %s5301_s7  }
 0x2e5 PF: > { %p4968_p2 = scmp.ge.s32.totalorder %s5293_s21, 2  ;;  %s4059_s30 = sand.u32 1, %s5281_s18  }
 0x2e6   : > { %p6203_p3 = scmp.ne.s32.totalorder %s6186_s29, 0  ;;  %s4060_s12 = scalar_lea.sflag [#allocation7], %s4059_s30 }
 0x2e8   : > { %p4963_p4 = pnand %p4968_p2, %p6203_p3 }
 0x2ea   : > { %5276 = dma.done.wait (!%p4963_p4), %s4060_s12, 1024  }
 0x2eb   : > { %5278 = vsyncadd (!%p4963_p4), %s4060_s12, 4294966272  ;;  %p16_p7 = scmp.ge.s32.totalorder %s5357_s24, 4   ;;  %s6204_s18 = smov %s5285_s19 }
 0x2ec   : > { %s6205_s19 = smov %s5289_s20  ;;  %s6206_s20 = smov %s5368_s27 }
 0x2ed   : > { %s6207_s21 = smov %s5357_s24  ;;  %18 = sbr.rel (!%p16_p7) target bundleno = 4 (0x4), region = 88 }
 0x2f4   :  { %4065 = vsyncpa [#allocation6], 1 }
 0x2f5   :  { %4067 = vsyncpa [#allocation6 + $0x1], 1 }
 0x2f6   :  { %4068 = vsyncpa [#allocation7], 1 }
 0x2f7   :  { %4070 = vsyncpa [#allocation7 + $0x1], 1 }

</bundles_post_ra>
